<compile_context>
chip_gen: v7x
topology: tpu7x:2x2x1
jax: 0.10.0
libtpu: 0.0.40
codegen_flags: <defaults>
</compile_context>

<pallas_src>
import functools
import itertools

import jax
import jax.numpy as jnp
from jax.experimental import pallas as pl
from jax.experimental.pallas import tpu as pltpu

F32 = jnp.float32
BF16 = jnp.bfloat16


def _round_up(x, m):
    return ((x + m - 1) // m) * m


def _vmem_limit_bytes():
    cap = 128 * 1024 * 1024
    try:
        cap = int(getattr(pltpu.get_tpu_info(), "vmem_capacity_bytes", cap))
    except Exception:
        pass
    # 64 MiB physical VMEM (v7x): leave headroom for double buffering; 128 MiB (v5e/v6e):
    # allow a bigger working set.
    return 40 * 1024 * 1024 if cap <= 64 * 1024 * 1024 else 96 * 1024 * 1024


_VMEM_LIMIT = _vmem_limit_bytes()


def _compiler_params(dims):
    return pltpu.CompilerParams(dimension_semantics=dims, vmem_limit_bytes=_VMEM_LIMIT)


def _lead_batch_index_map(n, j, *, rank):
    del j
    return (n,) + (0,) * (rank - 1)


# --------------------------------------------------------------------------------------
# Pallas kernels
# --------------------------------------------------------------------------------------
def _conv3x3_kernel(*args, n_in, pool, relu, H, W, W_pad, fuse_proj):
    """Fused [optional 2x2 max-pool] + zero-pad + 3x3 conv + BN affine (+ReLU)
    (+ optional fused 1x1 output projection).

    Scratch layout per input (bf16, (H+4, W_pad, C)):
      row 0: guard zeros, row 1: top pad, rows 2..H+1: interior (cols [0,W)),
      row H+2: bottom pad, row H+3: slack.  Columns [W, W_pad) of interior rows are
      zeros and serve as both right and (via flat wrap) left horizontal padding.
    The conv is 3 matmuls per input with K = 3*Cin: the kx taps are folded into K by
    concatenating the -1/0/+1 shifted flattened slabs.
    """
    x_refs = args[:n_in]
    w_refs = args[n_in:2 * n_in]
    k = 2 * n_in
    scale_ref, shift_ref = args[k], args[k + 1]
    k += 2
    if fuse_proj:
        pw_ref, pb_ref = args[k], args[k + 1]
        k += 2
    o_ref = args[k]
    xpads = args[k + 1:k + 1 + n_in]
    acc_ref = args[k + 1 + n_in]

    L = H * W_pad

    # Build the padded (and optionally pooled) scratch once per batch element; the
    # cout-tile axis is 'arbitrary' so the guard is safe under megacore sharding.
    @pl.when(pl.program_id(1) == 0)
    def _build():
        for i in range(n_in):
            xr, xpad = x_refs[i], xpads[i]
            c = xpad.shape[-1]
            zrows = jnp.zeros((2, W_pad, c), xpad.dtype)
            xpad[0:2] = zrows                       # guard + top pad rows
            xpad[H + 2:H + 4] = zrows               # bottom pad + slack rows
            xpad[2:H + 2, W:, :] = jnp.zeros((H, W_pad - W, c), xpad.dtype)
            if pool:
                x = xr[0]                           # (H, 2, W, 2c) phase view
                v = jnp.maximum(
                    jnp.maximum(x[:, 0, :, :c], x[:, 0, :, c:]),
                    jnp.maximum(x[:, 1, :, :c], x[:, 1, :, c:]))
            else:
                v = xr[0]                           # (H, W, c)
            xpad[2:H + 2, 0:W, :] = v.astype(xpad.dtype)   # aligned interior store

    # 3x3 conv: 3 matmuls (K = 3*Cin) per input, accumulated in a VMEM f32 scratch.
    first = True
    for i in range(n_in):
        xpad, wr = xpads[i], w_refs[i]
        c = xpad.shape[-1]
        flat = xpad[...].reshape((H + 4) * W_pad, c)
        for ky in range(3):
            base = (ky + 1) * W_pad
            patch = jnp.concatenate(
                [flat[base - 1:base - 1 + L],       # kx = 0 (left tap)
                 flat[base:base + L],               # kx = 1 (center, aligned)
                 flat[base + 1:base + 1 + L]],      # kx = 2 (right tap)
                axis=-1)
            prod = jnp.dot(patch, wr[ky], preferred_element_type=F32)
            if first:
                acc_ref[...] = prod
                first = False
            else:
                acc_ref[...] += prod

    # Epilogue: slice valid columns, BN affine (+ReLU), optional fused 1x1 projection.
    tco = acc_ref.shape[-1]
    y = acc_ref[...].reshape(H, W_pad, tco)[:, :W, :]
    y = y * scale_ref[0] + shift_ref[0]
    if relu:
        y = jnp.maximum(y, 0.0)
    if fuse_proj:
        logits = (jnp.dot(y.reshape(H * W, tco).astype(BF16), pw_ref[...],
                          preferred_element_type=F32) + pb_ref[...])
        o_ref[...] = logits.reshape(1, H, W, -1).astype(o_ref.dtype)
    else:
        o_ref[...] = y.reshape(1, H, W, tco).astype(o_ref.dtype)


def _matmul_bias_kernel(x_ref, w_ref, b_ref, o_ref):
    """o = x @ w + b  (used for ConvTranspose2d(k=2, s=2))."""
    o_ref[...] = (jnp.dot(x_ref[...], w_ref[...], preferred_element_type=F32)
                  + b_ref[...]).astype(o_ref.dtype)


# --------------------------------------------------------------------------------------
# Wrappers around pallas_call
# --------------------------------------------------------------------------------------
def conv3x3_bn_relu(xs, w, scale, shift, *, relu=True, pool=False, out_proj=None):
    """3x3 'same' conv with fused BN affine (+ReLU), NHWC.

    xs: list of inputs, concatenated along channels inside the kernel (split-K matmuls).
        If pool=True, xs has one element of shape (N, 2H, 2W, C) and a 2x2/stride-2
        max-pool is fused before the conv.
    w: (3, 3, Cin_total, Cout);  scale/shift: (Cout,)
    out_proj: optional (Wp (Cout, P), bp (P,)) — fuses a trailing 1x1 conv (bias) into
              the epilogue; output is then (N, H, W, P) float32.
    """
    if pool:
        assert len(xs) == 1, "fused max-pool supports a single input"
        N, H2, W2, C = xs[0].shape
        H, W = H2 // 2, W2 // 2
        # Free (metadata-only) phase-split reshape; phases are extracted in-kernel.
        xin = [xs[0].astype(BF16).reshape(N, H, 2, W, 2 * C)]
        in_channels = [C]
        in_blocks = [(1, H, 2, W, 2 * C)]
    else:
        N, H, W, _ = xs[0].shape
        xin = [x.astype(BF16) for x in xs]
        in_channels = [x.shape[-1] for x in xs]
        in_blocks = [(1, H, W, c) for c in in_channels]

    cin = sum(in_channels)
    cout = w.shape[-1]
    assert w.shape == (3, 3, cin, cout), (w.shape, cin, cout)

    tco = 256 if cout % 256 == 0 else cout
    n_j = pl.cdiv(cout, tco)
    grid = (N, n_j)
    W_pad = max(8, _round_up(W + 1, 8))   # sublane-aligned scratch width (>= W+1)

    # Split the weight along Cin (fused channel-concat => per-input scratch + matmuls)
    # and pre-stack the kx taps along K: (3, 3, Ci, Cout) -> (3, 3*Ci, Cout).
    if len(in_channels) > 1:
        splits = list(itertools.accumulate(in_channels[:-1]))
        w_parts = jnp.split(w.astype(BF16), splits, axis=2)
    else:
        w_parts = [w.astype(BF16)]
    w_parts = [wp.reshape(3, 3 * c, cout) for wp, c in zip(w_parts, in_channels)]

    in_specs = [pl.BlockSpec(blk, functools.partial(_lead_batch_index_map, rank=len(blk)))
                for blk in in_blocks]
    in_specs += [pl.BlockSpec((3, 3 * c, tco), lambda n, j: (0, 0, j))
                 for c in in_channels]
    in_specs += [pl.BlockSpec((1, tco), lambda n, j: (0, j)),
                 pl.BlockSpec((1, tco), lambda n, j: (0, j))]

    args = [*xin, *w_parts,
            scale.reshape(1, cout).astype(F32), shift.reshape(1, cout).astype(F32)]

    fuse_proj = out_proj is not None
    if fuse_proj:
        assert n_j == 1, "fused 1x1 projection requires a single cout tile"
        pw, pb = out_proj
        c_proj = pw.shape[-1]
        in_specs += [pl.BlockSpec((cout, c_proj), lambda n, j: (0, 0)),
                     pl.BlockSpec((1, c_proj), lambda n, j: (0, 0))]
        args += [pw.astype(BF16), pb.reshape(1, c_proj).astype(F32)]
        out_c, out_dtype = c_proj, F32
    else:
        out_c, out_dtype = cout, BF16

    scratch = [pltpu.VMEM((H + 4, W_pad, c), BF16) for c in in_channels]
    scratch += [pltpu.VMEM((H * W_pad, tco), F32)]          # f32 accumulator

    kernel = functools.partial(_conv3x3_kernel, n_in=len(in_channels), pool=pool,
                               relu=relu, H=H, W=W, W_pad=W_pad, fuse_proj=fuse_proj)
    return pl.pallas_call(
        kernel,
        out_shape=jax.ShapeDtypeStruct((N, H, W, out_c), out_dtype),
        grid=grid,
        in_specs=in_specs,
        out_specs=pl.BlockSpec((1, H, W, out_c if fuse_proj else tco),
                               lambda n, j: (n, 0, 0, j)),
        scratch_shapes=scratch,
        compiler_params=_compiler_params(("parallel", "arbitrary")),
    )(*args)


def matmul_bias(x2d, w2d, b, out_dtype=BF16):
    """x2d: (M,K); w2d: (K,Ncols); b: (Ncols,) -> (M,Ncols). bf16 MXU, f32 accumulation."""
    M, K = x2d.shape
    ncols = w2d.shape[1]
    tn = 512 if (ncols % 512 == 0 and ncols > 512) else ncols
    tm = 256 if (M % 256 == 0 and M > 256) else M
    grid = (pl.cdiv(M, tm), pl.cdiv(ncols, tn))
    return pl.pallas_call(
        _matmul_bias_kernel,
        out_shape=jax.ShapeDtypeStruct((M, ncols), out_dtype),
        grid=grid,
        in_specs=[
            pl.BlockSpec((tm, K), lambda i, j: (i, 0)),
            pl.BlockSpec((K, tn), lambda i, j: (0, j)),
            pl.BlockSpec((1, tn), lambda i, j: (0, j)),
        ],
        out_specs=pl.BlockSpec((tm, tn), lambda i, j: (i, j)),
        compiler_params=_compiler_params(("parallel", "parallel")),
    )(x2d.astype(BF16), w2d.astype(BF16), b.reshape(1, ncols).astype(F32))


def conv_transpose2x2(x, w2d, b4):
    """ConvTranspose2d(kernel=2, stride=2): x (N,H,W,Cin) -> (N,2H,2W,Cout).

    w2d is the pre-folded (Cin, 4*Cout) weight with columns ordered (dy, dx, co);
    since kernel == stride there is no overlap: out[2i+dy, 2j+dx] = x[i,j] @ w[dy,dx] + b.
    """
    N, H, W, cin = x.shape
    cout = w2d.shape[1] // 4
    y2d = matmul_bias(x.reshape(N * H * W, cin), w2d, b4)    # (N*H*W, 4*Cout)
    y = y2d.reshape(N, H, W, 2, 2, cout)
    return jnp.transpose(y, (0, 1, 3, 2, 4, 5)).reshape(N, 2 * H, 2 * W, cout)


# --------------------------------------------------------------------------------------
# Parameter initialization (deterministic, synthetic)
# --------------------------------------------------------------------------------------
def _conv3_params(key, cin, cout):
    # Conv2d(bias=False) + BatchNorm2d folded into per-channel scale/shift (eval mode,
    # PyTorch-default running stats).
    std = (2.0 / (9.0 * cin)) ** 0.5
    w = (std * jax.random.normal(key, (3, 3, cin, cout), F32)).astype(BF16)
    eps = 1e-5
    gamma = jnp.ones((cout,), F32)
    beta = jnp.zeros((cout,), F32)
    running_mean = jnp.zeros((cout,), F32)
    running_var = jnp.ones((cout,), F32)
    scale = gamma / jnp.sqrt(running_var + eps)
    shift = beta - running_mean * scale
    return dict(w=w, scale=scale, shift=shift)


def _double_conv_params(key, cin, cout):
    k1, k2 = jax.random.split(key)
    return dict(c1=_conv3_params(k1, cin, cout), c2=_conv3_params(k2, cout, cout))


def _up_params(key, cin, cout):
    k1, k2, k3 = jax.random.split(key, 3)
    ch = cin // 2
    std = (2.0 / (4.0 * cin)) ** 0.5
    up_w = std * jax.random.normal(k1, (2, 2, cin, ch), F32)    # (dy, dx, ci, co)
    up_b = 0.01 * jax.random.normal(k2, (ch,), F32)
    # Pre-fold the ConvTranspose2d(k=2,s=2) weight into the (Cin, 4*Ch) matmul layout.
    up_w2d = jnp.transpose(up_w, (2, 0, 1, 3)).reshape(cin, 4 * ch).astype(BF16)
    up_b4 = jnp.tile(up_b, 4)
    return dict(up_w2d=up_w2d, up_b4=up_b4, **_double_conv_params(k3, cin, cout))


def init_unet_params(key, n_channels, n_classes=2):
    keys = jax.random.split(key, 11)
    params = dict(
        inc=_double_conv_params(keys[0], n_channels, 64),
        down1=_double_conv_params(keys[1], 64, 128),
        down2=_double_conv_params(keys[2], 128, 256),
        down3=_double_conv_params(keys[3], 256, 512),
        down4=_double_conv_params(keys[4], 512, 1024),
        up1=_up_params(keys[5], 1024, 512),
        up2=_up_params(keys[6], 512, 256),
        up3=_up_params(keys[7], 256, 128),
        up4=_up_params(keys[8], 128, 64),
    )
    std = (2.0 / 64.0) ** 0.5
    w_out = std * jax.random.normal(keys[9], (64, n_classes), F32)
    b_out = 0.01 * jax.random.normal(keys[10], (n_classes,), F32)
    # Pad the 1x1 output conv to a lane-dense 128-wide projection; valid columns are
    # sliced back out after the fused epilogue.
    w_pad = jnp.zeros((64, 128), F32).at[:, :n_classes].set(w_out).astype(BF16)
    b_pad = jnp.zeros((128,), F32).at[:n_classes].set(b_out)
    params["out"] = dict(w_pad=w_pad, b_pad=b_pad)
    return params


# --------------------------------------------------------------------------------------
# Forward pass
# --------------------------------------------------------------------------------------
def _double_conv(p, xs, *, pool=False, out_proj=None):
    x = conv3x3_bn_relu(xs, p["c1"]["w"], p["c1"]["scale"], p["c1"]["shift"],
                        relu=True, pool=pool)
    return conv3x3_bn_relu([x], p["c2"]["w"], p["c2"]["scale"], p["c2"]["shift"],
                           relu=True, out_proj=out_proj)


def _up_block(p, x_low, x_skip, *, out_proj=None):
    y = conv_transpose2x2(x_low, p["up_w2d"], p["up_b4"])
    dy = x_skip.shape[1] - y.shape[1]
    dx = x_skip.shape[2] - y.shape[2]
    if dy or dx:  # F.pad(x1, [dx//2, dx - dx//2, dy//2, dy - dy//2])
        y = jnp.pad(y, ((0, 0), (dy // 2, dy - dy // 2), (dx // 2, dx - dx // 2), (0, 0)))
    # torch.cat([x2, x1], dim=1) is fused into the first conv of the DoubleConv.
    return _double_conv(p, [x_skip, y], out_proj=out_proj)


def unet_forward(params, x_nchw, n_classes=2):
    """x_nchw: (N, n_channels, H, W) float32 -> logits (N, n_classes, H, W) float32."""
    x = jnp.transpose(x_nchw, (0, 2, 3, 1)).astype(BF16)   # NCHW -> NHWC, bf16 activations

    x1 = _double_conv(params["inc"], [x])
    x2 = _double_conv(params["down1"], [x1], pool=True)    # MaxPool2x2 fused into conv
    x3 = _double_conv(params["down2"], [x2], pool=True)
    x4 = _double_conv(params["down3"], [x3], pool=True)
    x5 = _double_conv(params["down4"], [x4], pool=True)

    u = _up_block(params["up1"], x5, x4)
    u = _up_block(params["up2"], u, x3)
    u = _up_block(params["up3"], u, x2)
    # Final 1x1 output conv fused into the epilogue of the last DoubleConv.
    logits_pad = _up_block(params["up4"], u, x1,
                           out_proj=(params["out"]["w_pad"], params["out"]["b_pad"]))

    logits = logits_pad[:, :, :, :n_classes]
    return jnp.transpose(logits, (0, 3, 1, 2)).astype(F32)  # NHWC -> NCHW


# --------------------------------------------------------------------------------------
if __name__ == "__main__":
    key = jax.random.PRNGKey(0)
    k_param, k_input = jax.random.split(key)

    n_channels, n_classes = 4, 2
    N, H, W = 2, 16, 16  # spatial must be divisible by 16 (4 downsampling stages)

    params = init_unet_params(k_param, n_channels, n_classes)
    x = jax.random.normal(k_input, (N, n_channels, H, W), F32)

    logits = unet_forward(params, x, n_classes)
    logits = jax.block_until_ready(logits)

    assert logits.shape == (N, n_classes, H, W), logits.shape
    assert logits.dtype == F32
    assert bool(jnp.all(jnp.isfinite(logits)))
    print("KERNEL_OK")
</pallas_src>

<mosaic_0001>
module attributes {stable_mosaic.version = 11 : i64} {
  func.func @_conv3x3_kernel(%arg0: i32, %arg1: i32, %arg2: memref<1x16x16x4xbf16, #tpu.memory_space<vmem>>, %arg3: memref<3x12x64xbf16, #tpu.memory_space<vmem>>, %arg4: memref<1x64xf32, #tpu.memory_space<vmem>>, %arg5: memref<1x64xf32, #tpu.memory_space<vmem>>, %arg6: memref<1x16x16x64xbf16, #tpu.memory_space<vmem>>, %arg7: memref<20x24x4xbf16, #tpu.memory_space<vmem>>, %arg8: memref<384x64xf32, #tpu.memory_space<vmem>>) attributes {dimension_semantics = [#tpu.dimension_semantics<parallel>, #tpu.dimension_semantics<arbitrary>], iteration_bounds = array<i64: 2, 1>, scalar_prefetch = 0 : i64, scratch_operands = 2 : i64, tpu.core_type = #tpu.core_type<tc>, window_params = [{transform_indices = @transform_0, window_bounds = array<i64: 1, 16, 16, 4>}, {transform_indices = @transform_1, window_bounds = array<i64: 3, 12, 64>}, {transform_indices = @transform_2, window_bounds = array<i64: 1, 64>}, {transform_indices = @transform_3, window_bounds = array<i64: 1, 64>}, {transform_indices = @transform_4, window_bounds = array<i64: 1, 16, 16, 64>}]} {
    %c0_i32 = arith.constant 0 : i32
    %0 = arith.cmpi eq, %arg1, %c0_i32 : i32
    %1 = arith.extui %0 : i1 to i32
    %c0_i32_0 = arith.constant 0 : i32
    %2 = arith.cmpi ne, %1, %c0_i32_0 : i32
    scf.if %2 {
      %cst_33 = arith.constant 0.000000e+00 : bf16
      %51 = vector.broadcast %cst_33 : bf16 to vector<2x24x4xbf16>
      %c0_34 = arith.constant 0 : index
      %c0_35 = arith.constant 0 : index
      %c0_36 = arith.constant 0 : index
      %52 = vector.load %arg7[%c0_34, %c0_35, %c0_36] : memref<20x24x4xbf16, #tpu.memory_space<vmem>>, vector<2x24x4xbf16>
      tpu.vector_store %arg7[%c0_34, %c0_35, %c0_36], %51 {strides = array<i32>} : memref<20x24x4xbf16, #tpu.memory_space<vmem>>, vector<2x24x4xbf16>,
      %c18 = arith.constant 18 : index
      %c0_37 = arith.constant 0 : index
      %c0_38 = arith.constant 0 : index
      %53 = vector.load %arg7[%c18, %c0_37, %c0_38] : memref<20x24x4xbf16, #tpu.memory_space<vmem>>, vector<2x24x4xbf16>
      tpu.vector_store %arg7[%c18, %c0_37, %c0_38], %51 {strides = array<i32>} : memref<20x24x4xbf16, #tpu.memory_space<vmem>>, vector<2x24x4xbf16>,
      %cst_39 = arith.constant 0.000000e+00 : bf16
      %54 = vector.broadcast %cst_39 : bf16 to vector<16x8x4xbf16>
      %c2_40 = arith.constant 2 : index
      %c16 = arith.constant 16 : index
      %c0_41 = arith.constant 0 : index
      %55 = vector.load %arg7[%c2_40, %c16, %c0_41] : memref<20x24x4xbf16, #tpu.memory_space<vmem>>, vector<16x8x4xbf16>
      tpu.vector_store %arg7[%c2_40, %c16, %c0_41], %54 {strides = array<i32>} : memref<20x24x4xbf16, #tpu.memory_space<vmem>>, vector<16x8x4xbf16>,
      %c0_42 = arith.constant 0 : index
      %c0_43 = arith.constant 0 : index
      %c0_44 = arith.constant 0 : index
      %c0_45 = arith.constant 0 : index
      %56 = vector.load %arg2[%c0_42, %c0_43, %c0_44, %c0_45] : memref<1x16x16x4xbf16, #tpu.memory_space<vmem>>, vector<1x16x16x4xbf16>
      %57 = vector.shape_cast %56 : vector<1x16x16x4xbf16> to vector<16x16x4xbf16>
      %c2_46 = arith.constant 2 : index
      %c0_47 = arith.constant 0 : index
      %c0_48 = arith.constant 0 : index
      %58 = vector.load %arg7[%c2_46, %c0_47, %c0_48] : memref<20x24x4xbf16, #tpu.memory_space<vmem>>, vector<16x16x4xbf16>
      tpu.vector_store %arg7[%c2_46, %c0_47, %c0_48], %57 {strides = array<i32>} : memref<20x24x4xbf16, #tpu.memory_space<vmem>>, vector<16x16x4xbf16>,
    } else {
    }
    %c0 = arith.constant 0 : index
    %c0_1 = arith.constant 0 : index
    %c0_2 = arith.constant 0 : index
    %3 = vector.load %arg7[%c0, %c0_1, %c0_2] : memref<20x24x4xbf16, #tpu.memory_space<vmem>>, vector<20x24x4xbf16>
    %4 = vector.shape_cast %3 : vector<20x24x4xbf16> to vector<480x4xbf16>
    %5 = vector.extract_strided_slice %4 {offsets = [23, 0], sizes = [384, 4], strides = [1, 1]} : vector<480x4xbf16> to vector<384x4xbf16>
    %6 = vector.extract_strided_slice %4 {offsets = [24, 0], sizes = [384, 4], strides = [1, 1]} : vector<480x4xbf16> to vector<384x4xbf16>
    %7 = vector.extract_strided_slice %4 {offsets = [25, 0], sizes = [384, 4], strides = [1, 1]} : vector<480x4xbf16> to vector<384x4xbf16>
    %8 = tpu.concatenate %5, %6, %7 in 1 : vector<384x4xbf16>, vector<384x4xbf16>, vector<384x4xbf16> -> vector<384x12xbf16>
    %c0_3 = arith.constant 0 : index
    %c0_4 = arith.constant 0 : index
    %c0_5 = arith.constant 0 : index
    %9 = vector.load %arg3[%c0_3, %c0_4, %c0_5] : memref<3x12x64xbf16, #tpu.memory_space<vmem>>, vector<1x12x64xbf16>
    %10 = vector.shape_cast %9 : vector<1x12x64xbf16> to vector<12x64xbf16>
    %cst = arith.constant dense<0.000000e+00> : vector<384x64xf32>
    %11 = tpu.matmul %8, %10, %cst {dimension_numbers = #tpu.dot_dimension_numbers<[1], [0], [0], [1], [0, 0, 1, 1], [], []>} : vector<384x12xbf16>, vector<12x64xbf16>, vector<384x64xf32> -> vector<384x64xf32>
    %c0_6 = arith.constant 0 : index
    %c0_7 = arith.constant 0 : index
    %12 = vector.load %arg8[%c0_6, %c0_7] : memref<384x64xf32, #tpu.memory_space<vmem>>, vector<384x64xf32>
    tpu.vector_store %arg8[%c0_6, %c0_7], %11 {strides = array<i32>} : memref<384x64xf32, #tpu.memory_space<vmem>>, vector<384x64xf32>,
    %13 = vector.extract_strided_slice %4 {offsets = [47, 0], sizes = [384, 4], strides = [1, 1]} : vector<480x4xbf16> to vector<384x4xbf16>
    %14 = vector.extract_strided_slice %4 {offsets = [48, 0], sizes = [384, 4], strides = [1, 1]} : vector<480x4xbf16> to vector<384x4xbf16>
    %15 = vector.extract_strided_slice %4 {offsets = [49, 0], sizes = [384, 4], strides = [1, 1]} : vector<480x4xbf16> to vector<384x4xbf16>
    %16 = tpu.concatenate %13, %14, %15 in 1 : vector<384x4xbf16>, vector<384x4xbf16>, vector<384x4xbf16> -> vector<384x12xbf16>
    %c1 = arith.constant 1 : index
    %c0_8 = arith.constant 0 : index
    %c0_9 = arith.constant 0 : index
    %17 = vector.load %arg3[%c1, %c0_8, %c0_9] : memref<3x12x64xbf16, #tpu.memory_space<vmem>>, vector<1x12x64xbf16>
    %18 = vector.shape_cast %17 : vector<1x12x64xbf16> to vector<12x64xbf16>
    %cst_10 = arith.constant dense<0.000000e+00> : vector<384x64xf32>
    %19 = tpu.matmul %16, %18, %cst_10 {dimension_numbers = #tpu.dot_dimension_numbers<[1], [0], [0], [1], [0, 0, 1, 1], [], []>} : vector<384x12xbf16>, vector<12x64xbf16>, vector<384x64xf32> -> vector<384x64xf32>
    %c0_11 = arith.constant 0 : index
    %c0_12 = arith.constant 0 : index
    %20 = vector.load %arg8[%c0_11, %c0_12] : memref<384x64xf32, #tpu.memory_space<vmem>>, vector<384x64xf32>
    %21 = arith.addf %20, %19 : vector<384x64xf32>
    %c0_13 = arith.constant 0 : index
    %c0_14 = arith.constant 0 : index
    %22 = vector.load %arg8[%c0_13, %c0_14] : memref<384x64xf32, #tpu.memory_space<vmem>>, vector<384x64xf32>
    tpu.vector_store %arg8[%c0_13, %c0_14], %21 {strides = array<i32>} : memref<384x64xf32, #tpu.memory_space<vmem>>, vector<384x64xf32>,
    %23 = vector.extract_strided_slice %4 {offsets = [71, 0], sizes = [384, 4], strides = [1, 1]} : vector<480x4xbf16> to vector<384x4xbf16>
    %24 = vector.extract_strided_slice %4 {offsets = [72, 0], sizes = [384, 4], strides = [1, 1]} : vector<480x4xbf16> to vector<384x4xbf16>
    %25 = vector.extract_strided_slice %4 {offsets = [73, 0], sizes = [384, 4], strides = [1, 1]} : vector<480x4xbf16> to vector<384x4xbf16>
    %26 = tpu.concatenate %23, %24, %25 in 1 : vector<384x4xbf16>, vector<384x4xbf16>, vector<384x4xbf16> -> vector<384x12xbf16>
    %c2 = arith.constant 2 : index
    %c0_15 = arith.constant 0 : index
    %c0_16 = arith.constant 0 : index
    %27 = vector.load %arg3[%c2, %c0_15, %c0_16] : memref<3x12x64xbf16, #tpu.memory_space<vmem>>, vector<1x12x64xbf16>
    %28 = vector.shape_cast %27 : vector<1x12x64xbf16> to vector<12x64xbf16>
    %cst_17 = arith.constant dense<0.000000e+00> : vector<384x64xf32>
    %29 = tpu.matmul %26, %28, %cst_17 {dimension_numbers = #tpu.dot_dimension_numbers<[1], [0], [0], [1], [0, 0, 1, 1], [], []>} : vector<384x12xbf16>, vector<12x64xbf16>, vector<384x64xf32> -> vector<384x64xf32>
    %c0_18 = arith.constant 0 : index
    %c0_19 = arith.constant 0 : index
    %30 = vector.load %arg8[%c0_18, %c0_19] : memref<384x64xf32, #tpu.memory_space<vmem>>, vector<384x64xf32>
    %31 = arith.addf %30, %29 : vector<384x64xf32>
    %c0_20 = arith.constant 0 : index
    %c0_21 = arith.constant 0 : index
    %32 = vector.load %arg8[%c0_20, %c0_21] : memref<384x64xf32, #tpu.memory_space<vmem>>, vector<384x64xf32>
    tpu.vector_store %arg8[%c0_20, %c0_21], %31 {strides = array<i32>} : memref<384x64xf32, #tpu.memory_space<vmem>>, vector<384x64xf32>,
    %c0_22 = arith.constant 0 : index
    %c0_23 = arith.constant 0 : index
    %33 = vector.load %arg8[%c0_22, %c0_23] : memref<384x64xf32, #tpu.memory_space<vmem>>, vector<384x64xf32>
    %34 = vector.shape_cast %33 : vector<384x64xf32> to vector<16x24x64xf32>
    %35 = vector.extract_strided_slice %34 {offsets = [0, 0, 0], sizes = [16, 16, 64], strides = [1, 1, 1]} : vector<16x24x64xf32> to vector<16x16x64xf32>
    %c0_24 = arith.constant 0 : index
    %c0_25 = arith.constant 0 : index
    %36 = vector.load %arg4[%c0_24, %c0_25] : memref<1x64xf32, #tpu.memory_space<vmem>>, vector<1x64xf32>
    %37 = vector.shape_cast %36 : vector<1x64xf32> to vector<64xf32>
    %38 = vector.shape_cast %37 : vector<64xf32> to vector<1x1x64xf32>
    %39 = vector.broadcast %38 : vector<1x1x64xf32> to vector<16x16x64xf32>
    %40 = arith.mulf %35, %39 : vector<16x16x64xf32>
    %c0_26 = arith.constant 0 : index
    %c0_27 = arith.constant 0 : index
    %41 = vector.load %arg5[%c0_26, %c0_27] : memref<1x64xf32, #tpu.memory_space<vmem>>, vector<1x64xf32>
    %42 = vector.shape_cast %41 : vector<1x64xf32> to vector<64xf32>
    %43 = vector.shape_cast %42 : vector<64xf32> to vector<1x1x64xf32>
    %44 = vector.broadcast %43 : vector<1x1x64xf32> to vector<16x16x64xf32>
    %45 = arith.addf %40, %44 : vector<16x16x64xf32>
    %cst_28 = arith.constant 0.000000e+00 : f32
    %46 = vector.broadcast %cst_28 : f32 to vector<16x16x64xf32>
    %47 = arith.maximumf %45, %46 : vector<16x16x64xf32>
    %48 = vector.shape_cast %47 : vector<16x16x64xf32> to vector<1x16x16x64xf32>
    %49 = arith.truncf %48 : vector<1x16x16x64xf32> to vector<1x16x16x64xbf16>
    %c0_29 = arith.constant 0 : index
    %c0_30 = arith.constant 0 : index
    %c0_31 = arith.constant 0 : index
    %c0_32 = arith.constant 0 : index
    %50 = vector.load %arg6[%c0_29, %c0_30, %c0_31, %c0_32] : memref<1x16x16x64xbf16, #tpu.memory_space<vmem>>, vector<1x16x16x64xbf16>
    tpu.vector_store %arg6[%c0_29, %c0_30, %c0_31, %c0_32], %49 {strides = array<i32>} : memref<1x16x16x64xbf16, #tpu.memory_space<vmem>>, vector<1x16x16x64xbf16>,
    return
  }
  func.func @transform_0(%arg0: i32, %arg1: i32) -> (i32, i32, i32, i32) {
    %c0_i32 = arith.constant 0 : i32
    %c0_i32_0 = arith.constant 0 : i32
    %c0_i32_1 = arith.constant 0 : i32
    %c0_i32_2 = arith.constant 0 : i32
    return %arg0, %c0_i32, %c0_i32_0, %c0_i32_1 : i32, i32, i32, i32
  }
  func.func @transform_1(%arg0: i32, %arg1: i32) -> (i32, i32, i32) {
    %c0_i32 = arith.constant 0 : i32
    %c0_i32_0 = arith.constant 0 : i32
    %c0_i32_1 = arith.constant 0 : i32
    return %c0_i32, %c0_i32_0, %arg1 : i32, i32, i32
  }
  func.func @transform_2(%arg0: i32, %arg1: i32) -> (i32, i32) {
    %c0_i32 = arith.constant 0 : i32
    %c0_i32_0 = arith.constant 0 : i32
    return %c0_i32, %arg1 : i32, i32
  }
  func.func @transform_3(%arg0: i32, %arg1: i32) -> (i32, i32) {
    %c0_i32 = arith.constant 0 : i32
    %c0_i32_0 = arith.constant 0 : i32
    return %c0_i32, %arg1 : i32, i32
  }
  func.func @transform_4(%arg0: i32, %arg1: i32) -> (i32, i32, i32, i32) {
    %c0_i32 = arith.constant 0 : i32
    %c0_i32_0 = arith.constant 0 : i32
    %c0_i32_1 = arith.constant 0 : i32
    return %arg0, %c0_i32, %c0_i32_0, %arg1 : i32, i32, i32, i32
  }
}

</mosaic_0001>

<bundles_post_ra>
// kernel: tpu_custom_call.1
= control target key start
LH: loop header
LB: loop body
LE: loop exit
PB: predicated region body
PF: predicated region fallthrough
CT: control target
= control target key end

     0   :  { %9 = vsyncpa [#allocation5], 0  ;;  %s6500_s0 = inlined_call_operand.hbm [shape: bf16[2,16,16,4], index: 0, kind: input, shape index: {}]   ;;  %s6501_s1 = inlined_call_operand.hbm [shape: bf16[3,12,64], index: 1, kind: input, shape index: {}]   ;;  %s6502_s2 = inlined_call_operand.hbm [shape: f32[1,64], index: 2, kind: input, shape index: {}]   ;;  %s6503_s3 = inlined_call_operand.hbm [shape: f32[1,64], index: 3, kind: input, shape index: {}]   ;;  %s6504_s4 = inlined_call_operand.hbm [shape: bf16[2,16,16,64], index: 4, kind: output, shape index: {}]  }
   0x1   :  { %11 = vsyncpa [#allocation5 + $0x1], 0 }
   0x2   :  { %12 = vsyncpa [#allocation8], 0 }
   0x3   :  { %13 = vsyncpa [#allocation11], 0 }
   0x4   :  { %14 = vsyncpa [#allocation6], 0 }
   0x5   :  { %16 = vsyncpa [#allocation6 + $0x1], 0  ;;  %s4553_s15 = smov 0   ;;  %s4555_s16 = smov 0  }
   0x6   :  { %s4557_s17 = smov 0   ;;  %s4559_s18 = smov 0  }
   0x7   :  { %s4561_s19 = smov 0   ;;  %s4563_s20 = smov 0  }
   0x8 LB: > { %s3712_s21 = sadd.s32 4294967295, %s4515_s20   ;;  %s3713_s22 = sadd.s32 4294967294, %s4515_s20   ;;  %s4515_s20 = sphi %s4563_s20, %s22_s20   ;;  %s4511_s19 = sphi %s4561_s19, %s6671_s19   ;;  %s4507_s18 = sphi %s4559_s18, %s6670_s18   ;;  %s4503_s17 = sphi %s4557_s17, %s6669_s17   ;;  %s4499_s16 = sphi %s4555_s16, %s6668_s16   ;;  %s4495_s15 = sphi %s4553_s15, %s6667_s15  }
   0x9   : > { %p54_p0 = scmp.ne.s32.totalorder %s4499_s16, %s4495_s15  ;;  %p4587_p1 = scmp.eq.s32.totalorder %s3712_s21, 0 }
   0xa   : > { %p4591_p2 = scmp.eq.s32.totalorder %s3712_s21, 1  ;;  %p164_p3 = scmp.eq.s32.totalorder %s3713_s22, 1 }
   0xb   : > { %s6555_s23 = scalar_select %p4587_p1, 1, 0 }
   0xc   : > { %s6556_s24 = scalar_select %p4591_p2, 1, 0 }
   0xd   : > { %p4597_p4 = por %p4587_p1, %p54_p0  ;;  %p3714_p5 = scmp.ge.s32.totalorder %s4515_s20, 1 }
   0xe   : > { %p4602_p6 = por %p164_p3, %p54_p0  ;;  %p171_p7 = scmp.lt.s32.totalorder %s4515_s20, 3 }
   0xf   : > { %s6557_s25 = scalar_select %p4597_p4, 1, 0 }
  0x10   : > { %s6558_s26 = scalar_select %p4602_p6, 1, 0 }
  0x11   : > { %p4607_p8 = pnand %p3714_p5, %p171_p7  ;;  %s4517_s28 = smov [#allocation7]  }
  0x12   : > { %6559 = sst [smem:[#allocation17_spill]] %s6558_s26  ;;  %s185_s29 = sshll.u32 %s4517_s28, 4  ;;  %s4611_s29 = int_to_ptr.vmem [resolvable:$true] %s185_s29 }
  0x13   : > { %s6560_s27 = scalar_select %p4607_p8, 1, 0 }
  0x14   : > { %p4183_p9 = pneg %p4607_p8  ;;  %s4518_s5 = smov [#allocation9]  }
  0x15   : > { %s201_s6 = sshll.u32 %s4518_s5, 4  ;;  %s4519_s7 = smov [#allocation10]   ;;  %s4622_s6 = int_to_ptr.vmem [resolvable:$true] %s201_s6 }
  0x16   : > { %p4618_p11 = pnand %p4183_p9, %p4587_p1  ;;  %s4624_s8 = sshll.u32 %s4519_s7, 4  ;;  %s215_s8 = int_to_ptr.vmem [resolvable:$true] %s4624_s8 }
  0x17   : > { %s4311_s11 = scalar_lea.hbm %s6501_s1, 384 }
  0x18   : > { %p4312_p12 = scmp.ne.s32.totalorder %s6501_s1, %s4311_s11  ;;  %p4634_p13 = pneg %p4618_p11 }
  0x19   : > { %p4318_p5 = scmp.lt.u32.totalorder %s4311_s11, %s6501_s1 }
  0x1a   : > { %p4314_p0 = pnand %p4634_p13, %p4312_p12 }
  0x1c   : > { %p4315_p3 = pneg %p4314_p0 }
  0x1e   : > { %p4320_p7 = pnand %p4318_p5, %p4315_p3 }
  0x20   : > { %4323 = shalt.err (!%p4320_p7)
}
  0x21   : > { %s4324_s28 = scalar_lea.vmem %s4611_s29, 384  ;;  %p4332_p1 = scmp.lt.s32.totalorder %s4611_s29, %s4611_s29 }
  0x22   : > { %p4325_p9 = scmp.ne.s32.totalorder %s4611_s29, %s4324_s28  ;;  %p4333_p4 = scmp.lt.s32.totalorder %s4324_s28, %s4324_s28 }
  0x24   : > { %p4327_p10 = pnand %p4325_p9, %p4634_p13  ;;  %p4334_p12 = por %p4333_p4, %p4332_p1 }
  0x26   : > { %p4328_p6 = pneg %p4327_p10 }
  0x28   : > { %p4335_p0 = pnand %p4334_p12, %p4328_p6 }
  0x2a   : > { %4338 = shalt.err (!%p4335_p0)
}
  0x2b   : > { %s4520_s5 = smov 64   ;;  %s4521_s7 = smov 4  }
  0x2c   : > { %4186 = dma.hbm_to_vmem [thread:$0]  (!%p4618_p11), %s6501_s1, 384, %s4611_s29, [#allocation8], %s4520_s5, %s4520_s5, %s4521_s7  }
  0x2d   : > { %s4339_s13 = scalar_lea.hbm %s6502_s2, 16 }
  0x2e   : > { %p4340_p1 = scmp.ne.s32.totalorder %s6502_s2, %s4339_s13  ;;  %p4346_p10 = scmp.lt.u32.totalorder %s4339_s13, %s6502_s2 }
  0x30   : > { %p4342_p4 = pnand %p4340_p1, %p4634_p13 }
  0x32   : > { %p4343_p6 = pneg %p4342_p4 }
  0x34   : > { %p4348_p3 = pnand %p4346_p10, %p4343_p6 }
  0x36   : > { %4351 = shalt.err (!%p4348_p3)
}
  0x37   : > { %s4352_s29 = scalar_lea.vmem %s4622_s6, 16  ;;  %s4359_s9 = scalar_lea.vmem %s4622_s6, 32 }
  0x38   : > { %p4353_p5 = scmp.ne.s32.totalorder %s4622_s6, %s4352_s29  ;;  %p4360_p12 = scmp.lt.s32.totalorder %s4622_s6, %s4622_s6 }
  0x39   : > { %p4361_p0 = scmp.lt.s32.totalorder %s4359_s9, %s4352_s29 }
  0x3a   : > { %p4355_p7 = pnand %p4353_p5, %p4634_p13 }
  0x3b   : > { %p4362_p1 = por %p4361_p0, %p4360_p12 }
  0x3c   : > { %p4356_p9 = pneg %p4355_p7 }
  0x3e   : > { %p4363_p4 = pnand %p4362_p1, %p4356_p9 }
  0x40   : > { %4366 = shalt.err (!%p4363_p4)
}
  0x41   : > { %4189 = dma.hbm_to_vmem [thread:$0]  (!%p4618_p11), %s6502_s2, 16, %s4622_s6, [#allocation8]  }
  0x42   : > { %s4367_s13 = scalar_lea.hbm %s6503_s3, 16 }
  0x43   : > { %p4368_p6 = scmp.ne.s32.totalorder %s6503_s3, %s4367_s13  ;;  %p4374_p5 = scmp.lt.u32.totalorder %s4367_s13, %s6503_s3 }
  0x45   : > { %p4370_p10 = pnand %p4368_p6, %p4634_p13 }
  0x47   : > { %p4371_p3 = pneg %p4370_p10 }
  0x49   : > { %p4376_p7 = pnand %p4374_p5, %p4371_p3 }
  0x4b   : > { %4379 = shalt.err (!%p4376_p7)
}
  0x4c   : > { %s4380_s9 = scalar_lea.vmem %s215_s8, 16  ;;  %s4387_s6 = scalar_lea.vmem %s215_s8, 32 }
  0x4d   : > { %p4381_p9 = scmp.ne.s32.totalorder %s215_s8, %s4380_s9  ;;  %p4388_p1 = scmp.lt.s32.totalorder %s215_s8, %s215_s8 }
  0x4e   : > { %p4389_p4 = scmp.lt.s32.totalorder %s4387_s6, %s4380_s9 }
  0x4f   : > { %p4383_p12 = pnand %p4381_p9, %p4634_p13 }
  0x50   : > { %p4390_p8 = por %p4389_p4, %p4388_p1 }
  0x51   : > { %p4384_p0 = pneg %p4383_p12 }
  0x53   : > { %p4391_p2 = pnand %p4390_p8, %p4384_p0 }
  0x55   : > { %4394 = shalt.err (!%p4391_p2)
}
  0x56   : > { %4192 = dma.hbm_to_vmem [thread:$0]  (!%p4618_p11), %s6503_s3, 16, %s215_s8, [#allocation11]  }
  0x57   : > { %s41_s14 = sadd.s32 1, %s4503_s17  ;;  %s34_s11 = sadd.s32 1, %s4511_s19 }
  0x58   : > { %p48_p2 = scmp.ne.s32.totalorder %s4503_s17, %s4499_s16  ;;  %p36_p8 = scmp.ge.s32.totalorder %s34_s11, 2 }
  0x59   : > { %p49_p13 = scmp.eq.s32.totalorder %s4515_s20, 0  ;;  %p6563_p6 = scmp.ne.s32.totalorder %s6556_s24, 0 }
  0x5a   : > { %p4204_p3 = scmp.lt.s32.totalorder %s4515_s20, 2  ;;  %s6673_s11 = smov (%p36_p8, %s34_s11), 0 }
  0x5b   : > { %p4708_p10 = por %p6563_p6, %p48_p2  ;;  %p50_p5 = por %p49_p13, %p48_p2 }
  0x5c   : > { %s225_s12 = sand.u32 1, %s4503_s17   ;;  %s38_s13 = ssub.s32 %s4511_s19, %s6673_s11 }
  0x5d   : > { %p39_p7 = scmp.eq.s32.totalorder %s38_s13, 0  ;;  %s3719_s8 = sshll.u32 %s225_s12, 7 }
  0x5e   : > { %s3902_s21 = sshll.u32 %s4511_s19, 11  ;;  %s229_s9 = scalar_lea.vmem [#allocation4], %s3719_s8 }
  0x5f   : > { %s4720_s22 = scalar_select %p39_p7, %s4503_s17, %s41_s14  }
  0x60   : > { %s4725_s24 = scalar_lea.hbm %s6500_s0, %s3902_s21  ;;  %s236_s6 = sshll.u32 %s229_s9, 4  ;;  %s4727_s6 = int_to_ptr.vmem [resolvable:$true] %s236_s6 }
  0x61   : > { %p4731_p11 = pnand %p4204_p3, %p50_p5  ;;  %s4735_s10 = scalar_lea.sflag [#allocation5], %s225_s12 }
  0x62   : > { %s4395_s14 = scalar_lea.hbm %s4725_s24, 2048  ;;  %s4400_s21 = scalar_lea.hbm %s6500_s0, 4096 }
  0x63   : > { %p4396_p9 = scmp.ne.s32.totalorder %s4725_s24, %s4395_s14  ;;  %p4397_p12 = pneg %p4731_p11 }
  0x64   : > { %p4401_p4 = scmp.lt.u32.totalorder %s4725_s24, %s6500_s0  ;;  %p4402_p2 = scmp.lt.u32.totalorder %s4400_s21, %s4395_s14 }
  0x65   : > { %p4398_p0 = pnand %p4397_p12, %p4396_p9  ;;  %p4404_p13 = scmp.lt.u32.totalorder %s4395_s14, %s4725_s24 }
  0x66   : > { %p4403_p8 = por %p4402_p2, %p4401_p4 }
  0x67   : > { %p4399_p1 = pneg %p4398_p0 }
  0x68   : > { %p4405_p6 = por %p4404_p13, %p4403_p8 }
  0x6a   : > { %p4406_p3 = pnand %p4405_p6, %p4399_p1 }
  0x6c   : > { %4409 = shalt.err (!%p4406_p3)
}
  0x6d   : > { %s4410_s12 = scalar_lea.vmem %s4727_s6, 2048  ;;  %s4522_s9 = smov [#allocation4]  }
  0x6e   : > { %p4411_p5 = scmp.ne.s32.totalorder %s4727_s6, %s4410_s12  ;;  %s4415_s13 = sshll.u32 %s4522_s9, 4  ;;  %s4416_s13 = int_to_ptr.vmem [resolvable:$false] %s4415_s13 }
  0x6f   : > { %s4417_s8 = scalar_lea.vmem %s4416_s13, 4096  ;;  %p4418_p0 = scmp.lt.s32.totalorder %s4727_s6, %s4416_s13 }
  0x70   : > { %p4413_p7 = pnand %p4411_p5, %p4397_p12  ;;  %p4419_p4 = scmp.lt.s32.totalorder %s4417_s8, %s4410_s12 }
  0x72   : > { %p4414_p9 = pneg %p4413_p7  ;;  %p4420_p2 = por %p4419_p4, %p4418_p0 }
  0x74   : > { %p4421_p8 = pnand %p4420_p2, %p4414_p9 }
  0x76   : > { %4424 = shalt.err (!%p4421_p8)
}
  0x77   : > { %4196 = dma.hbm_to_vmem [thread:$0]  (!%p4731_p11), %s4725_s24, 2048, %s4727_s6, %s4735_s10, %s4520_s5, %s4520_s5, %s4521_s7  }
  0x78   : > { %p6566_p12 = scmp.ne.s32.totalorder %s6560_s27, 0 }
  0x7a   : > { %248 = sbr.rel (%p6566_p12) target bundleno = 756 (0x2f4), region = 36 }
  0x81   : > { %s4769_s14 = sand.u32 1, %s4499_s16   ;;  %p6567_p1 = scmp.ne.s32.totalorder %s6557_s25, 0 }
  0x82   : > { %s3723_s21 = sshll.u32 %s4769_s14, 7  ;;  %s251_s28 = scalar_lea.sflag [#allocation5], %s4769_s14 }
  0x83   : > { %s4775_s26 = scalar_lea.vmem [#allocation4], %s3723_s21 }
  0x84   : > { %4478 = dma.done.wait (%p6567_p1), %s251_s28, 2048  }
  0x85   : > { %4480 = vsyncadd (%p6567_p1), %s251_s28, 4294965248  ;;  %p6568_p11 = scmp.ne.s32.totalorder %s6555_s23, 0 }
  0x87   : > { %4482 = dma.done.wait (%p6568_p11), [#allocation8], 400  }
  0x88   : > { %4484 = vsyncadd (%p6568_p11), [#allocation8], 4294966896 }
  0x89   : > { %4486 = dma.done.wait (%p6568_p11), [#allocation11], 16  }
  0x8a   : > { %4488 = vsyncadd (%p6568_p11), [#allocation11], 4294967280  ;;  %vm296_vm0 = vcmask 27648   ;;  %v4523_v0 = vmov 0   ;;  %v341_v1 = vld [vmem:[%s4775_s26 + $0x38] sm:$0xf] }
  0x8b   : > { %300 = vst.msk [vmem:[#allocation2 + $0xc] sm:$0xf] %vm296_vm0, %v4523_v0  ;;  %301 = vst.msk [vmem:[#allocation2 + $0x10] sm:$0xf] %vm296_vm0, %v4523_v0  ;;  %v342_v2 = vld [vmem:[%s4775_s26 + $0x3c] sm:$0xf] }
  0x8c   : > { %299 = vst.msk [vmem:[#allocation2 + $0x8] sm:$0xf] %vm296_vm0, %v4523_v0  ;;  %302 = vst.msk [vmem:[#allocation2 + $0x14] sm:$0xf] %vm296_vm0, %v4523_v0  ;;  %v343_v3 = vld [vmem:[%s4775_s26 + $0x40] sm:$0xf] }
  0x8d   : > { %304 = vst.msk [vmem:[#allocation2 + $0xd8] sm:$0xf] %vm296_vm0, %v4523_v0  ;;  %305 = vst.msk [vmem:[#allocation2 + $0xdc] sm:$0xf] %vm296_vm0, %v4523_v0  ;;  %v339_v7 = vld [vmem:[%s4775_s26 + $0x30] sm:$0xf] }
  0x8e   : > { %306 = vst.msk [vmem:[#allocation2 + $0xe0] sm:$0xf] %vm296_vm0, %v4523_v0  ;;  %307 = vst.msk [vmem:[#allocation2 + $0xe4] sm:$0xf] %vm296_vm0, %v4523_v0  ;;  %v340_v8 = vld [vmem:[%s4775_s26 + $0x34] sm:$0xf] }
  0x8f   : > { %311 = vst.msk [vmem:[#allocation2 + $0x20] sm:$0xf] %vm296_vm0, %v4523_v0  ;;  %312 = vst.msk [vmem:[#allocation2 + $0x2c] sm:$0xf] %vm296_vm0, %v4523_v0  ;;  %v344_v9 = vld [vmem:[%s4775_s26 + $0x44] sm:$0xf] }
  0x90   : > { %313 = vst.msk [vmem:[#allocation2 + $0x38] sm:$0xf] %vm296_vm0, %v4523_v0  ;;  %314 = vst.msk [vmem:[#allocation2 + $0x44] sm:$0xf] %vm296_vm0, %v4523_v0  ;;  %v345_v10 = vld [vmem:[%s4775_s26 + $0x48] sm:$0xf] }
  0x91   : > { %315 = vst.msk [vmem:[#allocation2 + $0x50] sm:$0xf] %vm296_vm0, %v4523_v0  ;;  %316 = vst.msk [vmem:[#allocation2 + $0x5c] sm:$0xf] %vm296_vm0, %v4523_v0  ;;  %v346_v11 = vld [vmem:[%s4775_s26 + $0x4c] sm:$0xf] }
  0x92   : > { %317 = vst.msk [vmem:[#allocation2 + $0x68] sm:$0xf] %vm296_vm0, %v4523_v0  ;;  %318 = vst.msk [vmem:[#allocation2 + $0x74] sm:$0xf] %vm296_vm0, %v4523_v0  ;;  %v392_v4 = vld [vmem:[#allocation2 + $0xc] sm:$0xf] }
  0x93   : > { %319 = vst.msk [vmem:[#allocation2 + $0x80] sm:$0xf] %vm296_vm0, %v4523_v0  ;;  %320 = vst.msk [vmem:[#allocation2 + $0x8c] sm:$0xf] %vm296_vm0, %v4523_v0  ;;  %v393_v5 = vld [vmem:[#allocation2 + $0x10] sm:$0xf] }
  0x94   : > { %321 = vst.msk [vmem:[#allocation2 + $0x98] sm:$0xf] %vm296_vm0, %v4523_v0  ;;  %322 = vst.msk [vmem:[#allocation2 + $0xa4] sm:$0xf] %vm296_vm0, %v4523_v0  ;;  %v4819_v6 = vcombine.low %v392_v4, %v393_v5  ;;  %v347_v16 = vld [vmem:[%s4775_s26 + $0x50] sm:$0xf] }
  0x95   : > { %323 = vst.msk [vmem:[#allocation2 + $0xb0] sm:$0xf] %vm296_vm0, %v4523_v0  ;;  %324 = vst.msk [vmem:[#allocation2 + $0xbc] sm:$0xf] %vm296_vm0, %v4523_v0  ;;  %v327_v17 = vld [vmem:[%s4775_s26] sm:$0xf] }
  0x96   : > { %325 = vst.msk [vmem:[#allocation2 + $0xc8] sm:$0xf] %vm296_vm0, %v4523_v0  ;;  %326 = vst.msk [vmem:[#allocation2 + $0xd4] sm:$0xf] %vm296_vm0, %v4523_v0  ;;  %v864_v12 = vrot.slane %v4819_v6, 5  ;;  %v596_v13 = vshrl.u32 %v4819_v6, 16 }
  0x97   : > { %373 = vst.msk [vmem:[#allocation2 + $0x6c] sm:$0xf] %vm296_vm0, %v341_v1  ;;  %374 = vst.msk [vmem:[#allocation2 + $0x70] sm:$0xf] %vm296_vm0, %v342_v2  ;;  %v599_v14 = vshll.u32 %v4819_v6, 16  ;;  %s4524_s23 = smov 8  }
  0x98   : > { %375 = vst.msk [vmem:[#allocation2 + $0x78] sm:$0xf] %vm296_vm0, %v343_v3  ;;  %371 = vst.msk [vmem:[#allocation2 + $0x60] sm:$0xf] %vm296_vm0, %v339_v7  ;;  %913 = vrot.lane.b32.xlu1 %v864_v12, %s4524_s23  ;;  %v598_v18 = vrot.slane %v596_v13, 4  ;;  %vm863_vm1 = vcmask 1042432  }
  0x99   : > { %372 = vst.msk [vmem:[#allocation2 + $0x64] sm:$0xf] %vm296_vm0, %v340_v8  ;;  %376 = vst.msk [vmem:[#allocation2 + $0x7c] sm:$0xf] %vm296_vm0, %v344_v9  ;;  %v4834_v15 = vld [vmem:[#allocation2 + $0x74] sm:$0xf] }
  0x9a   : > { %377 = vst.msk [vmem:[#allocation2 + $0x84] sm:$0xf] %vm296_vm0, %v345_v10  ;;  %378 = vst.msk [vmem:[#allocation2 + $0x88] sm:$0xf] %vm296_vm0, %v346_v11  ;;  %v601_v19 = vrot.slane %v599_v14, 5  ;;  %s4525_s25 = smov 4  }
  0x9b   : > { %379 = vst.msk [vmem:[#allocation2 + $0x90] sm:$0xf] %vm296_vm0, %v347_v16  ;;  %v328_v20 = vld [vmem:[%s4775_s26 + $0x4] sm:$0xf]  ;;  %v329_v21 = vld [vmem:[%s4775_s26 + $0x8] sm:$0xf] }
  0x9c   : > { %359 = vst.msk [vmem:[#allocation2 + $0x18] sm:$0xf] %vm296_vm0, %v327_v17  ;;  %v415_v22 = vld [vmem:[#allocation2 + $0x68] sm:$0xf]  ;;  %360 = vst.msk [vmem:[#allocation2 + $0x1c] sm:$0xf] %vm296_vm0, %v328_v20  ;;  %v4848_v24 = vor.u32 %v601_v19, %v598_v18 }
  0x9d   : > { %361 = vst.msk [vmem:[#allocation2 + $0x24] sm:$0xf] %vm296_vm0, %v329_v21  ;;  %v348_v23 = vld [vmem:[%s4775_s26 + $0x54] sm:$0xf]  ;;  %v4862_v30 = vld [vmem:[#allocation2 + $0x80] sm:$0xf] }
  0x9e   : > { %v416_v25 = vld [vmem:[#allocation2 + $0x6c] sm:$0xf]  ;;  %v4850_v26 = vld [vmem:[#allocation2 + $0x70] sm:$0xf]  ;;  %380 = vst.msk [vmem:[#allocation2 + $0x94] sm:$0xf] %vm296_vm0, %v348_v23  ;;  %810 = vrot.lane.b32.xlu1 %v4848_v24, %s4525_s25 }
  0x9f   : > { %v4852_v27 = vld [vmem:[#allocation2 + $0x78] sm:$0xf]  ;;  %v4856_v28 = vcombine.low %v416_v25, %v4850_v26  ;;  %6571 = vst [vmem:[#allocation20_spill] sm:$0xff] %v4862_v30  ;;  %vm594_vm2 = vsmask.f32 3328  ;;  %v4866_v33 = vcombine.low %v415_v22, %v416_v25  ;;  %vm1370_vm3 = vcmask 1045504  }
  0xa0   : > { %v4860_v29 = vcombine.low %v4834_v15, %v4852_v27  ;;  %v349_v31 = vld [vmem:[%s4775_s26 + $0x58] sm:$0xf]  ;;  %v350_v32 = vld [vmem:[%s4775_s26 + $0x5c] sm:$0xf]  ;;  %v4870_v34 = vld [vmem:[#allocation2 + $0x64] sm:$0xf] }
  0xa1   : > { %6569 = vst [vmem:[#allocation18_spill] sm:$0xff] %v4856_v28  ;;  %v4872_v35 = vld [vmem:[#allocation2 + $0x8c] sm:$0xf]  ;;  %381 = vst.msk [vmem:[#allocation2 + $0x9c] sm:$0xf] %vm296_vm0, %v349_v31  ;;  %v887_v37 = vrot.slane %v4856_v28, 5  ;;  %v4880_v39 = vcombine.low %v4870_v34, %v415_v22 }
  0xa2   : > { %6570 = vst [vmem:[#allocation19_spill] sm:$0xff] %v4860_v29  ;;  %6572 = vst [vmem:[#allocation21_spill] sm:$0xff] %v4872_v35  ;;  %v330_v36 = vld [vmem:[%s4775_s26 + $0xc] sm:$0xf]  ;;  %v889_v38 = vrot.slane %v4860_v29, 5  ;;  %v703_v44 = vshrl.u32 %v4856_v28, 16 }
  0xa3   : > { %382 = vst.msk [vmem:[#allocation2 + $0xa0] sm:$0xf] %vm296_vm0, %v350_v32  ;;  %6573 = vst [vmem:[#allocation22_spill] sm:$0xff] %v4880_v39  ;;  %v4882_v40 = vld [vmem:[#allocation2 + $0x7c] sm:$0xf]  ;;  %v706_v45 = vshll.u32 %v4856_v28, 16 }
  0xa4   : > { %v4884_v41 = vld [vmem:[#allocation2 + $0x84] sm:$0xf]  ;;  %362 = vst.msk [vmem:[#allocation2 + $0x28] sm:$0xf] %vm296_vm0, %v330_v36  ;;  %v4887_v42 = vld [vmem:[#allocation2 + $0x88] sm:$0xf]  ;;  %v4891_v43 = vcombine.low %v4882_v40, %v4862_v30  ;;  %v890_v47 = vsel %vm863_vm1, %v887_v37, %v889_v38 }
  0xa5   : > { %6574 = vst [vmem:[#allocation23_spill] sm:$0xff] %v4884_v41  ;;  %6575 = vst [vmem:[#allocation24_spill] sm:$0xff] %v4887_v42  ;;  %v712_v46 = vshrl.u32 %v4860_v29, 16  ;;  %v6510_v48 = vrot.slane %v4880_v39, 5  ;;  %v4900_v49 = vcombine.low %v4884_v41, %v4887_v42  ;;  %v694_v50 = vshrl.u32 %v4880_v39, 16  ;;  %939 = vrot.lane.b32.xlu0 %v890_v47, %s4524_s23  ;;  %s6248_s27 = scalar_lea.vmem [#allocation12], %s3723_s21 }
  0xa6   : > { %6576 = vst [vmem:[#allocation25_spill] sm:$0xff] %v4891_v43  ;;  %v425_v51 = vld [vmem:[#allocation2 + $0x90] sm:$0xf]  ;;  %v891_v52 = vrot.slane %v4891_v43, 5  ;;  %v697_v53 = vshll.u32 %v4880_v39, 16  ;;  %v705_v54 = vrot.slane %v703_v44, 4 }
  0xa7   : > { %6577 = vst [vmem:[#allocation26_spill] sm:$0xff] %v4900_v49  ;;  %v708_v55 = vrot.slane %v706_v45, 5  ;;  %v888_v56 = vsel %vm863_vm1, %v6510_v48, %v887_v37  ;;  %v893_v57 = vrot.slane %v4900_v49, 5  ;;  %v696_v58 = vrot.slane %v694_v50, 4  ;;  %v331_v0 = vld [vmem:[%s4775_s26 + $0x10] sm:$0xf] }
  0xa8   : > { %v4911_v59 = vcombine.low %v4872_v35, %v425_v51  ;;  %937 = vrot.lane.b32.xlu1 %v888_v56, %s4524_s23  ;;  %v892_v60 = vsel %vm863_vm1, %v889_v38, %v891_v52  ;;  %v699_v61 = vrot.slane %v697_v53, 5  ;;  %v714_v63 = vrot.slane %v712_v46, 4  ;;  %v4920_v5 = vld [vmem:[#allocation2 + $0x14] sm:$0xf]  ;;  %v395_v7 = vld [vmem:[#allocation2 + $0x18] sm:$0xf] }
  0xa9   : > { %v709_v62 = vor.u32 %v708_v55, %v705_v54  ;;  %v894_v1 = vsel %vm863_vm1, %v891_v52, %v893_v57  ;;  %v715_v3 = vshll.u32 %v4860_v29, 16  ;;  %v721_v4 = vshrl.u32 %v4891_v43, 16  ;;  %6579 = vst [vmem:[#allocation28_spill] sm:$0xff] %v4920_v5  ;;  %363 = vst.msk [vmem:[#allocation2 + $0x30] sm:$0xf] %vm296_vm0, %v331_v0  ;;  %s3935_s5 = sshll.u32 %s4507_s18, 11 }
  0xaa   : > { %6578 = vst [vmem:[#allocation27_spill] sm:$0xff] %v4911_v59  ;;  %v6512_v2 = vrot.slane %v4911_v59, 5  ;;  %943 = vrot.lane.b32.xlu0 %v894_v1, %s4524_s23  ;;  %v4924_v8 = vor.u32 %v699_v61, %v696_v58  ;;  %v724_v9 = vshll.u32 %v4891_v43, 16  ;;  %v730_v10 = vshrl.u32 %v4900_v49, 16  ;;  %v396_v13 = vld [vmem:[#allocation2 + $0x1c] sm:$0xf]  ;;  %s6446_s10 = scalar_lea.hbm %s6504_s4, %s3935_s5 }
  0xab   : > { %v733_v11 = vshll.u32 %v4900_v49, 16  ;;  %v4929_v14 = vld [vmem:[#allocation2 + $0x20] sm:$0xf]  ;;  %v4931_v16 = vld [vmem:[#allocation2 + $0x98] sm:$0xf]  ;;  %v717_v18 = vrot.slane %v715_v3, 5  ;;  %v4944_v44 = vcombine.low %v395_v7, %v396_v13  ;;  %v4950_v50 = vcombine.low %v4920_v5, %v395_v7 }
  0xac   : > { %v896_v17 = vsel %vm863_vm1, %v893_v57, %v6512_v2  ;;  %v723_v19 = vrot.slane %v721_v4, 4  ;;  %v739_v20 = vshrl.u32 %v4911_v59, 16  ;;  %v4937_v21 = vld [vmem:[#allocation2 + $0x94] sm:$0xf]  ;;  %941 = vrot.lane.b32.xlu1 %v892_v60, %s4524_s23  ;;  %v710_v22 = vsel %vm594_vm2, %v4924_v8, %v709_v62  ;;  %v351_v32 = vld [vmem:[%s4775_s26 + $0x60] sm:$0xf] }
  0xad   : > { %6580 = vst [vmem:[#allocation29_spill] sm:$0xff] %v4937_v21  ;;  %v726_v23 = vrot.slane %v724_v9, 5  ;;  %v732_v25 = vrot.slane %v730_v10, 4  ;;  %v735_v31 = vrot.slane %v733_v11, 5  ;;  %v718_v36 = vor.u32 %v717_v18, %v714_v63  ;;  %v352_v45 = vld [vmem:[%s4775_s26 + $0x64] sm:$0xf] }
  0xae   : > { %v741_v37 = vrot.slane %v739_v20, 4  ;;  %v742_v38 = vshll.u32 %v4911_v59, 16  ;;  %383 = vst.msk [vmem:[#allocation2 + $0xa8] sm:$0xf] %vm296_vm0, %v351_v32  ;;  %834 = vrot.lane.b32.xlu0 %v710_v22, %s4525_s25  ;;  %6581 = vst [vmem:[#allocation30_spill] sm:$0xff] %v4950_v50  ;;  %v4958_v56 = vcombine.low %v396_v13, %v4929_v14  ;;  %v4962_v57 = vcombine.low %v4937_v21, %v4931_v16  ;;  %s3594_s7 = sshll.u32 %s6248_s27, 4  ;;  %s6448_s7 = int_to_ptr.vmem [resolvable:$true] %s3594_s7 }
  0xaf   : > { %v727_v46 = vor.u32 %v726_v23, %v723_v19  ;;  %v736_v47 = vor.u32 %v735_v31, %v732_v25  ;;  %v4952_v51 = vld [vmem:[#allocation2 + $0x9c] sm:$0xf]  ;;  %v429_v52 = vld [vmem:[#allocation2 + $0xa0] sm:$0xf]  ;;  %384 = vst.msk [vmem:[#allocation2 + $0xac] sm:$0xf] %vm296_vm0, %v352_v45  ;;  %v719_v54 = vsel %vm594_vm2, %v709_v62, %v718_v36 }
  0xb0   : > { %v332_v53 = vld [vmem:[%s4775_s26 + $0x14] sm:$0xf]  ;;  %v744_v55 = vrot.slane %v742_v38, 5  ;;  %6582 = vst [vmem:[#allocation31_spill] sm:$0xff] %v4958_v56  ;;  %6583 = vst [vmem:[#allocation32_spill] sm:$0xff] %v4962_v57  ;;  %945 = vrot.lane.b32.xlu1 %v896_v17, %s4524_s23  ;;  %v604_v0 = vshrl.u32 %v4950_v50, 16  ;;  %v4983_v10 = vcombine.low %v4952_v51, %v429_v52 }
  0xb1   : > { %364 = vst.msk [vmem:[#allocation2 + $0x34] sm:$0xf] %vm296_vm0, %v332_v53  ;;  %v333_v58 = vld [vmem:[%s4775_s26 + $0x18] sm:$0xf]  ;;  %v334_v60 = vld [vmem:[%s4775_s26 + $0x1c] sm:$0xf]  ;;  %v728_v61 = vsel %vm594_vm2, %v718_v36, %v727_v46  ;;  %v737_v62 = vsel %vm594_vm2, %v727_v46, %v736_v47 }
  0xb2   : > { %v4970_v63 = vld [vmem:[#allocation2 + $0x24] sm:$0xf]  ;;  %v4973_v1 = vld [vmem:[#allocation2 + $0x28] sm:$0xf]  ;;  %365 = vst.msk [vmem:[#allocation2 + $0x3c] sm:$0xf] %vm296_vm0, %v333_v58  ;;  %v4978_v4 = vor.u32 %v744_v55, %v741_v37  ;;  %836 = vrot.lane.b32.xlu0 %v719_v54, %s4525_s25 }
  0xb3   : > { %366 = vst.msk [vmem:[#allocation2 + $0x40] sm:$0xf] %vm296_vm0, %v334_v60  ;;  %v353_v3 = vld [vmem:[%s4775_s26 + $0x68] sm:$0xf]  ;;  %v865_v7 = vrot.slane %v4950_v50, 5  ;;  %v607_v9 = vshll.u32 %v4950_v50, 16 }
  0xb4   : > { %6584 = vst [vmem:[#allocation33_spill] sm:$0xff] %v4983_v10  ;;  %v4985_v11 = vld [vmem:[#allocation2 + $0x2c] sm:$0xf]  ;;  %v354_v13 = vld [vmem:[%s4775_s26 + $0x6c] sm:$0xf]  ;;  %v606_v18 = vrot.slane %v604_v0, 4  ;;  %v746_v25 = vsel %vm594_vm2, %v736_v47, %v4978_v4  ;;  %838 = vrot.lane.b32.xlu1 %v728_v61, %s4525_s25  ;;  %v5009_v47 = vcombine.low %v4970_v63, %v4973_v1 }
  0xb5   : > { %v355_v17 = vld [vmem:[%s4775_s26 + $0x70] sm:$0xf]  ;;  %385 = vst.msk [vmem:[#allocation2 + $0xb4] sm:$0xf] %vm296_vm0, %v353_v3  ;;  %v748_v19 = vshrl.u32 %v4962_v57, 16  ;;  %v751_v20 = vshll.u32 %v4962_v57, 16 }
  0xb6   : > { %v613_v22 = vshrl.u32 %v4958_v56, 16  ;;  %v4994_v23 = vld [vmem:[#allocation2 + $0x30] sm:$0xf]  ;;  %386 = vst.msk [vmem:[#allocation2 + $0xb8] sm:$0xf] %vm296_vm0, %v354_v13  ;;  %v6511_v31 = vrot.slane %v4958_v56, 5  ;;  %840 = vrot.lane.b32.xlu0 %v737_v62, %s4525_s25 }
  0xb7   : > { %387 = vst.msk [vmem:[#allocation2 + $0xc0] sm:$0xf] %vm296_vm0, %v355_v17  ;;  %v609_v32 = vrot.slane %v607_v9, 5  ;;  %v757_v36 = vshrl.u32 %v4983_v10, 16  ;;  %v335_v37 = vld [vmem:[%s4775_s26 + $0x20] sm:$0xf]  ;;  %v5015_v61 = vcombine.low %v4985_v11, %v4994_v23 }
  0xb8   : > { %v750_v38 = vrot.slane %v748_v19, 4  ;;  %v753_v45 = vrot.slane %v751_v20, 5  ;;  %v760_v46 = vshll.u32 %v4983_v10, 16  ;;  %v615_v52 = vrot.slane %v613_v22, 4  ;;  %367 = vst.msk [vmem:[#allocation2 + $0x48] sm:$0xf] %vm296_vm0, %v335_v37  ;;  %842 = vrot.lane.b32.xlu1 %v746_v25, %s4525_s25 }
  0xb9   : > { %v610_v53 = vor.u32 %v609_v32, %v606_v18  ;;  %v759_v54 = vrot.slane %v757_v36, 4  ;;  %v616_v55 = vshll.u32 %v4958_v56, 16  ;;  %6585 = vst [vmem:[#allocation34_spill] sm:$0xff] %v5009_v47  ;;  %v336_v58 = vld [vmem:[%s4775_s26 + $0x24] sm:$0xf]  ;;  %6586 = vst [vmem:[#allocation35_spill] sm:$0xff] %v5015_v61  ;;  %v868_v62 = vsel %vm863_vm1, %v865_v7, %v6511_v31 }
  0xba   : > { %v762_v60 = vrot.slane %v760_v46, 5  ;;  %368 = vst.msk [vmem:[#allocation2 + $0x4c] sm:$0xf] %vm296_vm0, %v336_v58  ;;  %v622_v9 = vshrl.u32 %v5009_v47, 16  ;;  %v625_v13 = vshll.u32 %v5009_v47, 16  ;;  %v754_v17 = vor.u32 %v753_v45, %v750_v38  ;;  %s3580_s29 = scalar_lea.sflag [#allocation6], %s4769_s14 }
  0xbb   : > { %v611_v0 = vsel %vm594_vm2, %v4848_v24, %v610_v53  ;;  %v618_v3 = vrot.slane %v616_v55, 5  ;;  %v631_v18 = vshrl.u32 %v5015_v61, 16  ;;  %v634_v19 = vshll.u32 %v5015_v61, 16  ;;  %v5032_v36 = vld [vmem:[#allocation2 + $0xa4] sm:$0xf]  ;;  %s4425_s18 = scalar_lea.vmem %s6448_s7, 2048 }
  0xbc   : > { %v5030_v24 = vor.u32 %v762_v60, %v759_v54  ;;  %v624_v22 = vrot.slane %v622_v9, 4  ;;  %v627_v32 = vrot.slane %v625_v13, 5  ;;  %6587 = vst [vmem:[#allocation36_spill] sm:$0xff] %v5032_v36  ;;  %v5034_v25 = vld [vmem:[#allocation2 + $0xa8] sm:$0xf]  ;;  %812 = vrot.lane.b32.xlu0 %v611_v0, %s4525_s25  ;;  %917 = vrot.lane.b32.xlu1 %v868_v62, %s4524_s23  ;;  %vm963_vm4 = vcmask 31744   ;;  %p4426_p13 = scmp.ne.s32.totalorder %s6448_s7, %s4425_s18 }
  0xbd   : > { %v619_v20 = vor.u32 %v618_v3, %v615_v52  ;;  %v5037_v37 = vld [vmem:[#allocation2 + $0xac] sm:$0xf]  ;;  %v5039_v38 = vld [vmem:[#allocation2 + $0xb0] sm:$0xf]  ;;  %v356_v46 = vld [vmem:[%s4775_s26 + $0x74] sm:$0xf]  ;;  %v5046_v55 = vcombine.low %v5032_v36, %v5034_v25 }
  0xbe   : > { %v633_v52 = vrot.slane %v631_v18, 4  ;;  %v636_v54 = vrot.slane %v634_v19, 5  ;;  %388 = vst.msk [vmem:[#allocation2 + $0xc4] sm:$0xf] %vm296_vm0, %v356_v46  ;;  %v337_v58 = vld [vmem:[%s4775_s26 + $0x28] sm:$0xf]  ;;  %v764_v60 = vsel %vm594_vm2, %v754_v17, %v5030_v24  ;;  %v5052_v0 = vor.u32 %v627_v32, %v624_v22  ;;  %p4427_p6 = pnand %p4426_p13, %p4708_p10 }
  0xbf   : > { %v620_v45 = vsel %vm594_vm2, %v610_v53, %v619_v20  ;;  %6588 = vst [vmem:[#allocation37_spill] sm:$0xff] %v5046_v55  ;;  %v5056_v53 = vcombine.low %v5037_v37, %v5039_v38  ;;  %v338_v3 = vld [vmem:[%s4775_s26 + $0x2c] sm:$0xf]  ;;  %369 = vst.msk [vmem:[#allocation2 + $0x54] sm:$0xf] %vm296_vm0, %v337_v58  ;;  %v866_v18 = vsel %vm863_vm1, %v864_v12, %v865_v7  ;;  %v766_v32 = vshrl.u32 %v5046_v55, 16 }
  0xc0   : > { %6589 = vst [vmem:[#allocation38_spill] sm:$0xff] %v5052_v0  ;;  %814 = vrot.lane.b32.xlu0 %v620_v45, %s4525_s25  ;;  %v5061_v9 = vld [vmem:[#allocation2 + $0x34] sm:$0xf]  ;;  %v5063_v13 = vld [vmem:[#allocation2 + $0x38] sm:$0xf]  ;;  %846 = vrot.lane.b32.xlu1 %v764_v60, %s4525_s25  ;;  %v637_v22 = vor.u32 %v636_v54, %v633_v52  ;;  %v769_v45 = vshll.u32 %v5046_v55, 16  ;;  %v629_v58 = vsel %vm594_vm2, %v619_v20, %v5052_v0  ;;  %p4428_p3 = pneg %p4427_p6 }
  0xc1   : > { %6590 = vst [vmem:[#allocation39_spill] sm:$0xff] %v5056_v53  ;;  %370 = vst.msk [vmem:[#allocation2 + $0x58] sm:$0xf] %vm296_vm0, %v338_v3  ;;  %v357_v62 = vld [vmem:[%s4775_s26 + $0x78] sm:$0xf]  ;;  %v775_v6 = vshrl.u32 %v5056_v53, 16  ;;  %v5086_v7 = vcombine.low %v5061_v9, %v5063_v13  ;;  %v755_v54 = vsel %vm594_vm2, %v4978_v4, %v754_v17 }
  0xc2   : > { %v358_v19 = vld [vmem:[%s4775_s26 + $0x7c] sm:$0xf]  ;;  %389 = vst.msk [vmem:[#allocation2 + $0xcc] sm:$0xf] %vm296_vm0, %v357_v62  ;;  %v5077_v46 = vld [vmem:[#allocation2 + $0x3c] sm:$0xf]  ;;  %v638_v62 = vsel %vm594_vm2, %v5052_v0, %v637_v22  ;;  %v5198_v0 = vcombine.low %v4973_v1, %v4985_v11 }
  0xc3   : > { %390 = vst.msk [vmem:[#allocation2 + $0xd0] sm:$0xf] %vm296_vm0, %v358_v19  ;;  %v778_v12 = vshll.u32 %v5056_v53, 16  ;;  %6591 = vst [vmem:[#allocation40_spill] sm:$0xff] %v5086_v7  ;;  %v5088_v52 = vld [vmem:[#allocation2 + $0x40] sm:$0xf] }
  0xc4   : > { %915 = vrot.lane.b32.xlu0 %v866_v18, %s4524_s23  ;;  %v5094_v60 = vrot.slane %v5009_v47, 5  ;;  %v897_v3 = vrot.slane %v4962_v57, 5  ;;  %816 = vrot.lane.b32.xlu1 %v629_v58, %s4525_s25  ;;  %v768_v19 = vrot.slane %v766_v32, 4  ;;  %v771_v48 = vrot.slane %v769_v45, 5  ;;  %v5121_v28 = vld [vmem:[#allocation2 + $0xb4] sm:$0xf] }
  0xc5   : > { %v5103_v18 = vcombine.low %v5077_v46, %v5088_v52  ;;  %v777_v31 = vrot.slane %v775_v6, 4  ;;  %v780_v4 = vrot.slane %v778_v12, 5  ;;  %v640_v17 = vshrl.u32 %v5086_v7, 16  ;;  %v5156_v50 = vld [vmem:[#allocation2 + $0x50] sm:$0xf]  ;;  %s4526_s12 = smov [#allocation12]  }
  0xc6   : > { %v643_v2 = vshll.u32 %v5086_v7, 16  ;;  %v6593_v20 = vrot.slane %v4911_v59, 5  ;;  %v899_v57 = vrot.slane %v4983_v10, 5  ;;  %v6594_v32 = vrot.slane %v5015_v61, 5  ;;  %v437_v10 = vld [vmem:[#allocation2 + $0xc0] sm:$0xf] }
  0xc7   : > { %6592 = vst [vmem:[#allocation41_spill] sm:$0xff] %v5103_v18  ;;  %v649_v6 = vshrl.u32 %v5103_v18, 16  ;;  %v652_v12 = vshll.u32 %v5103_v18, 16  ;;  %v772_v43 = vor.u32 %v771_v48, %v768_v19  ;;  %v5119_v49 = vor.u32 %v780_v4, %v777_v31  ;;  %v5214_v11 = vld [vmem:[#allocation2 + $0x60] sm:$0xf]  ;;  %s4429_s9 = sshll.u32 %s4526_s12, 4  ;;  %s4430_s9 = int_to_ptr.vmem [resolvable:$false] %s4429_s9 }
  0xc8   : > { %844 = vrot.lane.b32.xlu0 %v755_v54, %s4525_s25  ;;  %v898_v58 = vsel %vm863_vm1, %v6593_v20, %v897_v3  ;;  %818 = vrot.lane.b32.xlu1 %v638_v62, %s4525_s25  ;;  %v872_v45 = vsel %vm863_vm1, %v5094_v60, %v6594_v32  ;;  %v642_v54 = vrot.slane %v640_v17, 4  ;;  %v645_v59 = vrot.slane %v643_v2, 5  ;;  %v5123_v20 = vld [vmem:[#allocation2 + $0xb8] sm:$0xf]  ;;  %v5126_v62 = vld [vmem:[#allocation2 + $0xbc] sm:$0xf]  ;;  %p4432_p5 = scmp.lt.s32.totalorder %s6448_s7, %s4430_s9 }
  0xc9   : > { %v900_v32 = vsel %vm863_vm1, %v897_v3, %v899_v57  ;;  %v651_v29 = vrot.slane %v649_v6, 4  ;;  %v654_v47 = vrot.slane %v652_v12, 5  ;;  %v5132_v48 = vcombine.low %v5121_v28, %v5123_v20  ;;  %v438_v2 = vld [vmem:[#allocation2 + $0xc4] sm:$0xf]  ;;  %s4431_s13 = scalar_lea.vmem %s4430_s9, 4096 }
  0xca   : > { %v782_v31 = vsel %vm594_vm2, %v772_v43, %v5119_v49  ;;  %v646_v19 = vor.u32 %v645_v59, %v642_v54  ;;  %v5137_v4 = vcombine.low %v5126_v62, %v437_v10  ;;  %v5139_v17 = vld [vmem:[#allocation2 + $0x44] sm:$0xf]  ;;  %v5143_v3 = vcombine.low %v437_v10, %v438_v2  ;;  %p4433_p7 = scmp.lt.s32.totalorder %s4431_s13, %s4425_s18 }
  0xcb   : > { %6595 = vst [vmem:[#allocation42_spill] sm:$0xff] %v5132_v48  ;;  %v655_v12 = vor.u32 %v654_v47, %v651_v29  ;;  %v784_v59 = vshrl.u32 %v5132_v48, 16  ;;  %v773_v29 = vsel %vm594_vm2, %v5030_v24, %v772_v43  ;;  %v873_v47 = vrot.slane %v5086_v7, 5 }
  0xcc   : > { %947 = vrot.lane.b32.xlu0 %v898_v58, %s4524_s23  ;;  %921 = vrot.lane.b32.xlu1 %v872_v45, %s4524_s23  ;;  %6596 = vst [vmem:[#allocation43_spill] sm:$0xff] %v5137_v4  ;;  %v5141_v58 = vld [vmem:[#allocation2 + $0x48] sm:$0xf]  ;;  %v6597_v45 = vrot.slane %v4958_v56, 5  ;;  %v647_v10 = vsel %vm594_vm2, %v637_v22, %v646_v19  ;;  %v793_v36 = vshrl.u32 %v5137_v4, 16  ;;  %v796_v56 = vshll.u32 %v5137_v4, 16  ;;  %p4434_p9 = por %p4433_p7, %p4432_p5 }
  0xcd   : > { %v5154_v54 = vcombine.low %v5139_v17, %v5141_v58  ;;  %v901_v21 = vrot.slane %v5046_v55, 5  ;;  %v656_v22 = vsel %vm594_vm2, %v646_v19, %v655_v12  ;;  %v786_v5 = vrot.slane %v784_v59, 4  ;;  %v439_v55 = vld [vmem:[#allocation2 + $0xc8] sm:$0xf]  ;;  %v5181_v19 = vld [vmem:[#allocation2 + $0xcc] sm:$0xf] }
  0xce   : > { %v870_v6 = vsel %vm863_vm1, %v6597_v45, %v5094_v60  ;;  %v5162_v45 = vld [vmem:[#allocation2 + $0x4c] sm:$0xf]  ;;  %v795_v30 = vrot.slane %v793_v36, 4  ;;  %v798_v43 = vrot.slane %v796_v56, 5  ;;  %v6600_v59 = vrot.slane %v5103_v18, 5  ;;  %p4435_p0 = pnand %p4434_p9, %p4428_p3 }
  0xcf   : > { %6598 = vst [vmem:[#allocation44_spill] sm:$0xff] %v5154_v54  ;;  %v658_v42 = vshrl.u32 %v5154_v54, 16  ;;  %v5175_v35 = vcombine.low %v5162_v45, %v5156_v50  ;;  %v661_v24 = vshll.u32 %v5154_v54, 16  ;;  %v5189_v36 = vcombine.low %v439_v55, %v5181_v19 }
  0xd0   : > { %949 = vrot.lane.b32.xlu0 %v900_v32, %s4524_s23  ;;  %850 = vrot.lane.b32.xlu1 %v782_v31, %s4525_s25  ;;  %v787_v32 = vshll.u32 %v5132_v48, 16  ;;  %v902_v31 = vsel %vm863_vm1, %v899_v57, %v901_v21  ;;  %v876_v7 = vsel %vm863_vm1, %v873_v47, %v6600_v59  ;;  %v5191_v41 = vor.u32 %v798_v43, %v795_v30  ;;  %v5206_v43 = vld [vmem:[#allocation2 + $0x58] sm:$0xf] }
  0xd1   : > { %6599 = vst [vmem:[#allocation45_spill] sm:$0xff] %v5175_v35  ;;  %v667_v56 = vshrl.u32 %v5175_v35, 16  ;;  %6601 = vst [vmem:[#allocation46_spill] sm:$0xff] %v5189_v36  ;;  %v663_v57 = vrot.slane %v661_v24, 5  ;;  %v5212_v1 = vcombine.low %v438_v2, %v439_v55  ;;  %v6539_v55 = vrot.slane %v5175_v35, 5 }
  0xd2   : > { %v905_v2 = vrot.slane %v5132_v48, 5  ;;  %vm1039_vm5 = vcmask 64512   ;;  %vm1092_vm6 = vsmask.f32 4352  ;;  %vm1297_vm7 = vcmask 97280  }
  0xd3   : > { %6603 = vst [vmem:[#allocation47_spill] sm:$0xff] %v5212_v1  ;;  %vm1599_vm8 = vcmask 523264   ;;  %vm3546_vm9 = vcmask 519168  }
  0xd4   : > { %919 = vrot.lane.b32.xlu0 %v870_v6, %s4524_s23  ;;  %820 = vrot.lane.b32.xlu1 %v647_v10, %s4525_s25  ;;  %v789_v6 = vrot.slane %v787_v32, 5  ;;  %v903_v10 = vrot.slane %v5056_v53, 5  ;;  %v660_v32 = vrot.slane %v658_v42, 4  ;;  %v670_v53 = vshll.u32 %v5175_v35, 16 }
  0xd6   : > { %v664_v59 = vor.u32 %v663_v57, %v660_v32  ;;  %v672_v30 = vrot.slane %v670_v53, 5  ;;  %v5221_v32 = vld [vmem:[#allocation2 + $0x5c] sm:$0xf]  ;;  %v805_v57 = vshll.u32 %v5212_v1, 16 }
  0xd8   : > { %848 = vrot.lane.b32.xlu0 %v773_v29, %s4525_s25  ;;  %822 = vrot.lane.b32.xlu1 %v656_v22, %s4525_s25  ;;  %v790_v29 = vor.u32 %v789_v6, %v786_v5  ;;  %v904_v22 = vsel %vm863_vm1, %v901_v21, %v903_v10  ;;  %v669_v5 = vrot.slane %v667_v56, 4  ;;  %v5204_v6 = vld [vmem:[#allocation2 + $0x54] sm:$0xf]  ;;  %v6602_v21 = vrot.slane %v5015_v61, 5 }
  0xd9   : > { %v5219_v53 = vcombine.low %v5204_v6, %v5206_v43  ;;  %v877_v56 = vrot.slane %v5154_v54, 5  ;;  %v807_v48 = vrot.slane %v805_v57, 5 }
  0xda   : > { %v800_v42 = vsel %vm594_vm2, %v790_v29, %v5191_v41  ;;  %v673_v24 = vor.u32 %v672_v30, %v669_v5  ;;  %v4294_v5 = vld [vmem:[#allocation7] sm:$0x3f]  }
  0xdb   : > { %6604 = vst [vmem:[#allocation48_spill] sm:$0xff] %v5219_v53  ;;  %v880_v30 = vsel %vm863_vm1, %v877_v56, %v6539_v55  ;;  %4164 = vmatprep.subr.msk.bf16.mxu1 %vm1370_vm3, %v4294_v5  ;;  %4163 = vmatprep.subr.msk.bf16.mxu0 %vm1370_vm3, %v4294_v5 }
  0xdc   : > { %951 = vrot.lane.b32.xlu0 %v902_v31, %s4524_s23  ;;  %925 = vrot.lane.b32.xlu1 %v876_v7, %s4524_s23  ;;  %v874_v31 = vsel %vm863_vm1, %v6602_v21, %v873_v47  ;;  %v665_v7 = vsel %vm594_vm2, %v655_v12, %v664_v59  ;;  %v791_v47 = vsel %vm594_vm2, %v5119_v49, %v790_v29  ;;  %v802_v12 = vshrl.u32 %v5212_v1, 16 }
  0xdd   : > { %v676_v49 = vshrl.u32 %v5219_v53, 16  ;;  %v679_v29 = vshll.u32 %v5219_v53, 16  ;;  %v906_v21 = vsel %vm863_vm1, %v903_v10, %v905_v2  ;;  %v5252_v10 = vld [vmem:[#allocation7 + $0x8] sm:$0x3f]  }
  0xdf   : > { %v678_v54 = vrot.slane %v676_v49, 4  ;;  %v681_v61 = vrot.slane %v679_v29, 5 }
  0xe0   : > { %953 = vrot.lane.b32.xlu0 %v904_v22, %s4524_s23  ;;  %854 = vrot.lane.b32.xlu1 %v800_v42, %s4525_s25  ;;  %v5234_v22 = vcombine.low %v5221_v32, %v5214_v11  ;;  %v674_v42 = vsel %vm594_vm2, %v664_v59, %v673_v24 }
  0xe1   : > { %v682_v49 = vor.u32 %v681_v61, %v678_v54 }
  0xe2   : > { %6605 = vst [vmem:[#allocation49_spill] sm:$0xff] %v5234_v22  ;;  %v685_v59 = vshrl.u32 %v5234_v22, 16  ;;  %v688_v36 = vshll.u32 %v5234_v22, 16 }
  0xe4   : > { %923 = vrot.lane.b32.xlu0 %v874_v31, %s4524_s23  ;;  %824 = vrot.lane.b32.xlu1 %v665_v7, %s4525_s25  ;;  %v907_v31 = vrot.slane %v5137_v4, 5  ;;  %v804_v7 = vrot.slane %v802_v12, 4  ;;  %v687_v29 = vrot.slane %v685_v59, 4 }
  0xe6   : > { %v908_v12 = vsel %vm863_vm1, %v905_v2, %v907_v31  ;;  %v5256_v57 = vor.u32 %v807_v48, %v804_v7  ;;  %v5270_v48 = vcombine.low %v4931_v16, %v4952_v51  ;;  %v5284_v51 = vrot.slane %v5212_v1, 5 }
  0xe7   : > { %v883_v7 = vrot.slane %v5234_v22, 5 }
  0xe8   : > { %852 = vrot.lane.b32.xlu0 %v791_v47, %s4525_s25  ;;  %826 = vrot.lane.b32.xlu1 %v674_v42, %s4525_s25  ;;  %v1372_v47 = vsel %vm1370_vm3, %v4294_v5, 0  ;;  %6606 = vst [vmem:[#allocation50_spill] sm:$0xff] %v5256_v57  ;;  %v5262_v42 = vcombine.low %v4929_v14, %v4970_v63  ;;  %v690_v5 = vrot.slane %v688_v36, 5  ;;  %v1659_v14 = vshll.u32 %v4944_v44, 16  ;;  %6608 = vst [vmem:[#allocation51_spill] sm:$0xff] %v5284_v51 }
  0xe9   : > { %4162 = vmatpush3.bf16.msra.mxu1 %v1372_v47  ;;  %4012 = vmatpush3.bf16.msra.mxu0 %v1372_v47  ;;  %v683_v63 = vsel %vm594_vm2, %v673_v24, %v682_v49  ;;  %v809_v16 = vsel %vm594_vm2, %v5191_v41, %v5256_v57  ;;  %v881_v24 = vrot.slane %v5219_v53, 5  ;;  %v910_v41 = vsel %vm863_vm1, %v907_v31, %v5284_v51 }
  0xea   : > { %4165 = vmatprep.subr.msk.bf16.mxu1 %vm1370_vm3, %v5252_v10  ;;  %v691_v61 = vor.u32 %v690_v5, %v687_v29  ;;  %v1663_v54 = vshrl.u32 %v5262_v42, 16  ;;  %v1666_v36 = vshll.u32 %v5262_v42, 16  ;;  %v1661_v47 = vrot.slane %v1659_v14, 5 }
  0xeb   : > { %v5309_v31 = vcombine.low %v5034_v25, %v5037_v37  ;;  %v1671_v14 = vshrl.u32 %v5198_v0, 16 }
  0xec   : > { %955 = vrot.lane.b32.xlu0 %v906_v21, %s4524_s23  ;;  %929 = vrot.lane.b32.xlu1 %v880_v30, %s4524_s23  ;;  %v6607_v21 = vrot.slane %v5103_v18, 5  ;;  %v1656_v30 = vshrl.u32 %v4944_v44, 16  ;;  %v1665_v29 = vrot.slane %v1663_v54, 4  ;;  %v1668_v5 = vrot.slane %v1666_v36, 5 }
  0xed   : > { %v1674_v54 = vshll.u32 %v5198_v0, 16 }
  0xee   : > { %v878_v2 = vsel %vm863_vm1, %v6607_v21, %v877_v56  ;;  %v3777_v56 = vcombine.low %v5181_v19, %v5181_v19  ;;  %v1658_v59 = vrot.slane %v1656_v30, 4  ;;  %v884_v19 = vsel %vm863_vm1, %v881_v24, %v883_v7 }
  0xef   : > { %v1669_v55 = vor.u32 %v1668_v5, %v1665_v29  ;;  %v5301_v30 = vcombine.low %v4994_v23, %v5061_v9  ;;  %v1676_v36 = vrot.slane %v1674_v54, 5  ;;  %v1802_v29 = vshll.u32 %v5309_v31, 16 }
  0xf0   : > { %957 = vrot.lane.b32.xlu0 %v908_v12, %s4524_s23  ;;  %858 = vrot.lane.b32.xlu1 %v5256_v57, %s4525_s25  ;;  %v692_v12 = vsel %vm594_vm2, %v682_v49, %v691_v61  ;;  %v911_v21 = vrot.slane %v3777_v56, 5  ;;  %v5305_v49 = vcombine.low %v5063_v13, %v5077_v46  ;;  %v1673_v46 = vrot.slane %v1671_v14, 4 }
  0xf1   : > { %v1679_v13 = vshrl.u32 %v5301_v30, 16  ;;  %v1682_v25 = vshll.u32 %v5301_v30, 16  ;;  %v5327_v56 = vcombine.low %v5123_v20, %v5126_v62  ;;  %v1902_v5 = vrot.slane %v4944_v44, 5 }
  0xf2   : > { %v912_v23 = vsel %vm863_vm1, %v5284_v51, %v911_v21  ;;  %v1687_v37 = vshrl.u32 %v5305_v49, 16  ;;  %v6610_v21 = vrot.slane %v4880_v39, 5  ;;  %v1903_v62 = vrot.slane %v5262_v42, 5 }
  0xf3   : > { %v1684_v14 = vrot.slane %v1682_v25, 5  ;;  %v5344_v54 = vcombine.low %v5088_v52, %v5139_v17  ;;  %v1941_v25 = vrot.slane %v5327_v56, 5  ;;  %v6618_v51 = vrot.slane %v5305_v49, 5 }
  0xf4   : > { %927 = vrot.lane.b32.xlu0 %v878_v2, %s4524_s23  ;;  %828 = vrot.lane.b32.xlu1 %v683_v63, %s4525_s25  ;;  %v5295_v2 = vld [vmem:[#allocation7 + $0x10] sm:$0x3f]   ;;  %v1662_v63 = vor.u32 %v1661_v47, %v1658_v59  ;;  %v6609_v59 = vrot.slane %v5175_v35, 5  ;;  %v886_v20 = vsel %vm863_vm1, %v883_v7, %v6610_v21 }
  0xf5   : > { %4166 = vmatprep.subr.msk.bf16.mxu0 %vm1370_vm3, %v5295_v2  ;;  %6611 = vst [vmem:[#allocation52_spill] sm:$0xff] %v5344_v54 }
  0xf6   : > { %v1670_v9 = vsel %vm594_vm2, %v1662_v63, %v1669_v55  ;;  %v882_v47 = vsel %vm863_vm1, %v6609_v59, %v881_v24  ;;  %v1689_v24 = vrot.slane %v1687_v37, 4  ;;  %v1804_v59 = vrot.slane %v1802_v29, 5 }
  0xf8   : > { %856 = vrot.lane.b32.xlu0 %v809_v16, %s4525_s25  ;;  %830 = vrot.lane.b32.xlu1 %v692_v12, %s4525_s25  ;;  %v1690_v16 = vshll.u32 %v5305_v49, 16  ;;  %v1799_v12 = vshrl.u32 %v5309_v31, 16 }
  0xfa   : > { %v1801_v7 = vrot.slane %v1799_v12, 4  ;;  %v5368_v12 = vcombine.low %v5141_v58, %v5162_v45 }
  0xfc   : > { %959 = vrot.lane.b32.xlu0 %v910_v41, %s4524_s23  ;;  %933 = vrot.lane.b32.xlu1 %v884_v19, %s4524_s23  ;;  %v701_v41 = vsel %vm594_vm2, %v691_v61, %v4924_v8  ;;  %v1681_v19 = vrot.slane %v1679_v13, 4  ;;  %v5351_v8 = vcombine.low %v5039_v38, %v5121_v28  ;;  %v1815_v61 = vshrl.u32 %v5327_v56, 16 }
  0xfd   : > { %v1818_v13 = vshll.u32 %v5327_v56, 16  ;;  %v1823_v38 = vshrl.u32 %v5143_v3, 16 }
  0xfe   : > { %v1807_v17 = vshrl.u32 %v5351_v8, 16  ;;  %v1810_v37 = vshll.u32 %v5351_v8, 16  ;;  %v1939_v28 = vrot.slane %v5351_v8, 5 }
  0xff   : > { %v1825_v1 = vrot.slane %v1823_v38, 4 }
 0x100   : > { %961 = vrot.lane.b32.xlu0 %v912_v23, %s4524_s23  ;;  %1851 = vrot.lane.b32.xlu1 %v1670_v9, %s4525_s25  ;;  %v5347_v23 = vor.u32 %v1676_v36, %v1673_v46  ;;  %v1692_v9 = vrot.slane %v1690_v16, 5  ;;  %v1817_v46 = vrot.slane %v1815_v61, 4  ;;  %v1820_v36 = vrot.slane %v1818_v13, 5 }
 0x101   : > { %v1826_v16 = vshll.u32 %v5143_v3, 16  ;;  %v1809_v29 = vrot.slane %v1807_v17, 4  ;;  %v1812_v21 = vrot.slane %v1810_v37, 5  ;;  %v5371_v61 = vsel %vm863_vm1, %v1939_v28, %v1941_v25 }
 0x102   : > { %v1821_v52 = vor.u32 %v1820_v36, %v1817_v46  ;;  %v6612_v13 = vrot.slane %v5309_v31, 5  ;;  %v1905_v17 = vrot.slane %v5198_v0, 5  ;;  %v1685_v37 = vor.u32 %v1684_v14, %v1681_v19 }
 0x103   : > { %v1813_v58 = vor.u32 %v1812_v21, %v1809_v29  ;;  %v1828_v45 = vrot.slane %v1826_v16, 5  ;;  %v5383_v46 = vor.u32 %v1692_v9, %v1689_v24  ;;  %v6542_v36 = vrot.slane %v5143_v3, 5 }
 0x104   : > { %931 = vrot.lane.b32.xlu0 %v882_v47, %s4524_s23  ;;  %1951 = vrot.lane.b32.xlu1 %v1902_v5, %s4524_s23  ;;  %v1678_v47 = vsel %vm594_vm2, %v1669_v55, %v5347_v23  ;;  %v5376_v4 = vsel %vm863_vm1, %v6612_v13, %v1939_v28  ;;  %v1904_v55 = vsel %vm863_vm1, %v1902_v5, %v1903_v62  ;;  %v1695_v28 = vshrl.u32 %v5344_v54, 16 }
 0x105   : > { %v5389_v38 = vsel %vm594_vm2, %v1813_v58, %v1821_v52  ;;  %v1703_v19 = vshrl.u32 %v5368_v12, 16  ;;  %v1706_v14 = vshll.u32 %v5368_v12, 16  ;;  %v5403_v24 = vsel %vm863_vm1, %v1941_v25, %v6542_v36 }
 0x106   : > { %6613 = vst [vmem:[#allocation53_spill] sm:$0xff] %v5403_v24  ;;  %v1907_v16 = vrot.slane %v5301_v30, 5  ;;  %v1906_v25 = vsel %vm863_vm1, %v1903_v62, %v1905_v17  ;;  %v1686_v62 = vsel %vm594_vm2, %v5347_v23, %v1685_v37  ;;  %v5455_v23 = vld [vmem:[#allocation2 + $0x8] sm:$0xf] }
 0x107   : > { %v1705_v21 = vrot.slane %v1703_v19, 4 }
 0x108   : > { %1849 = vrot.lane.b32.xlu0 %v1662_v63, %s4525_s25  ;;  %832 = vrot.lane.b32.xlu1 %v701_v41, %s4525_s25  ;;  %v5380_v63 = vor.u32 %v1804_v59, %v1801_v7  ;;  %v5395_v41 = vor.u32 %v1828_v45, %v1825_v1  ;;  %v1698_v7 = vshll.u32 %v5344_v54, 16  ;;  %v5412_v1 = vsel %vm1370_vm3, %v5252_v10, 0 }
 0x109   : > { %v1694_v59 = vsel %vm594_vm2, %v1685_v37, %v5383_v46  ;;  %v1708_v10 = vrot.slane %v1706_v14, 5  ;;  %v1908_v37 = vsel %vm863_vm1, %v1905_v17, %v1907_v16  ;;  %v1913_v14 = vrot.slane %v5368_v12, 5 }
 0x10a   : > { %v5393_v5 = vsel %vm594_vm2, %v5380_v63, %v1813_v58  ;;  %v5408_v9 = vsel %vm594_vm2, %v1821_v52, %v5395_v41  ;;  %v1697_v52 = vrot.slane %v1695_v28, 4  ;;  %v1700_v29 = vrot.slane %v1698_v7, 5  ;;  %v5424_v13 = vpop.permute.xlu1 %913 }
 0x10b   : > { %6614 = vst [vmem:[#allocation54_spill] sm:$0xff] %v5408_v9  ;;  %v5441_v28 = vor.u32 %v1708_v10, %v1705_v21  ;;  %v5445_v7 = vcombine.low %v5214_v11, %v4870_v34  ;;  %v1911_v11 = vrot.slane %v5344_v54, 5  ;;  %v1738_v17 = vshll.u32 %v4866_v33, 16 }
 0x10c   : > { %1853 = vrot.lane.b32.xlu0 %v1678_v47, %s4525_s25  ;;  %935 = vrot.lane.b32.xlu1 %v886_v20, %s4524_s23  ;;  %v6543_v47 = vrot.slane %v5305_v49, 5  ;;  %v5422_v20 = vsel %vm1370_vm3, %v5295_v2, 0  ;;  %v5436_v2 = vcombine.low %v5206_v43, %v5221_v32  ;;  %v1701_v45 = vor.u32 %v1700_v29, %v1697_v52 }
 0x10d   : > { %v1730_v52 = vshll.u32 %v5445_v7, 16  ;;  %v1735_v29 = vshrl.u32 %v4866_v33, 16  ;;  %v1914_v22 = vsel %vm863_vm1, %v1911_v11, %v1913_v14  ;;  %v1740_v35 = vrot.slane %v1738_v17, 5  ;;  %v6621_v17 = vld [vmem:[#allocation21_spill] sm:$0xff] }
 0x10e   : > { %v1910_v58 = vsel %vm863_vm1, %v1907_v16, %v6543_v47  ;;  %6616 = vst [vmem:[#allocation56_spill] sm:$0xff] %v5436_v2  ;;  %v1719_v43 = vshrl.u32 %v5436_v2, 16  ;;  %v1722_v32 = vshll.u32 %v5436_v2, 16  ;;  %v1710_v34 = vsel %vm594_vm2, %v1701_v45, %v5441_v28 }
 0x10f   : > { %v5477_v47 = vcombine.low %v4850_v26, %v4834_v15  ;;  %v1737_v39 = vrot.slane %v1735_v29, 4 }
 0x110   : > { %1953 = vrot.lane.b32.xlu0 %v1904_v55, %s4524_s23  ;;  %1857 = vrot.lane.b32.xlu1 %v1694_v59, %s4525_s25  ;;  %v5432_v55 = vcombine.low %v5156_v50, %v5204_v6  ;;  %v5447_v19 = vpop.permute.xlu1 %810  ;;  %v1721_v10 = vrot.slane %v1719_v43, 4  ;;  %v1917_v43 = vrot.slane %v5436_v2, 5 }
 0x111   : > { %v1743_v53 = vshrl.u32 %v5477_v47, 16  ;;  %v1746_v18 = vshll.u32 %v5477_v47, 16 }
 0x112   : > { %6615 = vst [vmem:[#allocation55_spill] sm:$0xff] %v5432_v55  ;;  %v1711_v50 = vshrl.u32 %v5432_v55, 16  ;;  %v1714_v6 = vshll.u32 %v5432_v55, 16 }
 0x113   : > { %v1745_v24 = vrot.slane %v1743_v53, 4  ;;  %v1748_v57 = vrot.slane %v1746_v18, 5 }
 0x114   : > { %1955 = vrot.lane.b32.xlu0 %v1906_v25, %s4524_s23  ;;  %1959 = vrot.lane.b32.xlu1 %v1910_v58, %s4524_s23  ;;  %v1727_v25 = vshrl.u32 %v5445_v7, 16  ;;  %v1713_v16 = vrot.slane %v1711_v50, 4  ;;  %v1716_v21 = vrot.slane %v1714_v6, 5  ;;  %v1724_v58 = vrot.slane %v1722_v32, 5 }
 0x115   : > { %v5482_v50 = vcombine.low %v4852_v27, %v4882_v40  ;;  %v1915_v6 = vrot.slane %v5432_v55, 5  ;;  %v6617_v40 = vld [vmem:[#allocation38_spill] sm:$0xff]  ;;  %v1702_v55 = vsel %vm594_vm2, %v5383_v46, %v1701_v45 }
 0x116   : > { %v1729_v36 = vrot.slane %v1727_v25, 4  ;;  %v1717_v15 = vor.u32 %v1716_v21, %v1713_v16  ;;  %v1725_v26 = vor.u32 %v1724_v58, %v1721_v10  ;;  %v6619_v25 = vld [vmem:[#allocation23_spill] sm:$0xff]  ;;  %v6622_v16 = vld [vmem:[#allocation24_spill] sm:$0xff]  ;;  %v5507_v58 = vld [vmem:[#allocation2 + $0x10] sm:$0xf] }
 0x117   : > { %v5462_v59 = vpop.permute.xlu0 %939  ;;  %v5504_v21 = vcombine.low %v6622_v16, %v6621_v17  ;;  %v1918_v10 = vsel %vm863_vm1, %v1915_v6, %v1917_v43  ;;  %v1751_v46 = vshrl.u32 %v5482_v50, 16  ;;  %v1754_v45 = vshll.u32 %v5482_v50, 16 }
 0x118   : > { %1855 = vrot.lane.b32.xlu0 %v1686_v62, %s4525_s25  ;;  %2809 = vrot.lane.b32.xlu1 %v5094_v60, %s4524_s23  ;;  %v5470_v62 = vld [vmem:[#allocation2 + $0xc] sm:$0xf]  ;;  %v6554_v17 = vrot.slane %v4866_v33, 5  ;;  %v1726_v2 = vsel %vm594_vm2, %v1717_v15, %v1725_v26 }
 0x119   : > { %v1756_v53 = vrot.slane %v1754_v45, 5 }
 0x11a   : > { %v938_v60 = vpop.permute.xlu1 %937 }
 0x11c   : > { %1957 = vrot.lane.b32.xlu0 %v1908_v37, %s4524_s23  ;;  %v5486_v32 = vpop.permute.xlu0 %943  ;;  %1861 = vrot.lane.b32.xlu1 %v1710_v34, %s4525_s25  ;;  %v1732_v37 = vrot.slane %v1730_v52, 5  ;;  %v1912_v34 = vsel %vm863_vm1, %v6618_v51, %v1911_v11  ;;  %v6620_v52 = vld [vmem:[#allocation20_spill] sm:$0xff] }
 0x11d   : > { %v5500_v29 = vcombine.low %v6620_v52, %v6619_v25  ;;  %v1741_v25 = vor.u32 %v1740_v35, %v1737_v39  ;;  %v1919_v52 = vrot.slane %v5445_v7, 5  ;;  %v5524_v35 = vsel %vm863_vm1, %v1913_v14, %v1915_v6  ;;  %v4306_v14 = vld [vmem:[#allocation2 + $0x90] sm:$0xf]  ;;  %v6624_v6 = vld [vmem:[#allocation29_spill] sm:$0xff] }
 0x11e   : > { %v942_v27 = vpop.permute.xlu1 %941  ;;  %v1733_v11 = vor.u32 %v1732_v37, %v1729_v36 }
 0x11f   : > { %v5527_v39 = vsel %vm863_vm1, %v1917_v43, %v1919_v52  ;;  %v5538_v43 = vcombine.low %v4306_v14, %v6624_v6 }
 0x120   : > { %2788 = vrot.lane.b32.xlu0 %v6617_v40, %s4525_s25  ;;  %v6623_v40 = vld [vmem:[#allocation28_spill] sm:$0xff]  ;;  %v835_v51 = vpop.permute.xlu0 %834  ;;  %1963 = vrot.lane.b32.xlu1 %v1914_v22, %s4524_s23  ;;  %v1718_v22 = vsel %vm594_vm2, %v5441_v28, %v1717_v15  ;;  %v1922_v28 = vsel %vm863_vm1, %v1919_v52, %v6554_v17  ;;  %v5542_v15 = vor.u32 %v1748_v57, %v1745_v24  ;;  %v1759_v52 = vshrl.u32 %v5500_v29, 16 }
 0x121   : > { %v1002_v16 = vsel %vm963_vm4, %v4866_v33, %v835_v51  ;;  %v1753_v51 = vrot.slane %v1751_v46, 4  ;;  %v1925_v46 = vrot.slane %v5482_v50, 5 }
 0x122   : > { %v1065_v54 = vsel %vm1039_vm5, %v1002_v16, %v938_v60  ;;  %v946_v9 = vpop.permute.xlu1 %945  ;;  %v5532_v60 = vsel %vm594_vm2, %v1725_v26, %v1733_v11 }
 0x123   : > { %v1188_v36 = vshrl.u32 %v1065_v54, 16  ;;  %v1191_v37 = vshll.u32 %v1065_v54, 16  ;;  %v5552_v24 = vor.u32 %v1756_v53, %v1753_v51  ;;  %v6625_v51 = vcombine.low %v5455_v23, %v5470_v62 }
 0x124   : > { %1859 = vrot.lane.b32.xlu0 %v1702_v55, %s4525_s25  ;;  %v837_v18 = vpop.permute.xlu0 %836  ;;  %1865 = vrot.lane.b32.xlu1 %v1726_v2, %s4525_s25  ;;  %v1742_v55 = vsel %vm594_vm2, %v1733_v11, %v1741_v25 }
 0x125   : > { %v1005_v54 = vsel %vm963_vm4, %v5477_v47, %v837_v18  ;;  %v1190_v45 = vrot.slane %v1188_v36, 3  ;;  %v1193_v26 = vrot.slane %v1191_v37, 4  ;;  %v1762_v36 = vshll.u32 %v5500_v29, 16 }
 0x126   : > { %v1067_v11 = vsel %vm1039_vm5, %v1005_v54, %v5462_v59  ;;  %v839_v16 = vpop.permute.xlu1 %838  ;;  %v1767_v59 = vshrl.u32 %v5504_v21, 16  ;;  %v966_v53 = vsel %vm963_vm4, %v6625_v51, %v5447_v19 }
 0x127   : > { %v1196_v14 = vshrl.u32 %v1067_v11, 16  ;;  %v1199_v6 = vshll.u32 %v1067_v11, 16  ;;  %v1008_v57 = vsel %vm963_vm4, %v5482_v50, %v839_v16  ;;  %v5567_v16 = vor.u32 %v1193_v26, %v1190_v45 }
 0x128   : > { %1961 = vrot.lane.b32.xlu0 %v1912_v34, %s4524_s23  ;;  %v1069_v18 = vsel %vm1039_vm5, %v1008_v57, %v942_v27  ;;  %v841_v17 = vpop.permute.xlu0 %840  ;;  %1967 = vrot.lane.b32.xlu1 %v1918_v10, %s4524_s23  ;;  %v1770_v34 = vshll.u32 %v5504_v21, 16 }
 0x129   : > { %v1198_v37 = vrot.slane %v1196_v14, 3  ;;  %v1201_v54 = vrot.slane %v1199_v6, 4  ;;  %v1204_v2 = vshrl.u32 %v1069_v18, 16  ;;  %v1207_v11 = vshll.u32 %v1069_v18, 16 }
 0x12a   : > { %v1011_v27 = vsel %vm963_vm4, %v5500_v29, %v841_v17  ;;  %v843_v10 = vpop.permute.xlu1 %842  ;;  %v5571_v14 = vsel %vm594_vm2, %v1741_v25, %v5542_v15 }
 0x12b   : > { %v1206_v6 = vrot.slane %v1204_v2, 3  ;;  %v1209_v57 = vrot.slane %v1207_v11, 4  ;;  %v1071_v18 = vsel %vm1039_vm5, %v1011_v27, %v5486_v32  ;;  %v1014_v19 = vsel %vm963_vm4, %v5504_v21, %v843_v10 }
 0x12c   : > { %1863 = vrot.lane.b32.xlu0 %v1718_v22, %s4525_s25  ;;  %v1212_v23 = vshrl.u32 %v1071_v18, 16  ;;  %v1215_v62 = vshll.u32 %v1071_v18, 16  ;;  %v1073_v17 = vsel %vm1039_vm5, %v1014_v19, %v946_v9  ;;  %v1202_v22 = vor.u32 %v1201_v54, %v1198_v37  ;;  %1869 = vrot.lane.b32.xlu1 %v1742_v55, %s4525_s25 }
 0x12d   : > { %v1210_v45 = vor.u32 %v1209_v57, %v1206_v6  ;;  %v1220_v26 = vshrl.u32 %v1073_v17, 16  ;;  %v1223_v25 = vshll.u32 %v1073_v17, 16  ;;  %v6626_v2 = vrot.slane %v5477_v47, 5 }
 0x12e   : > { %v813_v51 = vpop.permute.xlu0 %812  ;;  %v1041_v11 = vsel %vm1039_vm5, %v966_v53, %v5424_v13  ;;  %v1214_v27 = vrot.slane %v1212_v23, 3  ;;  %v1217_v10 = vrot.slane %v1215_v62, 4  ;;  %v918_v18 = vpop.permute.xlu1 %917  ;;  %v5588_v9 = vsel %vm1092_vm6, %v5567_v16, %v1202_v22 }
 0x12f   : > { %v1926_v32 = vsel %vm863_vm1, %v6626_v2, %v1925_v46  ;;  %v1222_v55 = vrot.slane %v1220_v26, 3  ;;  %v1225_v37 = vrot.slane %v1223_v25, 4  ;;  %4037 = vmatprep.mubr.msk.bf16.mxu1 %vm1297_vm7, %v5588_v9  ;;  %v5595_v54 = vsel %vm1092_vm6, %v1202_v22, %v1210_v45 }
 0x130   : > { %1965 = vrot.lane.b32.xlu0 %v5524_v35, %s4524_s23  ;;  %v1761_v6 = vrot.slane %v1759_v52, 4  ;;  %v1218_v13 = vor.u32 %v1217_v10, %v1214_v27  ;;  %4038 = vmatmul.mubr.msk.bf16.vlgmr.msra.gmra.mrb[0].mxu1 %vm1297_vm7, %v5595_v54  ;;  %v1764_v57 = vrot.slane %v1762_v36, 5  ;;  %v1769_v19 = vrot.slane %v1767_v59, 4 }
 0x131   : > { %1971 = vrot.lane.b32.xlu1 %v1922_v28, %s4524_s23  ;;  %v1772_v23 = vrot.slane %v1770_v34, 5  ;;  %v1093_v35 = vshrl.u32 %v1041_v11, 16  ;;  %v1096_v62 = vshll.u32 %v1041_v11, 16  ;;  %v1758_v22 = vsel %vm594_vm2, %v5542_v15, %v5552_v24  ;;  %4062 = vmatpush3.bf16.msra.mxu1 %v5412_v1 }
 0x132   : > { %v815_v53 = vpop.permute.xlu0 %814  ;;  %v5606_v52 = vpop.permute.xlu1 %846  ;;  %v5610_v28 = vsel %vm1092_vm6, %v1210_v45, %v1218_v13  ;;  %v1927_v36 = vrot.slane %v5500_v29, 5  ;;  %v5616_v59 = vor.u32 %v1225_v37, %v1222_v55  ;;  %v1778_v1 = vshll.u32 %v5538_v43, 16 }
 0x133   : > { %v972_v17 = vsel %vm963_vm4, %v4944_v44, %v815_v53  ;;  %v1775_v44 = vshrl.u32 %v5538_v43, 16  ;;  %4041 = vmatprep.mubr.msk.bf16.mxu1 %vm1297_vm7, %v5610_v28  ;;  %v6627_v45 = vcombine.low %v5507_v58, %v6623_v40  ;;  %v5626_v11 = vor.u32 %v1772_v23, %v1769_v19 }
 0x134   : > { %v1045_v26 = vsel %vm1039_vm5, %v972_v17, %v918_v18  ;;  %1867 = vrot.lane.b32.xlu0 %v5532_v60, %s4525_s25  ;;  %v1765_v60 = vor.u32 %v1764_v57, %v1761_v6  ;;  %v1783_v27 = vshrl.u32 %v5270_v48, 16  ;;  %v1095_v10 = vrot.slane %v1093_v35, 3 }
 0x135   : > { %v1108_v34 = vshrl.u32 %v1045_v26, 16  ;;  %v1111_v15 = vshll.u32 %v1045_v26, 16  ;;  %v969_v25 = vsel %vm963_vm4, %v6627_v45, %v813_v51  ;;  %1873 = vrot.lane.b32.xlu1 %v1758_v22, %s4525_s25  ;;  %v1098_v18 = vrot.slane %v1096_v62, 4 }
 0x136   : > { %v916_v2 = vpop.permute.xlu0 %915  ;;  %v1786_v37 = vshll.u32 %v5270_v48, 16  ;;  %v5631_v26 = vpop.permute.xlu1 %816  ;;  %v5637_v51 = vsel %vm1092_vm6, %v1218_v13, %v5616_v59  ;;  %v1929_v6 = vrot.slane %v5504_v21, 5  ;;  %v1777_v57 = vrot.slane %v1775_v44, 4  ;;  %v6628_v13 = vld [vmem:[#allocation36_spill] sm:$0xff] }
 0x137   : > { %v1043_v55 = vsel %vm1039_vm5, %v969_v25, %v916_v2  ;;  %v1110_v53 = vrot.slane %v1108_v34, 3  ;;  %v1113_v17 = vrot.slane %v1111_v15, 4  ;;  %v1780_v19 = vrot.slane %v1778_v1, 5  ;;  %v4307_v15 = vld [vmem:[#allocation2 + $0xa0] sm:$0xf] }
 0x138   : > { %v1100_v58 = vshrl.u32 %v1043_v55, 16  ;;  %v1103_v40 = vshll.u32 %v1043_v55, 16  ;;  %1969 = vrot.lane.b32.xlu0 %v5527_v39, %s4524_s23  ;;  %4042 = vmatmul.mubr.msk.bf16.gmra.mrb[4].mxu1 %vm1297_vm7, %v5637_v51  ;;  %v1774_v22 = vsel %vm594_vm2, %v1765_v60, %v5626_v11  ;;  %v1785_v39 = vrot.slane %v1783_v27, 4 }
 0x139   : > { %1975 = vrot.lane.b32.xlu1 %v1926_v32, %s4524_s23  ;;  %v1788_v34 = vrot.slane %v1786_v37, 5  ;;  %v5646_v45 = vcombine.low %v4307_v15, %v6628_v13  ;;  %v5648_v25 = vor.u32 %v1113_v17, %v1110_v53  ;;  %v1099_v1 = vor.u32 %v1098_v18, %v1095_v10 }
 0x13a   : > { %v1102_v23 = vrot.slane %v1100_v58, 3  ;;  %v1105_v35 = vrot.slane %v1103_v40, 4  ;;  %v845_v62 = vpop.permute.xlu0 %844  ;;  %v819_v44 = vpop.permute.xlu1 %818  ;;  %v6629_v55 = vrot.slane %v5477_v47, 5  ;;  %v6630_v32 = vrot.slane %v4866_v33, 5 }
 0x13b   : > { %v1930_v27 = vsel %vm863_vm1, %v1927_v36, %v1929_v6  ;;  %v1781_v37 = vor.u32 %v1780_v19, %v1777_v57  ;;  %v978_v53 = vsel %vm963_vm4, %v5198_v0, %v819_v44  ;;  %v5672_v17 = vor.u32 %v1788_v34, %v1785_v39 }
 0x13c   : > { %1871 = vrot.lane.b32.xlu0 %v5571_v14, %s4525_s25  ;;  %v1106_v2 = vor.u32 %v1105_v35, %v1102_v23  ;;  %v1924_v58 = vsel %vm863_vm1, %v6630_v32, %v6629_v55  ;;  %v1017_v14 = vsel %vm963_vm4, %v5538_v43, %v845_v62  ;;  %v1791_v40 = vshrl.u32 %v5646_v45, 16 }
 0x13d   : > { %1877 = vrot.lane.b32.xlu1 %v1774_v22, %s4525_s25  ;;  %v1794_v0 = vshll.u32 %v5646_v45, 16  ;;  %v1766_v62 = vsel %vm594_vm2, %v5552_v24, %v1765_v60  ;;  %v1931_v22 = vrot.slane %v5538_v43, 5  ;;  %v1020_v39 = vsel %vm963_vm4, %v5270_v48, %v5606_v52 }
 0x13e   : > { %v948_v10 = vpop.permute.xlu0 %947  ;;  %v1107_v47 = vsel %vm1092_vm6, %v1099_v1, %v1106_v2  ;;  %v1115_v33 = vsel %vm1092_vm6, %v1106_v2, %v5648_v25  ;;  %v922_v57 = vpop.permute.xlu1 %921  ;;  %v1933_v44 = vrot.slane %v5270_v48, 5  ;;  %v1790_v24 = vsel %vm594_vm2, %v1781_v37, %v5672_v17 }
 0x13f   : > { %v1075_v18 = vsel %vm1039_vm5, %v1017_v14, %v948_v10  ;;  %4013 = vmatprep.mubr.msk.bf16.mxu0 %vm1297_vm7, %v1107_v47  ;;  %v1049_v35 = vsel %vm1039_vm5, %v978_v53, %v922_v57  ;;  %v1793_v60 = vrot.slane %v1791_v40, 4  ;;  %v1796_v43 = vrot.slane %v1794_v0, 5 }
 0x140   : > { %v1228_v19 = vshrl.u32 %v1075_v18, 16  ;;  %v1231_v23 = vshll.u32 %v1075_v18, 16  ;;  %1973 = vrot.lane.b32.xlu0 %v1924_v58, %s4524_s23  ;;  %4014 = vmatmul.mubr.msk.bf16.vlgmr.msra.gmra.mrb[0].mxu0 %vm1297_vm7, %v1115_v33  ;;  %v1124_v2 = vshrl.u32 %v1049_v35, 16  ;;  %v975_v53 = vsel %vm963_vm4, %v5262_v42, %v5631_v26 }
 0x141   : > { %4112 = vmatpush3.bf16.msra.mxu0 %v5422_v20  ;;  %1979 = vrot.lane.b32.xlu1 %v1930_v27, %s4524_s23  ;;  %v1127_v20 = vshll.u32 %v1049_v35, 16  ;;  %v1928_v27 = vsel %vm863_vm1, %v1925_v46, %v1927_v36  ;;  %v1934_v50 = vsel %vm863_vm1, %v1931_v22, %v1933_v44  ;;  %v1797_v29 = vor.u32 %v1796_v43, %v1793_v60 }
 0x142   : > { %v1230_v34 = vrot.slane %v1228_v19, 3  ;;  %v1233_v15 = vrot.slane %v1231_v23, 4  ;;  %v950_v13 = vpop.permute.xlu0 %949  ;;  %v851_v32 = vpop.permute.xlu1 %850  ;;  %v1126_v46 = vrot.slane %v1124_v2, 3  ;;  %v1782_v57 = vsel %vm594_vm2, %v5626_v11, %v1781_v37 }
 0x143   : > { %v1077_v1 = vsel %vm1039_vm5, %v1020_v39, %v950_v13  ;;  %v1129_v36 = vrot.slane %v1127_v20, 4  ;;  %v1806_v39 = vsel %vm594_vm2, %v1797_v29, %v5380_v63  ;;  %v1932_v11 = vsel %vm863_vm1, %v1929_v6, %v1931_v22  ;;  %v6632_v6 = vld [vmem:[#allocation46_spill] sm:$0xff] }
 0x144   : > { %v1234_v55 = vor.u32 %v1233_v15, %v1230_v34  ;;  %v1236_v58 = vshrl.u32 %v1077_v1, 16  ;;  %1875 = vrot.lane.b32.xlu0 %v1766_v62, %s4525_s25  ;;  %v1239_v52 = vshll.u32 %v1077_v1, 16  ;;  %v1935_v34 = vrot.slane %v5646_v45, 5 }
 0x145   : > { %1881 = vrot.lane.b32.xlu1 %v1790_v24, %s4525_s25  ;;  %v5721_v15 = vor.u32 %v1129_v36, %v1126_v46  ;;  %v6631_v21 = vrot.slane %v5309_v31, 5  ;;  %v1832_v22 = vshrl.u32 %v6632_v6, 16 }
 0x146   : > { %v1238_v14 = vrot.slane %v1236_v58, 3  ;;  %v920_v10 = vpop.permute.xlu0 %919  ;;  %v5702_v47 = vsel %vm1092_vm6, %v5616_v59, %v1234_v55  ;;  %v1241_v33 = vrot.slane %v1239_v52, 4  ;;  %v821_v26 = vpop.permute.xlu1 %820  ;;  %v1798_v52 = vsel %vm594_vm2, %v5672_v17, %v1797_v29 }
 0x147   : > { %v1047_v18 = vsel %vm1039_vm5, %v975_v53, %v920_v10  ;;  %4045 = vmatprep.mubr.msk.bf16.mxu1 %vm1297_vm7, %v5702_v47  ;;  %v5750_v53 = vld [vmem:[#allocation2 + $0xd4] sm:$0xf]  ;;  %v1834_v46 = vrot.slane %v1832_v22, 4 }
 0x148   : > { %v1116_v40 = vshrl.u32 %v1047_v18, 16  ;;  %v1119_v0 = vshll.u32 %v1047_v18, 16  ;;  %1977 = vrot.lane.b32.xlu0 %v1928_v27, %s4524_s23  ;;  %v1242_v59 = vor.u32 %v1241_v33, %v1238_v14  ;;  %v441_v27 = vld [vmem:[#allocation2 + $0xd0] sm:$0xf]  ;;  %v1026_v14 = vsel %vm963_vm4, %v5309_v31, %v851_v32 }
 0x149   : > { %1983 = vrot.lane.b32.xlu1 %v1934_v50, %s4524_s23  ;;  %v5760_v29 = vcombine.low %v441_v27, %v5750_v53  ;;  %v1936_v32 = vsel %vm863_vm1, %v1933_v44, %v1935_v34  ;;  %v1945_v44 = vrot.slane %v6632_v6, 5 }
 0x14a   : > { %v1118_v19 = vrot.slane %v1116_v40, 3  ;;  %v1121_v23 = vrot.slane %v1119_v0, 4  ;;  %v849_v35 = vpop.permute.xlu0 %848  ;;  %v5716_v62 = vsel %vm1092_vm6, %v1234_v55, %v1242_v59  ;;  %v823_v1 = vpop.permute.xlu1 %822 }
 0x14b   : > { %4046 = vmatmul.mubr.msk.bf16.gmra.mrb[8].mxu1 %vm1297_vm7, %v5716_v62  ;;  %v984_v37 = vsel %vm963_vm4, %v5305_v49, %v823_v1  ;;  %v1023_v63 = vsel %vm963_vm4, %v5646_v45, %v849_v35  ;;  %v1938_v49 = vsel %vm863_vm1, %v1935_v34, %v6631_v21  ;;  %v1835_v45 = vshll.u32 %v6632_v6, 16 }
 0x14c   : > { %v1122_v13 = vor.u32 %v1121_v23, %v1118_v19  ;;  %1879 = vrot.lane.b32.xlu0 %v1782_v57, %s4525_s25  ;;  %v981_v23 = vsel %vm963_vm4, %v5301_v30, %v821_v26 }
 0x14d   : > { %1885 = vrot.lane.b32.xlu1 %v1806_v39, %s4525_s25  ;;  %v1837_v36 = vrot.slane %v1835_v45, 5 }
 0x14e   : > { %v952_v24 = vpop.permute.xlu0 %951  ;;  %v1123_v60 = vsel %vm1092_vm6, %v5648_v25, %v1122_v13  ;;  %v1131_v43 = vsel %vm1092_vm6, %v1122_v13, %v5721_v15  ;;  %v926_v20 = vpop.permute.xlu1 %925 }
 0x14f   : > { %v1079_v2 = vsel %vm1039_vm5, %v1023_v63, %v952_v24  ;;  %4017 = vmatprep.mubr.msk.bf16.mxu0 %vm1297_vm7, %v1123_v60  ;;  %v1053_v58 = vsel %vm1039_vm5, %v984_v37, %v926_v20  ;;  %v5775_v48 = vor.u32 %v1837_v36, %v1834_v46  ;;  %v5781_v63 = vld [vmem:[#allocation2 + $0xd8] sm:$0xf] }
 0x150   : > { %v1244_v55 = vshrl.u32 %v1079_v2, 16  ;;  %v1247_v25 = vshll.u32 %v1079_v2, 16  ;;  %1981 = vrot.lane.b32.xlu0 %v1932_v11, %s4524_s23  ;;  %4018 = vmatmul.mubr.msk.bf16.gmra.mrb[4].mxu0 %vm1297_vm7, %v1131_v43  ;;  %v1140_v40 = vshrl.u32 %v1053_v58, 16  ;;  %v1143_v0 = vshll.u32 %v1053_v58, 16 }
 0x151   : > { %1987 = vrot.lane.b32.xlu1 %v1938_v49, %s4524_s23  ;;  %v1841_v43 = vshrl.u32 %v5760_v29, 16  ;;  %v1844_v2 = vshll.u32 %v5760_v29, 16  ;;  %v1839_v20 = vsel %vm594_vm2, %v5395_v41, %v5775_v48 }
 0x152   : > { %v1246_v10 = vrot.slane %v1244_v55, 3  ;;  %v1249_v33 = vrot.slane %v1247_v25, 4  ;;  %v954_v18 = vpop.permute.xlu0 %953  ;;  %v5756_v19 = vpop.permute.xlu1 %854  ;;  %v1142_v34 = vrot.slane %v1140_v40, 3  ;;  %v1145_v30 = vrot.slane %v1143_v0, 4 }
 0x153   : > { %v1081_v50 = vsel %vm1039_vm5, %v1026_v14, %v954_v18  ;;  %v5800_v55 = vcombine.low %v5750_v53, %v5781_v63  ;;  %v1846_v14 = vrot.slane %v1844_v2, 5 }
 0x154   : > { %v1250_v57 = vor.u32 %v1249_v33, %v1246_v10  ;;  %v1252_v17 = vshrl.u32 %v1081_v50, 16  ;;  %1883 = vrot.lane.b32.xlu0 %v1798_v52, %s4525_s25  ;;  %v1255_v31 = vshll.u32 %v1081_v50, 16  ;;  %v5802_v25 = vor.u32 %v1145_v30, %v1142_v34 }
 0x155   : > { %1889 = vrot.lane.b32.xlu1 %v5389_v38, %s4525_s25  ;;  %v4308_v38 = vld [vmem:[#allocation2 + $0xcc] sm:$0xf]  ;;  %v3807_v10 = vcombine.low %v5781_v63, %v5781_v63  ;;  %v2774_v0 = vshll.u32 %v5800_v55, 16 }
 0x156   : > { %v1254_v35 = vrot.slane %v1252_v17, 3  ;;  %v924_v39 = vpop.permute.xlu0 %923  ;;  %v5768_v13 = vsel %vm1092_vm6, %v1242_v59, %v1250_v57  ;;  %v1257_v1 = vrot.slane %v1255_v31, 4  ;;  %v5778_v26 = vpop.permute.xlu1 %824  ;;  %v5783_v24 = vcombine.low %v4308_v38, %v441_v27 }
 0x157   : > { %v1051_v11 = vsel %vm1039_vm5, %v981_v23, %v924_v39  ;;  %4049 = vmatprep.mubr.msk.bf16.mxu1 %vm1297_vm7, %v5768_v13  ;;  %v1843_v27 = vrot.slane %v1841_v43, 4  ;;  %v1947_v23 = vrot.slane %v5760_v29, 5 }
 0x158   : > { %v1132_v37 = vshrl.u32 %v1051_v11, 16  ;;  %v1135_v59 = vshll.u32 %v1051_v11, 16  ;;  %1985 = vrot.lane.b32.xlu0 %v1936_v32, %s4524_s23  ;;  %v5785_v60 = vor.u32 %v1257_v1, %v1254_v35  ;;  %v2762_v33 = vshrl.u32 %v5783_v24, 16 }
 0x159   : > { %1991 = vrot.lane.b32.xlu1 %v5371_v61, %s4524_s23  ;;  %v6633_v61 = vrot.slane %v5143_v3, 5  ;;  %v1949_v35 = vrot.slane %v3807_v10, 5  ;;  %v1032_v1 = vsel %vm963_vm4, %v5327_v56, %v5756_v19  ;;  %v6634_v19 = vld [vmem:[#allocation54_spill] sm:$0xff] }
 0x15a   : > { %v1134_v21 = vrot.slane %v1132_v37, 3  ;;  %v1137_v49 = vrot.slane %v1135_v59, 4  ;;  %v853_v22 = vpop.permute.xlu0 %852  ;;  %v5793_v45 = vsel %vm1092_vm6, %v1250_v57, %v5785_v60  ;;  %v827_v52 = vpop.permute.xlu1 %826  ;;  %v2764_v39 = vrot.slane %v2762_v33, 4  ;;  %v5847_v59 = vld [vmem:[#allocation2 + $0xe0] sm:$0xf] }
 0x15b   : > { %4050 = vmatmul.mubr.msk.bf16.gmra.mrb[12].mxu1 %vm1297_vm7, %v5793_v45  ;;  %v1946_v41 = vsel %vm863_vm1, %v6633_v61, %v1945_v44  ;;  %v990_v18 = vsel %vm963_vm4, %v5368_v12, %v827_v52  ;;  %v1029_v50 = vsel %vm963_vm4, %v5351_v8, %v853_v22  ;;  %v2765_v12 = vshll.u32 %v5783_v24, 16 }
 0x15c   : > { %v1138_v58 = vor.u32 %v1137_v49, %v1134_v21  ;;  %1887 = vrot.lane.b32.xlu0 %v5393_v5, %s4525_s25  ;;  %v2771_v8 = vshrl.u32 %v5800_v55, 16  ;;  %v1847_v37 = vor.u32 %v1846_v14, %v1843_v27  ;;  %v2776_v21 = vrot.slane %v2774_v0, 5 }
 0x15d   : > { %1893 = vrot.lane.b32.xlu1 %v1839_v20, %s4525_s25  ;;  %v2767_v43 = vrot.slane %v2765_v12, 5 }
 0x15e   : > { %v956_v5 = vpop.permute.xlu0 %955  ;;  %v5822_v46 = vsel %vm1092_vm6, %v5721_v15, %v1138_v58  ;;  %v5826_v36 = vsel %vm1092_vm6, %v1138_v58, %v5802_v25  ;;  %v930_v57 = vpop.permute.xlu1 %929  ;;  %v2773_v2 = vrot.slane %v2771_v8, 4 }
 0x15f   : > { %v1083_v40 = vsel %vm1039_vm5, %v1029_v50, %v956_v5  ;;  %4021 = vmatprep.mubr.msk.bf16.mxu0 %vm1297_vm7, %v5822_v46  ;;  %v1057_v32 = vsel %vm1039_vm5, %v990_v18, %v930_v57  ;;  %v1950_v18 = vsel %vm863_vm1, %v1947_v23, %v1949_v35 }
 0x160   : > { %v1260_v17 = vshrl.u32 %v1083_v40, 16  ;;  %v1263_v31 = vshll.u32 %v1083_v40, 16  ;;  %1989 = vrot.lane.b32.xlu0 %v5376_v4, %s4524_s23  ;;  %4022 = vmatmul.mubr.msk.bf16.gmra.mrb[8].mxu0 %vm1297_vm7, %v5826_v36  ;;  %v5845_v4 = vld [vmem:[#allocation2 + $0xdc] sm:$0xf]  ;;  %v1156_v49 = vshrl.u32 %v1057_v32, 16  ;;  %v1159_v22 = vshll.u32 %v1057_v32, 16 }
 0x161   : > { %1995 = vrot.lane.b32.xlu1 %v1946_v41, %s4524_s23  ;;  %v5854_v61 = vcombine.low %v5845_v4, %v5847_v59  ;;  %v6635_v41 = vld [vmem:[#allocation52_spill] sm:$0xff]  ;;  %v2768_v40 = vor.u32 %v2767_v43, %v2764_v39  ;;  %v5868_v12 = vor.u32 %v2776_v21, %v2773_v2  ;;  %v1848_v32 = vsel %vm594_vm2, %v5775_v48, %v1847_v37 }
 0x162   : > { %v1262_v11 = vrot.slane %v1260_v17, 3  ;;  %v1265_v34 = vrot.slane %v1263_v31, 4  ;;  %v958_v30 = vpop.permute.xlu0 %957  ;;  %v859_v58 = vpop.permute.xlu1 %858  ;;  %v987_v27 = vsel %vm963_vm4, %v6635_v41, %v5778_v26  ;;  %v1158_v26 = vrot.slane %v1156_v49, 3  ;;  %v4309_v49 = vld [vmem:[#allocation2 + $0xc8] sm:$0xf] }
 0x163   : > { %v1085_v38 = vsel %vm1039_vm5, %v1032_v1, %v958_v30  ;;  %v1161_v8 = vrot.slane %v1159_v22, 4  ;;  %v2780_v35 = vshrl.u32 %v5854_v61, 16  ;;  %v2783_v1 = vshll.u32 %v5854_v61, 16 }
 0x164   : > { %v1266_v20 = vor.u32 %v1265_v34, %v1262_v11  ;;  %v1268_v56 = vshrl.u32 %v1085_v38, 16  ;;  %1891 = vrot.lane.b32.xlu0 %v6634_v19, %s4525_s25  ;;  %v1271_v52 = vshll.u32 %v1085_v38, 16  ;;  %v2778_v38 = vsel %vm594_vm2, %v2768_v40, %v5868_v12 }
 0x165   : > { %1897 = vrot.lane.b32.xlu1 %v1847_v37, %s4525_s25  ;;  %v2801_v43 = vrot.slane %v5783_v24, 5  ;;  %v2803_v2 = vrot.slane %v5800_v55, 5  ;;  %v5884_v48 = vor.u32 %v1161_v8, %v1158_v26  ;;  %v3752_v22 = vcombine.low %v4309_v49, %v4309_v49  ;;  %v6638_v8 = vld [vmem:[#allocation50_spill] sm:$0xff]  ;;  %v6642_v55 = vld [vmem:[#allocation31_spill] sm:$0xff] }
 0x166   : > { %v1270_v14 = vrot.slane %v1268_v56, 3  ;;  %v928_v10 = vpop.permute.xlu0 %927  ;;  %v5861_v33 = vsel %vm1092_vm6, %v5785_v60, %v1266_v20  ;;  %v1273_v50 = vrot.slane %v1271_v52, 4  ;;  %v829_v0 = vpop.permute.xlu1 %828  ;;  %v6636_v60 = vld [vmem:[#allocation53_spill] sm:$0xff]  ;;  %v2782_v56 = vrot.slane %v2780_v35, 4  ;;  %v6637_v52 = vld [vmem:[#allocation56_spill] sm:$0xff] }
 0x167   : > { %v1055_v5 = vsel %vm1039_vm5, %v987_v27, %v928_v10  ;;  %4053 = vmatprep.mubr.msk.bf16.mxu1 %vm1297_vm7, %v5861_v33  ;;  %v2785_v19 = vrot.slane %v2783_v1, 5 }
 0x168   : > { %v1148_v57 = vshrl.u32 %v1055_v5, 16  ;;  %v1151_v17 = vshll.u32 %v1055_v5, 16  ;;  %1993 = vrot.lane.b32.xlu0 %v6636_v60, %s4524_s23  ;;  %v1274_v31 = vor.u32 %v1273_v50, %v1270_v14 }
 0x169   : > { %1999 = vrot.lane.b32.xlu1 %v1950_v18, %s4524_s23  ;;  %v2786_v1 = vor.u32 %v2785_v19, %v2782_v56 }
 0x16a   : > { %v1150_v11 = vrot.slane %v1148_v57, 3  ;;  %v1153_v39 = vrot.slane %v1151_v17, 4  ;;  %v857_v34 = vpop.permute.xlu0 %856  ;;  %v5878_v30 = vsel %vm1092_vm6, %v1266_v20, %v1274_v31  ;;  %v831_v21 = vpop.permute.xlu1 %830  ;;  %v1948_v20 = vsel %vm863_vm1, %v1945_v44, %v1947_v23  ;;  %v4300_v23 = vld [vmem:[#allocation2 + $0xe4] ss:$0 sps:$4 sm:$0xff]  }
 0x16b   : > { %4054 = vmatmul.mubr.msk.bf16.gmra.mrb[16].mxu1 %vm1297_vm7, %v5878_v30  ;;  %v996_v41 = vsel %vm963_vm4, %v6637_v52, %v831_v21  ;;  %v1035_v27 = vsel %vm963_vm4, %v5143_v3, %v857_v34  ;;  %v2804_v3 = vsel %vm863_vm1, %v2801_v43, %v2803_v2  ;;  %v2769_v57 = vsel %vm594_vm2, %v6638_v8, %v2768_v40  ;;  %v6639_v40 = vld [vmem:[#allocation51_spill] sm:$0xff] }
 0x16c   : > { %v1154_v37 = vor.u32 %v1153_v39, %v1150_v11  ;;  %1895 = vrot.lane.b32.xlu0 %v1848_v32, %s4525_s25  ;;  %v1038_v17 = vsel %vm963_vm4, %v3752_v22, %v859_v58  ;;  %v2805_v39 = vrot.slane %v5854_v61, 5  ;;  %v2807_v34 = vrot.slane %v4300_v23, 5  ;;  %v6640_v52 = vld [vmem:[#allocation55_spill] sm:$0xff] }
 0x16d   : > { %2792 = vrot.lane.b32.xlu1 %v2778_v38, %s4525_s25  ;;  %v2802_v22 = vsel %vm863_vm1, %v6639_v40, %v2801_v43  ;;  %v993_v56 = vsel %vm963_vm4, %v6640_v52, %v829_v0 }
 0x16e   : > { %v960_v14 = vpop.permute.xlu0 %959  ;;  %v5898_v10 = vsel %vm1092_vm6, %v5802_v25, %v1154_v37  ;;  %v5902_v18 = vsel %vm1092_vm6, %v1154_v37, %v5884_v48  ;;  %v934_v50 = vpop.permute.xlu1 %933 }
 0x16f   : > { %v1087_v44 = vsel %vm1039_vm5, %v1035_v27, %v960_v14  ;;  %4025 = vmatprep.mubr.msk.bf16.mxu0 %vm1297_vm7, %v5898_v10  ;;  %v1061_v26 = vsel %vm1039_vm5, %v996_v41, %v934_v50 }
 0x170   : > { %v1276_v5 = vshrl.u32 %v1087_v44, 16  ;;  %v1279_v25 = vshll.u32 %v1087_v44, 16  ;;  %1997 = vrot.lane.b32.xlu0 %v1948_v20, %s4524_s23  ;;  %4026 = vmatmul.mubr.msk.bf16.gmra.mrb[12].mxu0 %vm1297_vm7, %v5902_v18  ;;  %v1172_v38 = vshrl.u32 %v1061_v26, 16  ;;  %v1175_v37 = vshll.u32 %v1061_v26, 16 }
 0x171   : > { %2813 = vrot.lane.b32.xlu1 %v2804_v3, %s4524_s23  ;;  %v2808_v44 = vsel %vm863_vm1, %v2805_v39, %v2807_v34 }
 0x172   : > { %v1278_v60 = vrot.slane %v1276_v5, 3  ;;  %v1281_v32 = vrot.slane %v1279_v25, 4  ;;  %v962_v35 = vpop.permute.xlu0 %961  ;;  %v1852_v49 = vpop.permute.xlu1 %1851  ;;  %v1174_v43 = vrot.slane %v1172_v38, 3  ;;  %v1177_v3 = vrot.slane %v1175_v37, 4 }
 0x173   : > { %v1089_v11 = vsel %vm1039_vm5, %v1038_v17, %v962_v35 }
 0x174   : > { %v5921_v21 = vor.u32 %v1281_v32, %v1278_v60  ;;  %v1284_v20 = vshrl.u32 %v1089_v11, 16  ;;  %2790 = vrot.lane.b32.xlu0 %v2769_v57, %s4525_s25  ;;  %v1287_v58 = vshll.u32 %v1089_v11, 16  ;;  %v6641_v57 = vld [vmem:[#allocation30_spill] sm:$0xff]  ;;  %v1178_v32 = vor.u32 %v1177_v3, %v1174_v43 }
 0x175   : > { %2796 = vrot.lane.b32.xlu1 %v2786_v1, %s4525_s25 }
 0x176   : > { %v1286_v19 = vrot.slane %v1284_v20, 3  ;;  %v932_v41 = vpop.permute.xlu0 %931  ;;  %v5930_v61 = vsel %vm1092_vm6, %v1274_v31, %v5921_v21  ;;  %v1289_v27 = vrot.slane %v1287_v58, 4  ;;  %v1952_v23 = vpop.permute.xlu1 %1951  ;;  %v2787_v31 = vsel %vm594_vm2, %v5868_v12, %v2786_v1 }
 0x177   : > { %v1059_v14 = vsel %vm1039_vm5, %v993_v56, %v932_v41  ;;  %4057 = vmatprep.mubr.msk.bf16.mxu1 %vm1297_vm7, %v5930_v61  ;;  %v2806_v12 = vsel %vm863_vm1, %v2803_v2, %v2805_v39  ;;  %v2004_v2 = vsel %vm963_vm4, %v6642_v55, %v1852_v49  ;;  %v6644_v49 = vld [vmem:[#allocation40_spill] sm:$0xff] }
 0x178   : > { %v1164_v0 = vshrl.u32 %v1059_v14, 16  ;;  %v1167_v50 = vshll.u32 %v1059_v14, 16  ;;  %2811 = vrot.lane.b32.xlu0 %v2802_v22, %s4524_s23  ;;  %v1290_v5 = vor.u32 %v1289_v27, %v1286_v19 }
 0x179   : > { %2817 = vrot.lane.b32.xlu1 %v2808_v44, %s4524_s23 }
 0x17a   : > { %v1166_v25 = vrot.slane %v1164_v0, 3  ;;  %v1169_v26 = vrot.slane %v1167_v50, 4  ;;  %v1850_v8 = vpop.permute.xlu0 %1849  ;;  %v1291_v60 = vsel %vm1092_vm6, %v5921_v21, %v1290_v5  ;;  %v833_v11 = vpop.permute.xlu1 %832 }
 0x17b   : > { %v2002_v17 = vsel %vm963_vm4, %v6641_v57, %v1850_v8  ;;  %4058 = vmatmul.mubr.msk.bf16.gmra.mrb[20].mxu1 %vm1297_vm7, %v1291_v60  ;;  %v999_v1 = vsel %vm963_vm4, %v5445_v7, %v833_v11 }
 0x17c   : > { %v1170_v35 = vor.u32 %v1169_v26, %v1166_v25  ;;  %v2054_v34 = vsel %vm1039_vm5, %v2002_v17, %v1952_v23  ;;  %2794 = vrot.lane.b32.xlu0 %v2787_v31, %s4525_s25  ;;  %v6643_v23 = vld [vmem:[#allocation34_spill] sm:$0xff] }
 0x17d   : > { %v2106_v58 = vshrl.u32 %v2054_v34, 16  ;;  %v2109_v40 = vshll.u32 %v2054_v34, 16 }
 0x17e   : > { %v1854_v38 = vpop.permute.xlu0 %1853  ;;  %v5955_v37 = vsel %vm1092_vm6, %v5884_v48, %v1170_v35  ;;  %v5958_v20 = vsel %vm1092_vm6, %v1170_v35, %v1178_v32  ;;  %v936_v22 = vpop.permute.xlu1 %935 }
 0x17f   : > { %4029 = vmatprep.mubr.msk.bf16.mxu0 %vm1297_vm7, %v5955_v37  ;;  %v1063_v7 = vsel %vm1039_vm5, %v999_v1, %v936_v22  ;;  %v2108_v56 = vrot.slane %v2106_v58, 3  ;;  %v2111_v19 = vrot.slane %v2109_v40, 4  ;;  %v2006_v0 = vsel %vm963_vm4, %v6643_v23, %v1854_v38 }
 0x180   : > { %2815 = vrot.lane.b32.xlu0 %v2806_v12, %s4524_s23  ;;  %4030 = vmatmul.mubr.msk.bf16.gmra.mrb[16].mxu0 %vm1297_vm7, %v5958_v20  ;;  %v1180_v48 = vshrl.u32 %v1063_v7, 16  ;;  %v1183_v39 = vshll.u32 %v1063_v7, 16 }
 0x181   : > { %v2112_v8 = vor.u32 %v2111_v19, %v2108_v56 }
 0x182   : > { %v1954_v52 = vpop.permute.xlu0 %1953  ;;  %v1182_v27 = vrot.slane %v1180_v48, 3  ;;  %v1185_v14 = vrot.slane %v1183_v39, 4  ;;  %v1858_v3 = vpop.permute.xlu1 %1857  ;;  %v6645_v48 = vld [vmem:[#allocation35_spill] sm:$0xff] }
 0x183   : > { %v2056_v41 = vsel %vm1039_vm5, %v2004_v2, %v1954_v52  ;;  %v2010_v26 = vsel %vm963_vm4, %v6644_v49, %v1858_v3 }
 0x184   : > { %v2113_v44 = vshrl.u32 %v2056_v41, 16  ;;  %v2116_v43 = vshll.u32 %v2056_v41, 16  ;;  %v1186_v50 = vor.u32 %v1185_v14, %v1182_v27 }
 0x186   : > { %v2115_v5 = vrot.slane %v2113_v44, 3  ;;  %v2118_v31 = vrot.slane %v2116_v43, 4  ;;  %v1956_v25 = vpop.permute.xlu0 %1955  ;;  %v5975_v11 = vsel %vm1092_vm6, %v1178_v32, %v1186_v50  ;;  %v1960_v34 = vpop.permute.xlu1 %1959  ;;  %v5981_v12 = vsel %vm1092_vm6, %v1186_v50, %v5567_v16 }
 0x187   : > { %v2058_v57 = vsel %vm1039_vm5, %v2006_v0, %v1956_v25  ;;  %4033 = vmatprep.mubr.msk.bf16.mxu0 %vm1297_vm7, %v5975_v11  ;;  %v2062_v1 = vsel %vm1039_vm5, %v2010_v26, %v1960_v34  ;;  %v6646_v0 = vld [vmem:[#allocation44_spill] sm:$0xff] }
 0x188   : > { %v2119_v17 = vor.u32 %v2118_v31, %v2115_v5  ;;  %v2121_v60 = vshrl.u32 %v2058_v57, 16  ;;  %v2124_v35 = vshll.u32 %v2058_v57, 16  ;;  %4034 = vmatmul.mubr.msk.bf16.gmra.mrb[20].mxu0 %vm1297_vm7, %v5981_v12  ;;  %v2137_v7 = vshrl.u32 %v2062_v1, 16 }
 0x189   : > { %v2140_v55 = vshll.u32 %v2062_v1, 16 }
 0x18a   : > { %v2123_v38 = vrot.slane %v2121_v60, 3  ;;  %v2126_v58 = vrot.slane %v2124_v35, 4  ;;  %v1856_v40 = vpop.permute.xlu0 %1855  ;;  %v2120_v22 = vsel %vm1092_vm6, %v2112_v8, %v2119_v17  ;;  %v2810_v2 = vpop.permute.xlu1 %2809  ;;  %v2139_v19 = vrot.slane %v2137_v7, 3  ;;  %v6647_v7 = vld [vmem:[#allocation41_spill] sm:$0xff] }
 0x18b   : > { %4063 = vmatprep.mubr.msk.bf16.mxu1 %vm1297_vm7, %v2120_v22  ;;  %v2008_v16 = vsel %vm963_vm4, %v6645_v48, %v1856_v40  ;;  %v2142_v41 = vrot.slane %v2140_v55, 4  ;;  %v6648_v48 = vld [vmem:[#allocation48_spill] sm:$0xff] }
 0x18c   : > { %v2127_v32 = vor.u32 %v2126_v58, %v2123_v38 }
 0x18d   : > { %v2143_v31 = vor.u32 %v2142_v41, %v2139_v19 }
 0x18e   : > { %v1958_v39 = vpop.permute.xlu0 %1957  ;;  %v2128_v52 = vsel %vm1092_vm6, %v2119_v17, %v2127_v32  ;;  %v1862_v44 = vpop.permute.xlu1 %1861 }
 0x18f   : > { %v2060_v56 = vsel %vm1039_vm5, %v2008_v16, %v1958_v39  ;;  %4064 = vmatmul.mubr.msk.bf16.vlgmr.msra.gmra.mrb[24].mxu1 %vm1297_vm7, %v2128_v52  ;;  %v2014_v50 = vsel %vm963_vm4, %v6646_v0, %v1862_v44 }
 0x190   : > { %v2129_v27 = vshrl.u32 %v2060_v56, 16  ;;  %v2132_v14 = vshll.u32 %v2060_v56, 16 }
 0x192   : > { %v2131_v43 = vrot.slane %v2129_v27, 3  ;;  %v2134_v3 = vrot.slane %v2132_v14, 4  ;;  %v2789_v23 = vpop.permute.xlu0 %2788  ;;  %v1964_v26 = vpop.permute.xlu1 %1963 }
 0x193   : > { %v2820_v5 = vsel %vm963_vm4, %v5262_v42, %v2789_v23  ;;  %v2066_v17 = vsel %vm1039_vm5, %v2014_v50, %v1964_v26 }
 0x194   : > { %v2135_v25 = vor.u32 %v2134_v3, %v2131_v43  ;;  %v2832_v49 = vsel %vm1039_vm5, %v2820_v5, %v2810_v2  ;;  %v2153_v58 = vshrl.u32 %v2066_v17, 16  ;;  %v2156_v42 = vshll.u32 %v2066_v17, 16 }
 0x195   : > { %v2844_v8 = vshrl.u32 %v2832_v49, 16  ;;  %v2847_v57 = vshll.u32 %v2832_v49, 16 }
 0x196   : > { %v1860_v60 = vpop.permute.xlu0 %1859  ;;  %v2136_v35 = vsel %vm1092_vm6, %v2127_v32, %v2135_v25  ;;  %v2144_v34 = vsel %vm1092_vm6, %v2135_v25, %v2143_v31  ;;  %v1866_v40 = vpop.permute.xlu1 %1865  ;;  %v2155_v52 = vrot.slane %v2153_v58, 3  ;;  %v2158_v56 = vrot.slane %v2156_v42, 4  ;;  %v6649_v25 = vld [vmem:[#allocation45_spill] sm:$0xff] }
 0x197   : > { %v2846_v1 = vrot.slane %v2844_v8, 3  ;;  %v2849_v38 = vrot.slane %v2847_v57, 4  ;;  %4067 = vmatprep.mubr.msk.bf16.mxu1 %vm1297_vm7, %v2136_v35  ;;  %v2012_v55 = vsel %vm963_vm4, %v6647_v7, %v1860_v60  ;;  %v2018_v16 = vsel %vm963_vm4, %v6648_v48, %v1866_v40 }
 0x198   : > { %4068 = vmatmul.mubr.msk.bf16.gmra.mrb[28].mxu1 %vm1297_vm7, %v2144_v34  ;;  %v2159_v23 = vor.u32 %v2158_v56, %v2155_v52 }
 0x199   : > { %v2850_v22 = vor.u32 %v2849_v38, %v2846_v1 }
 0x19a   : > { %v1962_v2 = vpop.permute.xlu0 %1961  ;;  %v1968_v27 = vpop.permute.xlu1 %1967 }
 0x19b   : > { %v2064_v32 = vsel %vm1039_vm5, %v2012_v55, %v1962_v2  ;;  %v2851_v39 = vsel %vm1092_vm6, %v2850_v22, %v5721_v15  ;;  %v2070_v14 = vsel %vm1039_vm5, %v2018_v16, %v1968_v27  ;;  %v6651_v16 = vld [vmem:[#allocation49_spill] sm:$0xff] }
 0x19c   : > { %v2145_v19 = vshrl.u32 %v2064_v32, 16  ;;  %v2148_v41 = vshll.u32 %v2064_v32, 16  ;;  %4113 = vmatprep.mubr.msk.bf16.mxu0 %vm1297_vm7, %v2851_v39  ;;  %v2169_v0 = vshrl.u32 %v2070_v14, 16  ;;  %v2172_v50 = vshll.u32 %v2070_v14, 16 }
 0x19d   : > { %4114 = vmatmul.mubr.msk.bf16.vlgmr.msra.gmra.mrb[24].mxu0 %vm1297_vm7, %v5822_v46  ;;  %v6650_v46 = vld [vmem:[#allocation22_spill] sm:$0xff] }
 0x19e   : > { %v2147_v44 = vrot.slane %v2145_v19, 3  ;;  %v2150_v43 = vrot.slane %v2148_v41, 4  ;;  %v1864_v3 = vpop.permute.xlu0 %1863  ;;  %4117 = vmatprep.mubr.msk.bf16.mxu0 %vm1297_vm7, %v5826_v36  ;;  %v1870_v5 = vpop.permute.xlu1 %1869  ;;  %v2171_v36 = vrot.slane %v2169_v0, 3  ;;  %v2174_v35 = vrot.slane %v2172_v50, 4 }
 0x19f   : > { %v2016_v49 = vsel %vm963_vm4, %v6649_v25, %v1864_v3  ;;  %v2022_v57 = vsel %vm963_vm4, %v6650_v46, %v1870_v5 }
 0x1a0   : > { %v2151_v15 = vor.u32 %v2150_v43, %v2147_v44  ;;  %v2175_v22 = vor.u32 %v2174_v35, %v2171_v36 }
 0x1a2   : > { %v1966_v26 = vpop.permute.xlu0 %1965  ;;  %v2152_v8 = vsel %vm1092_vm6, %v2143_v31, %v2151_v15  ;;  %v2160_v17 = vsel %vm1092_vm6, %v2151_v15, %v2159_v23 }
 0x1a3   : > { %v2068_v60 = vsel %vm1039_vm5, %v2016_v49, %v1966_v26  ;;  %4071 = vmatprep.mubr.msk.bf16.mxu1 %vm1297_vm7, %v2152_v8  ;;  %v1972_v38 = vpop.permute.xlu1 %1971  ;;  %v6653_v8 = vld [vmem:[#allocation18_spill] sm:$0xff] }
 0x1a4   : > { %v2161_v34 = vshrl.u32 %v2068_v60, 16  ;;  %v2164_v1 = vshll.u32 %v2068_v60, 16  ;;  %4072 = vmatmul.mubr.msk.bf16.gmra.mrb[32].mxu1 %vm1297_vm7, %v2160_v17  ;;  %v2074_v31 = vsel %vm1039_vm5, %v2022_v57, %v1972_v38 }
 0x1a5   : > { %4118 = vmatmul.mubr.msk.bf16.gmra.mrb[28].mxu0 %vm1297_vm7, %v5898_v10  ;;  %v2185_v55 = vshrl.u32 %v2074_v31, 16  ;;  %v2188_v2 = vshll.u32 %v2074_v31, 16  ;;  %v6652_v10 = vld [vmem:[#allocation19_spill] sm:$0xff] }
 0x1a6   : > { %v2163_v58 = vrot.slane %v2161_v34, 3  ;;  %v2166_v42 = vrot.slane %v2164_v1, 4  ;;  %v1868_v40 = vpop.permute.xlu0 %1867  ;;  %4121 = vmatprep.mubr.msk.bf16.mxu0 %vm1297_vm7, %v5902_v18 }
 0x1a7   : > { %v1874_v48 = vpop.permute.xlu1 %1873  ;;  %v2020_v32 = vsel %vm963_vm4, %v6651_v16, %v1868_v40  ;;  %v2187_v18 = vrot.slane %v2185_v55, 3  ;;  %v2190_v27 = vrot.slane %v2188_v2, 4 }
 0x1a8   : > { %v2167_v7 = vor.u32 %v2166_v42, %v2163_v58  ;;  %v2026_v56 = vsel %vm963_vm4, %v6652_v10, %v1874_v48 }
 0x1a9   : > { %v2191_v50 = vor.u32 %v2190_v27, %v2187_v18 }
 0x1aa   : > { %v1970_v39 = vpop.permute.xlu0 %1969  ;;  %v2168_v52 = vsel %vm1092_vm6, %v2159_v23, %v2167_v7  ;;  %v2176_v19 = vsel %vm1092_vm6, %v2167_v7, %v2175_v22 }
 0x1ab   : > { %v2072_v41 = vsel %vm1039_vm5, %v2020_v32, %v1970_v39  ;;  %4075 = vmatprep.mubr.msk.bf16.mxu1 %vm1297_vm7, %v2168_v52  ;;  %v1976_v43 = vpop.permute.xlu1 %1975  ;;  %v6655_v32 = vld [vmem:[#allocation25_spill] sm:$0xff] }
 0x1ac   : > { %v2177_v14 = vshrl.u32 %v2072_v41, 16  ;;  %v2180_v44 = vshll.u32 %v2072_v41, 16  ;;  %4076 = vmatmul.mubr.msk.bf16.gmra.mrb[36].mxu1 %vm1297_vm7, %v2176_v19  ;;  %v2078_v3 = vsel %vm1039_vm5, %v2026_v56, %v1976_v43 }
 0x1ad   : > { %4122 = vmatmul.mubr.msk.bf16.gmra.mrb[32].mxu0 %vm1297_vm7, %v5955_v37  ;;  %v2201_v25 = vshrl.u32 %v2078_v3, 16  ;;  %v2204_v49 = vshll.u32 %v2078_v3, 16  ;;  %v6654_v37 = vld [vmem:[#allocation26_spill] sm:$0xff] }
 0x1ae   : > { %v2179_v23 = vrot.slane %v2177_v14, 3  ;;  %v2182_v15 = vrot.slane %v2180_v44, 4  ;;  %v1872_v0 = vpop.permute.xlu0 %1871  ;;  %4125 = vmatprep.mubr.msk.bf16.mxu0 %vm1297_vm7, %v5958_v20 }
 0x1af   : > { %v1878_v26 = vpop.permute.xlu1 %1877  ;;  %v2024_v46 = vsel %vm963_vm4, %v6653_v8, %v1872_v0  ;;  %v2203_v20 = vrot.slane %v2201_v25, 3  ;;  %v2206_v34 = vrot.slane %v2204_v49, 4 }
 0x1b0   : > { %v2183_v5 = vor.u32 %v2182_v15, %v2179_v23  ;;  %v2030_v60 = vsel %vm963_vm4, %v6654_v37, %v1878_v26  ;;  %v6657_v26 = vld [vmem:[#allocation27_spill] sm:$0xff] }
 0x1b1   : > { %v2207_v7 = vor.u32 %v2206_v34, %v2203_v20 }
 0x1b2   : > { %v1974_v57 = vpop.permute.xlu0 %1973  ;;  %v2184_v17 = vsel %vm1092_vm6, %v2175_v22, %v2183_v5  ;;  %v2192_v36 = vsel %vm1092_vm6, %v2183_v5, %v2191_v50 }
 0x1b3   : > { %v2076_v35 = vsel %vm1039_vm5, %v2024_v46, %v1974_v57  ;;  %4079 = vmatprep.mubr.msk.bf16.mxu1 %vm1297_vm7, %v2184_v17  ;;  %v1980_v31 = vpop.permute.xlu1 %1979 }
 0x1b4   : > { %v2193_v1 = vshrl.u32 %v2076_v35, 16  ;;  %v2196_v38 = vshll.u32 %v2076_v35, 16  ;;  %4080 = vmatmul.mubr.msk.bf16.gmra.mrb[40].mxu1 %vm1297_vm7, %v2192_v36  ;;  %v2082_v58 = vsel %vm1039_vm5, %v2030_v60, %v1980_v31 }
 0x1b5   : > { %4126 = vmatmul.mubr.msk.bf16.gmra.mrb[36].mxu0 %vm1297_vm7, %v5975_v11  ;;  %v2217_v2 = vshrl.u32 %v2082_v58, 16  ;;  %v2220_v48 = vshll.u32 %v2082_v58, 16  ;;  %v6656_v11 = vld [vmem:[#allocation32_spill] sm:$0xff] }
 0x1b6   : > { %v2195_v42 = vrot.slane %v2193_v1, 3  ;;  %v2198_v40 = vrot.slane %v2196_v38, 4  ;;  %v1876_v22 = vpop.permute.xlu0 %1875  ;;  %4129 = vmatprep.mubr.msk.bf16.mxu0 %vm1297_vm7, %v5981_v12 }
 0x1b7   : > { %v1882_v16 = vpop.permute.xlu1 %1881  ;;  %v2028_v39 = vsel %vm963_vm4, %v6655_v32, %v1876_v22  ;;  %v2219_v12 = vrot.slane %v2217_v2, 3  ;;  %v2222_v18 = vrot.slane %v2220_v48, 4  ;;  %v6659_v2 = vld [vmem:[#allocation33_spill] sm:$0xff] }
 0x1b8   : > { %v2199_v55 = vor.u32 %v2198_v40, %v2195_v42  ;;  %v2034_v56 = vsel %vm963_vm4, %v6656_v11, %v1882_v16 }
 0x1b9   : > { %v2223_v0 = vor.u32 %v2222_v18, %v2219_v12 }
 0x1ba   : > { %v1978_v52 = vpop.permute.xlu0 %1977  ;;  %v2200_v10 = vsel %vm1092_vm6, %v2191_v50, %v2199_v55  ;;  %v2208_v19 = vsel %vm1092_vm6, %v2199_v55, %v2207_v7 }
 0x1bb   : > { %v2080_v41 = vsel %vm1039_vm5, %v2028_v39, %v1978_v52  ;;  %4083 = vmatprep.mubr.msk.bf16.mxu1 %vm1297_vm7, %v2200_v10  ;;  %v1984_v44 = vpop.permute.xlu1 %1983 }
 0x1bc   : > { %v2209_v27 = vshrl.u32 %v2080_v41, 16  ;;  %v2212_v14 = vshll.u32 %v2080_v41, 16  ;;  %4084 = vmatmul.mubr.msk.bf16.gmra.mrb[44].mxu1 %vm1297_vm7, %v2208_v19  ;;  %v2086_v43 = vsel %vm1039_vm5, %v2034_v56, %v1984_v44 }
 0x1bd   : > { %4130 = vmatmul.mubr.msk.bf16.gmra.mrb[40].mxu0 %vm1297_vm7, %v5588_v9  ;;  %v2233_v5 = vshrl.u32 %v2086_v43, 16  ;;  %v2236_v25 = vshll.u32 %v2086_v43, 16  ;;  %v6658_v9 = vld [vmem:[#allocation37_spill] sm:$0xff] }
 0x1be   : > { %v2211_v3 = vrot.slane %v2209_v27, 3  ;;  %v2214_v23 = vrot.slane %v2212_v14, 4  ;;  %v1880_v15 = vpop.permute.xlu0 %1879  ;;  %4133 = vmatprep.mubr.msk.bf16.mxu0 %vm1297_vm7, %v5595_v54 }
 0x1bf   : > { %v1886_v49 = vpop.permute.xlu1 %1885  ;;  %v2032_v8 = vsel %vm963_vm4, %v6657_v26, %v1880_v15  ;;  %v2235_v54 = vrot.slane %v2233_v5, 3  ;;  %v2238_v36 = vrot.slane %v2236_v25, 4 }
 0x1c0   : > { %v2215_v50 = vor.u32 %v2214_v23, %v2211_v3  ;;  %v2038_v17 = vsel %vm963_vm4, %v6658_v9, %v1886_v49 }
 0x1c1   : > { %v2239_v42 = vor.u32 %v2238_v36, %v2235_v54 }
 0x1c2   : > { %v1982_v46 = vpop.permute.xlu0 %1981  ;;  %v2216_v57 = vsel %vm1092_vm6, %v2207_v7, %v2215_v50  ;;  %v2224_v37 = vsel %vm1092_vm6, %v2215_v50, %v2223_v0 }
 0x1c3   : > { %v2084_v60 = vsel %vm1039_vm5, %v2032_v8, %v1982_v46  ;;  %4087 = vmatprep.mubr.msk.bf16.mxu1 %vm1297_vm7, %v2216_v57  ;;  %v1988_v34 = vpop.permute.xlu1 %1987 }
 0x1c4   : > { %v2225_v35 = vshrl.u32 %v2084_v60, 16  ;;  %v2228_v20 = vshll.u32 %v2084_v60, 16  ;;  %4088 = vmatmul.mubr.msk.bf16.gmra.mrb[48].mxu1 %vm1297_vm7, %v2224_v37  ;;  %v2090_v1 = vsel %vm1039_vm5, %v2038_v17, %v1988_v34 }
 0x1c5   : > { %4134 = vmatmul.mubr.msk.bf16.gmra.mrb[44].mxu0 %vm1297_vm7, %v5610_v28  ;;  %v2249_v22 = vshrl.u32 %v2090_v1, 16  ;;  %v2252_v7 = vshll.u32 %v2090_v1, 16  ;;  %v6660_v28 = vld [vmem:[#allocation42_spill] sm:$0xff] }
 0x1c6   : > { %v2227_v38 = vrot.slane %v2225_v35, 3  ;;  %v2230_v31 = vrot.slane %v2228_v20, 4  ;;  %v1884_v58 = vpop.permute.xlu0 %1883  ;;  %4137 = vmatprep.mubr.msk.bf16.mxu0 %vm1297_vm7, %v5637_v51  ;;  %v3804_v35 = vcombine.low %v5750_v53, %v5750_v53 }
 0x1c7   : > { %v1890_v55 = vpop.permute.xlu1 %1889  ;;  %v2036_v48 = vsel %vm963_vm4, %v6659_v2, %v1884_v58  ;;  %v2251_v51 = vrot.slane %v2249_v22, 3  ;;  %v2254_v11 = vrot.slane %v2252_v7, 4  ;;  %v6663_v58 = vld [vmem:[#allocation43_spill] sm:$0xff] }
 0x1c8   : > { %v2231_v40 = vor.u32 %v2230_v31, %v2227_v38  ;;  %v2042_v39 = vsel %vm963_vm4, %v6660_v28, %v1890_v55 }
 0x1c9   : > { %v2255_v44 = vor.u32 %v2254_v11, %v2251_v51 }
 0x1ca   : > { %v1986_v16 = vpop.permute.xlu0 %1985  ;;  %v2232_v32 = vsel %vm1092_vm6, %v2223_v0, %v2231_v40  ;;  %v2240_v52 = vsel %vm1092_vm6, %v2231_v40, %v2239_v42  ;;  %v6661_v0 = vld [vmem:[#allocation39_spill] sm:$0xff] }
 0x1cb   : > { %v2088_v10 = vsel %vm1039_vm5, %v2036_v48, %v1986_v16  ;;  %4091 = vmatprep.mubr.msk.bf16.mxu1 %vm1297_vm7, %v2232_v32  ;;  %v1992_v41 = vpop.permute.xlu1 %1991 }
 0x1cc   : > { %v2241_v56 = vshrl.u32 %v2088_v10, 16  ;;  %v2244_v19 = vshll.u32 %v2088_v10, 16  ;;  %4092 = vmatmul.mubr.msk.bf16.gmra.mrb[52].mxu1 %vm1297_vm7, %v2240_v52  ;;  %v2094_v12 = vsel %vm1039_vm5, %v2042_v39, %v1992_v41 }
 0x1cd   : > { %4138 = vmatmul.mubr.msk.bf16.gmra.mrb[48].mxu0 %vm1297_vm7, %v5702_v47  ;;  %v2265_v3 = vshrl.u32 %v2094_v12, 16  ;;  %v2268_v23 = vshll.u32 %v2094_v12, 16  ;;  %v6662_v47 = vld [vmem:[#allocation47_spill] sm:$0xff] }
 0x1ce   : > { %v2243_v18 = vrot.slane %v2241_v56, 3  ;;  %v2246_v27 = vrot.slane %v2244_v19, 4  ;;  %v1888_v14 = vpop.permute.xlu0 %1887  ;;  %4141 = vmatprep.mubr.msk.bf16.mxu0 %vm1297_vm7, %v5716_v62 }
 0x1cf   : > { %v1894_v15 = vpop.permute.xlu1 %1893  ;;  %v2040_v50 = vsel %vm963_vm4, %v6661_v0, %v1888_v14  ;;  %v2267_v62 = vrot.slane %v2265_v3, 3  ;;  %v2270_v46 = vrot.slane %v2268_v23, 4 }
 0x1d0   : > { %v2247_v43 = vor.u32 %v2246_v27, %v2243_v18  ;;  %v2046_v49 = vsel %vm963_vm4, %v6662_v47, %v1894_v15 }
 0x1d1   : > { %v2271_v20 = vor.u32 %v2270_v46, %v2267_v62 }
 0x1d2   : > { %v1990_v5 = vpop.permute.xlu0 %1989  ;;  %v2248_v25 = vsel %vm1092_vm6, %v2239_v42, %v2247_v43  ;;  %v2256_v26 = vsel %vm1092_vm6, %v2247_v43, %v2255_v44 }
 0x1d3   : > { %v2092_v8 = vsel %vm1039_vm5, %v2040_v50, %v1990_v5  ;;  %4095 = vmatprep.mubr.msk.bf16.mxu1 %vm1297_vm7, %v2248_v25  ;;  %v1996_v17 = vpop.permute.xlu1 %1995  ;;  %v3834_v50 = vcombine.low %v5847_v59, %v5847_v59 }
 0x1d4   : > { %v2257_v57 = vshrl.u32 %v2092_v8, 16  ;;  %v2260_v9 = vshll.u32 %v2092_v8, 16  ;;  %4096 = vmatmul.mubr.msk.bf16.gmra.mrb[56].mxu1 %vm1297_vm7, %v2256_v26  ;;  %v2098_v37 = vsel %vm1039_vm5, %v2046_v49, %v1996_v17 }
 0x1d5   : > { %4142 = vmatmul.mubr.msk.bf16.gmra.mrb[52].mxu0 %vm1297_vm7, %v5768_v13  ;;  %v2281_v1 = vshrl.u32 %v2098_v37, 16  ;;  %v2284_v38 = vshll.u32 %v2098_v37, 16 }
 0x1d6   : > { %v2259_v60 = vrot.slane %v2257_v57, 3  ;;  %v2262_v54 = vrot.slane %v2260_v9, 4  ;;  %v1892_v36 = vpop.permute.xlu0 %1891  ;;  %4145 = vmatprep.mubr.msk.bf16.mxu0 %vm1297_vm7, %v5793_v45 }
 0x1d7   : > { %v1898_v31 = vpop.permute.xlu1 %1897  ;;  %v2044_v42 = vsel %vm963_vm4, %v6663_v58, %v1892_v36  ;;  %v2283_v53 = vrot.slane %v2281_v1, 3  ;;  %v2286_v55 = vrot.slane %v2284_v38, 4 }
 0x1d8   : > { %v2263_v34 = vor.u32 %v2262_v54, %v2259_v60  ;;  %v2052_v22 = vsel %vm963_vm4, %v3804_v35, %v1898_v31 }
 0x1d9   : > { %v2287_v10 = vor.u32 %v2286_v55, %v2283_v53 }
 0x1da   : > { %v1994_v13 = vpop.permute.xlu0 %1993  ;;  %v2264_v40 = vsel %vm1092_vm6, %v2255_v44, %v2263_v34  ;;  %v2272_v7 = vsel %vm1092_vm6, %v2263_v34, %v2271_v20 }
 0x1db   : > { %v2096_v45 = vsel %vm1039_vm5, %v2044_v42, %v1994_v13  ;;  %4099 = vmatprep.mubr.msk.bf16.mxu1 %vm1297_vm7, %v2264_v40  ;;  %v2000_v16 = vpop.permute.xlu1 %1999 }
 0x1dc   : > { %v2273_v2 = vshrl.u32 %v2096_v45, 16  ;;  %v2276_v48 = vshll.u32 %v2096_v45, 16  ;;  %4100 = vmatmul.mubr.msk.bf16.gmra.mrb[60].mxu1 %vm1297_vm7, %v2272_v7  ;;  %v2102_v32 = vsel %vm1039_vm5, %v2052_v22, %v2000_v16 }
 0x1dd   : > { %4146 = vmatmul.mubr.msk.bf16.gmra.mrb[56].mxu0 %vm1297_vm7, %v5861_v33  ;;  %v2297_v11 = vshrl.u32 %v2102_v32, 16  ;;  %v2300_v56 = vshll.u32 %v2102_v32, 16 }
 0x1de   : > { %v2275_v28 = vrot.slane %v2273_v2, 3  ;;  %v2278_v39 = vrot.slane %v2276_v48, 4  ;;  %v1896_v52 = vpop.permute.xlu0 %1895  ;;  %4149 = vmatprep.mubr.msk.bf16.mxu0 %vm1297_vm7, %v5878_v30 }
 0x1df   : > { %v2793_v19 = vpop.permute.xlu1 %2792  ;;  %v2049_v41 = vsel %vm963_vm4, %v5783_v24, %v1896_v52  ;;  %v2299_v30 = vrot.slane %v2297_v11, 3  ;;  %v2302_v44 = vrot.slane %v2300_v56, 4 }
 0x1e0   : > { %v2279_v51 = vor.u32 %v2278_v39, %v2275_v28  ;;  %v2824_v33 = vsel %vm963_vm4, %v5760_v29, %v2793_v19 }
 0x1e1   : > { %v2303_v5 = vor.u32 %v2302_v44, %v2299_v30 }
 0x1e2   : > { %v1998_v12 = vpop.permute.xlu0 %1997  ;;  %v2280_v18 = vsel %vm1092_vm6, %v2271_v20, %v2279_v51  ;;  %v2288_v27 = vsel %vm1092_vm6, %v2279_v51, %v2287_v10  ;;  %v3833_v20 = vcombine.low %v5781_v63, %v5845_v4 }
 0x1e3   : > { %v2100_v14 = vsel %vm1039_vm5, %v2049_v41, %v1998_v12  ;;  %4103 = vmatprep.mubr.msk.bf16.mxu1 %vm1297_vm7, %v2280_v18  ;;  %v2814_v23 = vpop.permute.xlu1 %2813 }
 0x1e4   : > { %v2289_v43 = vshrl.u32 %v2100_v14, 16  ;;  %v2292_v3 = vshll.u32 %v2100_v14, 16  ;;  %4104 = vmatmul.mubr.msk.bf16.gmra.mrb[64].mxu1 %vm1297_vm7, %v2288_v27  ;;  %v2836_v24 = vsel %vm1039_vm5, %v2824_v33, %v2814_v23 }
 0x1e5   : > { %4150 = vmatmul.mubr.msk.bf16.gmra.mrb[60].mxu0 %vm1297_vm7, %v5930_v61  ;;  %v2860_v47 = vshrl.u32 %v2836_v24, 16  ;;  %v2863_v49 = vshll.u32 %v2836_v24, 16 }
 0x1e6   : > { %v2291_v15 = vrot.slane %v2289_v43, 3  ;;  %v2294_v29 = vrot.slane %v2292_v3, 4  ;;  %v2791_v0 = vpop.permute.xlu0 %2790 }
 0x1e7   : > { %v2797_v26 = vpop.permute.xlu1 %2796  ;;  %v2822_v8 = vsel %vm963_vm4, %v6632_v6, %v2791_v0  ;;  %v2862_v59 = vrot.slane %v2860_v47, 3  ;;  %v2865_v17 = vrot.slane %v2863_v49, 4 }
 0x1e8   : > { %v2295_v25 = vor.u32 %v2294_v29, %v2291_v15  ;;  %v2830_v61 = vsel %vm963_vm4, %v3834_v50, %v2797_v26 }
 0x1e9   : > { %v2866_v1 = vor.u32 %v2865_v17, %v2862_v59 }
 0x1ea   : > { %v2812_v62 = vpop.permute.xlu0 %2811  ;;  %v2296_v46 = vsel %vm1092_vm6, %v2287_v10, %v2295_v25  ;;  %v2304_v57 = vsel %vm1092_vm6, %v2295_v25, %v2303_v5 }
 0x1eb   : > { %v2834_v9 = vsel %vm1039_vm5, %v2822_v8, %v2812_v62  ;;  %4107 = vmatprep.mubr.msk.bf16.mxu1 %vm1297_vm7, %v2296_v46  ;;  %v2818_v54 = vpop.permute.xlu1 %2817 }
 0x1ec   : > { %v2852_v37 = vshrl.u32 %v2834_v9, 16  ;;  %v2855_v60 = vshll.u32 %v2834_v9, 16  ;;  %4108 = vmatmul.mubr.msk.bf16.gmra.mrb[68].mxu1 %vm1297_vm7, %v2304_v57  ;;  %v2840_v6 = vsel %vm1039_vm5, %v2830_v61, %v2818_v54 }
 0x1ed   : > { %v2876_v31 = vshrl.u32 %v2840_v6, 16  ;;  %v2879_v58 = vshll.u32 %v2840_v6, 16 }
 0x1ee   : > { %v2854_v36 = vrot.slane %v2852_v37, 3  ;;  %v2857_v35 = vrot.slane %v2855_v60, 4  ;;  %v2795_v34 = vpop.permute.xlu0 %2794 }
 0x1ef   : > { %v2827_v42 = vsel %vm963_vm4, %v3833_v20, %v2795_v34  ;;  %v2878_v45 = vrot.slane %v2876_v31, 3  ;;  %v2881_v53 = vrot.slane %v2879_v58, 4 }
 0x1f0   : > { %v2858_v38 = vor.u32 %v2857_v35, %v2854_v36 }
 0x1f1   : > { %v2882_v48 = vor.u32 %v2881_v53, %v2878_v45 }
 0x1f2   : > { %v2816_v13 = vpop.permute.xlu0 %2815  ;;  %v2859_v40 = vsel %vm1092_vm6, %v5921_v21, %v2858_v38  ;;  %v2867_v22 = vsel %vm1092_vm6, %v2858_v38, %v2866_v1 }
 0x1f3   : > { %v2838_v7 = vsel %vm1039_vm5, %v2827_v42, %v2816_v13  ;;  %4153 = vmatprep.mubr.msk.bf16.mxu0 %vm1297_vm7, %v2859_v40 }
 0x1f4   : > { %v2868_v63 = vshrl.u32 %v2838_v7, 16  ;;  %v2871_v4 = vshll.u32 %v2838_v7, 16  ;;  %4154 = vmatmul.mubr.msk.bf16.gmra.mrb[64].mxu0 %vm1297_vm7, %v2867_v22 }
 0x1f6   : > { %v2870_v55 = vrot.slane %v2868_v63, 3  ;;  %v2873_v2 = vrot.slane %v2871_v4, 4 }
 0x1f8   : > { %v2874_v16 = vor.u32 %v2873_v2, %v2870_v55 }
 0x1fa   : > { %v2875_v32 = vsel %vm1092_vm6, %v2866_v1, %v2874_v16  ;;  %v2883_v21 = vsel %vm1092_vm6, %v2874_v16, %v2882_v48 }
 0x1fb   : > { %4157 = vmatprep.mubr.msk.bf16.mxu0 %vm1297_vm7, %v2875_v32 }
 0x1fc   : > { %4158 = vmatmul.mubr.msk.bf16.gmra.mrb[68].mxu0 %vm1297_vm7, %v2883_v21 }
 0x203   : > { %v4039_v28 = vpop.f32.mrb[0].mxu1 }
 0x204   : > { %1626 = vst.msk [vmem:[#allocation3 + $0xd0] sm:$0xff] %vm1599_vm8, %v4039_v28  ;;  %v1504_v39 = vpop.f32.mrb[1].mxu1 }
 0x205   : > { %1624 = vst.msk [vmem:[#allocation3 + $0xc0] sm:$0xff] %vm1599_vm8, %v1504_v39  ;;  %v4040_v52 = vpop.f32.mrb[2].mxu1 }
 0x206   : > { %1627 = vst.msk [vmem:[#allocation3 + $0xd8] sm:$0xff] %vm1599_vm8, %v4040_v52  ;;  %v1507_v10 = vpop.f32.mrb[3].mxu1 }
 0x207   : > { %1625 = vst.msk [vmem:[#allocation3 + $0xc8] sm:$0xff] %vm1599_vm8, %v1507_v10 }
 0x20b   : > { %v4043_v51 = vpop.f32.mrb[4].mxu1 }
 0x20c   : > { %1630 = vst.msk [vmem:[#allocation3 + $0xf0] sm:$0xff] %vm1599_vm8, %v4043_v51  ;;  %v1520_v11 = vpop.f32.mrb[5].mxu1 }
 0x20d   : > { %1628 = vst.msk [vmem:[#allocation3 + $0xe0] sm:$0xff] %vm1599_vm8, %v1520_v11  ;;  %v4044_v56 = vpop.f32.mrb[6].mxu1 }
 0x20e   : > { %1631 = vst.msk [vmem:[#allocation3 + $0xf8] sm:$0xff] %vm1599_vm8, %v4044_v56  ;;  %v1523_v19 = vpop.f32.mrb[7].mxu1 }
 0x20f   : > { %1629 = vst.msk [vmem:[#allocation3 + $0xe8] sm:$0xff] %vm1599_vm8, %v1523_v19 }
 0x213   : > { %v4015_v41 = vpop.f32.mrb[0].mxu0 }
 0x214   : > { %1602 = vst.msk [vmem:[#allocation3 + $0x10] sm:$0xff] %vm1599_vm8, %v4015_v41  ;;  %v1408_v12 = vpop.f32.mrb[1].mxu0 }
 0x215   : > { %1600 = vst.msk [vmem:[#allocation3] sm:$0xff] %vm1599_vm8, %v1408_v12  ;;  %v4016_v18 = vpop.f32.mrb[2].mxu0 }
 0x216   : > { %1603 = vst.msk [vmem:[#allocation3 + $0x18] sm:$0xff] %vm1599_vm8, %v4016_v18  ;;  %v1411_v33 = vpop.f32.mrb[3].mxu0 }
 0x217   : > { %1601 = vst.msk [vmem:[#allocation3 + $0x8] sm:$0xff] %vm1599_vm8, %v1411_v33 }
 0x21b   : > { %v2612_v42 = vld [vmem:[#allocation3 + $0x10] sm:$0xff] }
 0x21c   : > { %v2610_v22 = vld [vmem:[#allocation3] sm:$0xff] }
 0x21d   : > { %v2613_v53 = vld [vmem:[#allocation3 + $0x18] sm:$0xff] }
 0x21e   : > { %v4047_v27 = vpop.f32.mrb[8].mxu1  ;;  %v2611_v55 = vld [vmem:[#allocation3 + $0x8] sm:$0xff] }
 0x21f   : > { %1634 = vst.msk [vmem:[#allocation3 + $0x110] sm:$0xff] %vm1599_vm8, %v4047_v27  ;;  %v1536_v14 = vpop.f32.mrb[9].mxu1 }
 0x220   : > { %1632 = vst.msk [vmem:[#allocation3 + $0x100] sm:$0xff] %vm1599_vm8, %v1536_v14  ;;  %v4048_v30 = vpop.f32.mrb[10].mxu1 }
 0x221   : > { %1635 = vst.msk [vmem:[#allocation3 + $0x118] sm:$0xff] %vm1599_vm8, %v4048_v30  ;;  %v1539_v44 = vpop.f32.mrb[11].mxu1 }
 0x222   : > { %1633 = vst.msk [vmem:[#allocation3 + $0x108] sm:$0xff] %vm1599_vm8, %v1539_v44 }
 0x223   : > { %v4019_v43 = vpop.f32.mrb[4].mxu0 }
 0x224   : > { %1606 = vst.msk [vmem:[#allocation3 + $0x30] sm:$0xff] %vm1599_vm8, %v4019_v43  ;;  %v1424_v3 = vpop.f32.mrb[5].mxu0 }
 0x225   : > { %1604 = vst.msk [vmem:[#allocation3 + $0x20] sm:$0xff] %vm1599_vm8, %v1424_v3  ;;  %v4020_v23 = vpop.f32.mrb[6].mxu0 }
 0x226   : > { %1607 = vst.msk [vmem:[#allocation3 + $0x38] sm:$0xff] %vm1599_vm8, %v4020_v23  ;;  %v1427_v24 = vpop.f32.mrb[7].mxu0 }
 0x227   : > { %1605 = vst.msk [vmem:[#allocation3 + $0x28] sm:$0xff] %vm1599_vm8, %v1427_v24 }
 0x22b   : > { %v2616_v16 = vld [vmem:[#allocation3 + $0x30] sm:$0xff] }
 0x22c   : > { %v2614_v28 = vld [vmem:[#allocation3 + $0x20] sm:$0xff] }
 0x22d   : > { %v2617_v10 = vld [vmem:[#allocation3 + $0x38] sm:$0xff] }
 0x22e   : > { %v4051_v15 = vpop.f32.mrb[12].mxu1  ;;  %v2615_v56 = vld [vmem:[#allocation3 + $0x28] sm:$0xff] }
 0x22f   : > { %1638 = vst.msk [vmem:[#allocation3 + $0x130] sm:$0xff] %vm1599_vm8, %v4051_v15  ;;  %v1552_v29 = vpop.f32.mrb[13].mxu1 }
 0x230   : > { %1636 = vst.msk [vmem:[#allocation3 + $0x120] sm:$0xff] %vm1599_vm8, %v1552_v29  ;;  %v4052_v0 = vpop.f32.mrb[14].mxu1 }
 0x231   : > { %1639 = vst.msk [vmem:[#allocation3 + $0x138] sm:$0xff] %vm1599_vm8, %v4052_v0  ;;  %v1555_v50 = vpop.f32.mrb[15].mxu1 }
 0x232   : > { %1637 = vst.msk [vmem:[#allocation3 + $0x128] sm:$0xff] %vm1599_vm8, %v1555_v50 }
 0x233   : > { %v4023_v5 = vpop.f32.mrb[8].mxu0 }
 0x234   : > { %1610 = vst.msk [vmem:[#allocation3 + $0x50] sm:$0xff] %vm1599_vm8, %v4023_v5  ;;  %v1440_v25 = vpop.f32.mrb[9].mxu0 }
 0x235   : > { %1608 = vst.msk [vmem:[#allocation3 + $0x40] sm:$0xff] %vm1599_vm8, %v1440_v25  ;;  %v4024_v47 = vpop.f32.mrb[10].mxu0 }
 0x236   : > { %1611 = vst.msk [vmem:[#allocation3 + $0x58] sm:$0xff] %vm1599_vm8, %v4024_v47  ;;  %v1443_v49 = vpop.f32.mrb[11].mxu0 }
 0x237   : > { %1609 = vst.msk [vmem:[#allocation3 + $0x48] sm:$0xff] %vm1599_vm8, %v1443_v49  ;;  %v6225_v49 = vld [vmem:[#allocation9] ss:$0 sm:$0xff] }
 0x23b   : > { %v2620_v29 = vld [vmem:[#allocation3 + $0x50] sm:$0xff] }
 0x23c   : > { %v2618_v5 = vld [vmem:[#allocation3 + $0x40] sm:$0xff] }
 0x23e   : > { %v4055_v26 = vpop.f32.mrb[16].mxu1 }
 0x23f   : > { %1642 = vst.msk [vmem:[#allocation3 + $0x150] sm:$0xff] %vm1599_vm8, %v4055_v26  ;;  %v1568_v8 = vpop.f32.mrb[17].mxu1 }
 0x240   : > { %1640 = vst.msk [vmem:[#allocation3 + $0x140] sm:$0xff] %vm1599_vm8, %v1568_v8  ;;  %v4056_v62 = vpop.f32.mrb[18].mxu1 }
 0x241   : > { %1643 = vst.msk [vmem:[#allocation3 + $0x158] sm:$0xff] %vm1599_vm8, %v4056_v62  ;;  %v1571_v46 = vpop.f32.mrb[19].mxu1 }
 0x242   : > { %1641 = vst.msk [vmem:[#allocation3 + $0x148] sm:$0xff] %vm1599_vm8, %v1571_v46  ;;  %v2621_v46 = vld [vmem:[#allocation3 + $0x58] sm:$0xff] }
 0x243   : > { %v4027_v61 = vpop.f32.mrb[12].mxu0 }
 0x244   : > { %1614 = vst.msk [vmem:[#allocation3 + $0x70] sm:$0xff] %vm1599_vm8, %v4027_v61  ;;  %v1456_v57 = vpop.f32.mrb[13].mxu0 }
 0x245   : > { %1612 = vst.msk [vmem:[#allocation3 + $0x60] sm:$0xff] %vm1599_vm8, %v1456_v57  ;;  %v4028_v9 = vpop.f32.mrb[14].mxu0 }
 0x246   : > { %1615 = vst.msk [vmem:[#allocation3 + $0x78] sm:$0xff] %vm1599_vm8, %v4028_v9  ;;  %v1459_v59 = vpop.f32.mrb[15].mxu0 }
 0x247   : > { %1613 = vst.msk [vmem:[#allocation3 + $0x68] sm:$0xff] %vm1599_vm8, %v1459_v59 }
 0x24e   : > { %v4059_v17 = vpop.f32.mrb[20].mxu1 }
 0x24f   : > { %1646 = vst.msk [vmem:[#allocation3 + $0x170] sm:$0xff] %vm1599_vm8, %v4059_v17  ;;  %v1584_v37 = vpop.f32.mrb[21].mxu1 }
 0x250   : > { %1644 = vst.msk [vmem:[#allocation3 + $0x160] sm:$0xff] %vm1599_vm8, %v1584_v37  ;;  %v4060_v60 = vpop.f32.mrb[22].mxu1  ;;  %v2619_v37 = vld [vmem:[#allocation3 + $0x48] sm:$0xff] }
 0x251   : > { %1647 = vst.msk [vmem:[#allocation3 + $0x178] sm:$0xff] %vm1599_vm8, %v4060_v60  ;;  %v1587_v54 = vpop.f32.mrb[23].mxu1 }
 0x252   : > { %1645 = vst.msk [vmem:[#allocation3 + $0x168] sm:$0xff] %vm1599_vm8, %v1587_v54 }
 0x253   : > { %v4031_v6 = vpop.f32.mrb[16].mxu0 }
 0x254   : > { %1618 = vst.msk [vmem:[#allocation3 + $0x90] sm:$0xff] %vm1599_vm8, %v4031_v6  ;;  %v1472_v36 = vpop.f32.mrb[17].mxu0 }
 0x255   : > { %1616 = vst.msk [vmem:[#allocation3 + $0x80] sm:$0xff] %vm1599_vm8, %v1472_v36  ;;  %v4032_v35 = vpop.f32.mrb[18].mxu0  ;;  %v6228_v36 = vld [vmem:[#allocation10] ss:$0 sm:$0xff] }
 0x256   : > { %1619 = vst.msk [vmem:[#allocation3 + $0x98] sm:$0xff] %vm1599_vm8, %v4032_v35  ;;  %v1475_v20 = vpop.f32.mrb[19].mxu0 }
 0x257   : > { %1617 = vst.msk [vmem:[#allocation3 + $0x88] sm:$0xff] %vm1599_vm8, %v1475_v20 }
 0x25b   : > { %v4035_v34 = vpop.f32.mrb[20].mxu0 }
 0x25c   : > { %1622 = vst.msk [vmem:[#allocation3 + $0xb0] sm:$0xff] %vm1599_vm8, %v4035_v34  ;;  %v1488_v1 = vpop.f32.mrb[21].mxu0 }
 0x25d   : > { %1620 = vst.msk [vmem:[#allocation3 + $0xa0] sm:$0xff] %vm1599_vm8, %v1488_v1  ;;  %v4036_v38 = vpop.f32.mrb[22].mxu0 }
 0x25e   : > { %1623 = vst.msk [vmem:[#allocation3 + $0xb8] sm:$0xff] %vm1599_vm8, %v4036_v38  ;;  %v1491_v31 = vpop.f32.mrb[23].mxu0 }
 0x25f   : > { %1621 = vst.msk [vmem:[#allocation3 + $0xa8] sm:$0xff] %vm1599_vm8, %v1491_v31 }
 0x262   : > { %v4065_v58 = vpop.f32.mrb[24].mxu1 }
 0x263   : > { %v2660_v13 = vadd.f32 %v4065_v58, %v2612_v42  ;;  %v2419_v40 = vpop.f32.mrb[25].mxu1 }
 0x264   : > { %v2658_v7 = vadd.f32 %v2610_v22, %v2419_v40  ;;  %v4066_v45 = vpop.f32.mrb[26].mxu1 }
 0x265   : > { %2708 = vst.msk [vmem:[#allocation3 + $0x10] sm:$0xff] %vm1599_vm8, %v2660_v13  ;;  %v2661_v63 = vadd.f32 %v4066_v45, %v2613_v53  ;;  %v2422_v4 = vpop.f32.mrb[27].mxu1  ;;  %v2624_v53 = vld [vmem:[#allocation3 + $0x70] sm:$0xff] }
 0x266   : > { %2706 = vst.msk [vmem:[#allocation3] sm:$0xff] %vm1599_vm8, %v2658_v7  ;;  %v2659_v2 = vadd.f32 %v2611_v55, %v2422_v4 }
 0x267   : > { %2709 = vst.msk [vmem:[#allocation3 + $0x18] sm:$0xff] %vm1599_vm8, %v2661_v63 }
 0x268   : > { %2707 = vst.msk [vmem:[#allocation3 + $0x8] sm:$0xff] %vm1599_vm8, %v2659_v2 }
 0x26b   : > { %v4069_v48 = vpop.f32.mrb[28].mxu1 }
 0x26c   : > { %v2664_v32 = vadd.f32 %v4069_v48, %v2616_v16  ;;  %v2435_v21 = vpop.f32.mrb[29].mxu1  ;;  %v3134_v12 = vld [vmem:[#allocation3 + $0x10] sm:$0xff]  ;;  %v2622_v48 = vld [vmem:[#allocation3 + $0x60] sm:$0xff] }
 0x26d   : > { %v2662_v39 = vadd.f32 %v2614_v28, %v2435_v21  ;;  %v4070_v52 = vpop.f32.mrb[30].mxu1  ;;  %v3132_v27 = vld [vmem:[#allocation3] sm:$0xff] }
 0x26e   : > { %2712 = vst.msk [vmem:[#allocation3 + $0x30] sm:$0xff] %vm1599_vm8, %v2664_v32  ;;  %v2665_v51 = vadd.f32 %v4070_v52, %v2617_v10  ;;  %v2438_v11 = vpop.f32.mrb[31].mxu1  ;;  %v3135_v44 = vld [vmem:[#allocation3 + $0x18] sm:$0xff] }
 0x26f   : > { %2710 = vst.msk [vmem:[#allocation3 + $0x20] sm:$0xff] %vm1599_vm8, %v2662_v39  ;;  %v2663_v19 = vadd.f32 %v2615_v56, %v2438_v11  ;;  %v3133_v23 = vld [vmem:[#allocation3 + $0x8] sm:$0xff]  ;;  %v2625_v52 = vld [vmem:[#allocation3 + $0x78] sm:$0xff] }
 0x270   : > { %2713 = vst.msk [vmem:[#allocation3 + $0x38] sm:$0xff] %vm1599_vm8, %v2665_v51  ;;  %v4115_v41 = vpop.f32.mrb[24].mxu0 }
 0x271   : > { %2711 = vst.msk [vmem:[#allocation3 + $0x28] sm:$0xff] %vm1599_vm8, %v2663_v19  ;;  %v3182_v18 = vadd.f32 %v4115_v41, %v3134_v12  ;;  %v2941_v33 = vpop.f32.mrb[25].mxu0 }
 0x272   : > { %v3180_v14 = vadd.f32 %v3132_v27, %v2941_v33  ;;  %v4116_v30 = vpop.f32.mrb[26].mxu0  ;;  %v2623_v33 = vld [vmem:[#allocation3 + $0x68] sm:$0xff] }
 0x273   : > { %3230 = vst.msk [vmem:[#allocation3 + $0x10] sm:$0xff] %vm1599_vm8, %v3182_v18  ;;  %v3183_v43 = vadd.f32 %v4116_v30, %v3135_v44  ;;  %v2944_v3 = vpop.f32.mrb[27].mxu0 }
 0x274   : > { %3228 = vst.msk [vmem:[#allocation3] sm:$0xff] %vm1599_vm8, %v3180_v14  ;;  %v3181_v24 = vadd.f32 %v3133_v23, %v2944_v3 }
 0x275   : > { %3231 = vst.msk [vmem:[#allocation3 + $0x18] sm:$0xff] %vm1599_vm8, %v3183_v43  ;;  %v3138_v47 = vld [vmem:[#allocation3 + $0x30] sm:$0xff] }
 0x276   : > { %3229 = vst.msk [vmem:[#allocation3 + $0x8] sm:$0xff] %vm1599_vm8, %v3181_v24  ;;  %v3136_v57 = vld [vmem:[#allocation3 + $0x20] sm:$0xff] }
 0x277   : > { %v4073_v15 = vpop.f32.mrb[32].mxu1  ;;  %v3139_v54 = vld [vmem:[#allocation3 + $0x38] sm:$0xff] }
 0x278   : > { %v2668_v0 = vadd.f32 %v4073_v15, %v2620_v29  ;;  %v2451_v50 = vpop.f32.mrb[33].mxu1  ;;  %v4119_v25 = vpop.f32.mrb[28].mxu0  ;;  %v3137_v1 = vld [vmem:[#allocation3 + $0x28] sm:$0xff] }
 0x279   : > { %v2666_v26 = vadd.f32 %v2618_v5, %v2451_v50  ;;  %v3186_v8 = vadd.f32 %v4119_v25, %v3138_v47  ;;  %v4074_v62 = vpop.f32.mrb[34].mxu1  ;;  %v2957_v61 = vpop.f32.mrb[29].mxu0 }
 0x27a   : > { %2716 = vst.msk [vmem:[#allocation3 + $0x50] sm:$0xff] %vm1599_vm8, %v2668_v0  ;;  %v2669_v9 = vadd.f32 %v4074_v62, %v2621_v46  ;;  %v3184_v59 = vadd.f32 %v3136_v57, %v2957_v61  ;;  %v2454_v17 = vpop.f32.mrb[35].mxu1  ;;  %v4120_v60 = vpop.f32.mrb[30].mxu0  ;;  %v2628_v57 = vld [vmem:[#allocation3 + $0x90] sm:$0xff] }
 0x27b   : > { %v3276_v6 = vld [vmem:[#allocation3] sm:$0xff]  ;;  %2714 = vst.msk [vmem:[#allocation3 + $0x40] sm:$0xff] %vm1599_vm8, %v2666_v26  ;;  %3234 = vst.msk [vmem:[#allocation3 + $0x30] sm:$0xff] %vm1599_vm8, %v3186_v8  ;;  %v2667_v35 = vadd.f32 %v2619_v37, %v2454_v17  ;;  %v3187_v20 = vadd.f32 %v4120_v60, %v3139_v54  ;;  %v2960_v34 = vpop.f32.mrb[31].mxu0 }
 0x27c   : > { %v3315_v38 = vmul.f32 %v6225_v49, %v3276_v6  ;;  %v3278_v31 = vld [vmem:[#allocation3 + $0x18] sm:$0xff]  ;;  %2717 = vst.msk [vmem:[#allocation3 + $0x58] sm:$0xff] %vm1599_vm8, %v2669_v9  ;;  %3232 = vst.msk [vmem:[#allocation3 + $0x20] sm:$0xff] %vm1599_vm8, %v3184_v59  ;;  %v3185_v58 = vadd.f32 %v3137_v1, %v2960_v34  ;;  %v2626_v37 = vld [vmem:[#allocation3 + $0x80] sm:$0xff] }
 0x27d   : > { %v3317_v42 = vmul.f32 %v6225_v49, %v3278_v31  ;;  %v3277_v13 = vld [vmem:[#allocation3 + $0x8] sm:$0xff]  ;;  %2715 = vst.msk [vmem:[#allocation3 + $0x48] sm:$0xff] %vm1599_vm8, %v2667_v35  ;;  %3235 = vst.msk [vmem:[#allocation3 + $0x38] sm:$0xff] %vm1599_vm8, %v3187_v20  ;;  %v2629_v1 = vld [vmem:[#allocation3 + $0x98] sm:$0xff] }
 0x27e   : > { %v3354_v40 = vadd.f32 %v6228_v36, %v3315_v38  ;;  %v3316_v22 = vmul.f32 %v6225_v49, %v3277_v13  ;;  %3233 = vst.msk [vmem:[#allocation3 + $0x28] sm:$0xff] %vm1599_vm8, %v3185_v58 }
 0x27f   : > { %v3356_v7 = vadd.f32 %v6228_v36, %v3317_v42  ;;  %v4077_v45 = vpop.f32.mrb[36].mxu1 }
 0x280   : > { %v3386_v63 = vmax.f32 %v3354_v40, 0.0  ;;  %v3355_v4 = vadd.f32 %v6228_v36, %v3316_v22  ;;  %v2672_v55 = vadd.f32 %v4077_v45, %v2624_v53  ;;  %v2467_v2 = vpop.f32.mrb[37].mxu1  ;;  %v4123_v16 = vpop.f32.mrb[32].mxu0  ;;  %v2627_v22 = vld [vmem:[#allocation3 + $0x88] sm:$0xff] }
 0x281   : > { %v3388_v32 = vmax.f32 %v3356_v7, 0.0  ;;  %v2670_v21 = vadd.f32 %v2622_v48, %v2467_v2  ;;  %v3142_v28 = vld [vmem:[#allocation3 + $0x50] sm:$0xff]  ;;  %v4078_v39 = vpop.f32.mrb[38].mxu1  ;;  %v2973_v10 = vpop.f32.mrb[33].mxu0 }
 0x282   : > { %v3903_v51 = vpack.c.bf16 %v3386_v63, %v3386_v63  ;;  %v3387_v11 = vmax.f32 %v3355_v4, 0.0  ;;  %v3280_v56 = vld [vmem:[#allocation3 + $0x30] sm:$0xff]  ;;  %2720 = vst.msk [vmem:[#allocation3 + $0x70] sm:$0xff] %vm1599_vm8, %v2672_v55  ;;  %v3190_v19 = vadd.f32 %v4123_v16, %v3142_v28  ;;  %v2673_v41 = vadd.f32 %v4078_v39, %v2625_v52  ;;  %v3140_v12 = vld [vmem:[#allocation3 + $0x40] sm:$0xff]  ;;  %v2470_v18 = vpop.f32.mrb[39].mxu1  ;;  %v4124_v27 = vpop.f32.mrb[34].mxu0 }
 0x283   : > { %v3905_v14 = vpack.c.bf16 %v3388_v32, %v3388_v32  ;;  %v3319_v30 = vmul.f32 %v6225_v49, %v3280_v56  ;;  %v3279_v44 = vld [vmem:[#allocation3 + $0x20] sm:$0xff]  ;;  %2718 = vst.msk [vmem:[#allocation3 + $0x60] sm:$0xff] %vm1599_vm8, %v2670_v21  ;;  %v3188_v43 = vadd.f32 %v3140_v12, %v2973_v10  ;;  %v2671_v3 = vadd.f32 %v2623_v33, %v2470_v18  ;;  %v3143_v23 = vld [vmem:[#allocation3 + $0x58] sm:$0xff]  ;;  %v2976_v24 = vpop.f32.mrb[35].mxu0 }
 0x284   : > { %3547 = vst.msk [vmem:[%s6248_s27] sm:$0xf] %vm3546_vm9, %v3903_v51  ;;  %v3904_v15 = vpack.c.bf16 %v3387_v11, %v3387_v11  ;;  %v3318_v29 = vmul.f32 %v6225_v49, %v3279_v44  ;;  %v3281_v0 = vld [vmem:[#allocation3 + $0x38] sm:$0xff]  ;;  %v3191_v50 = vadd.f32 %v4124_v27, %v3143_v23  ;;  %v3141_v5 = vld [vmem:[#allocation3 + $0x48] sm:$0xff]  ;;  %v2632_v51 = vld [vmem:[#allocation3 + $0xb0] sm:$0xff] }
 0x285   : > { %3238 = vst.msk [vmem:[#allocation3 + $0x50] sm:$0xff] %vm1599_vm8, %v3190_v19  ;;  %2721 = vst.msk [vmem:[#allocation3 + $0x78] sm:$0xff] %vm1599_vm8, %v2673_v41  ;;  %v3358_v25 = vadd.f32 %v6228_v36, %v3319_v30  ;;  %v3320_v47 = vmul.f32 %v6225_v49, %v3281_v0  ;;  %v3189_v26 = vadd.f32 %v3141_v5, %v2976_v24  ;;  %v2630_v41 = vld [vmem:[#allocation3 + $0xa0] sm:$0xff]  ;;  %v2633_v30 = vld [vmem:[#allocation3 + $0xb8] sm:$0xff] }
 0x286   : > { %3549 = vst.msk [vmem:[%s6248_s27 + $0x8] sm:$0xf] %vm3546_vm9, %v3905_v14  ;;  %3548 = vst.msk [vmem:[%s6248_s27 + $0x4] sm:$0xf] %vm3546_vm9, %v3904_v15  ;;  %v3357_v8 = vadd.f32 %v6228_v36, %v3318_v29  ;;  %v2631_v29 = vld [vmem:[#allocation3 + $0xa8] sm:$0xff] }
 0x287   : > { %3236 = vst.msk [vmem:[#allocation3 + $0x40] sm:$0xff] %vm1599_vm8, %v3188_v43  ;;  %2719 = vst.msk [vmem:[#allocation3 + $0x68] sm:$0xff] %vm1599_vm8, %v2671_v3  ;;  %v3390_v62 = vmax.f32 %v3358_v25, 0.0  ;;  %v3359_v46 = vadd.f32 %v6228_v36, %v3320_v47  ;;  %v4081_v61 = vpop.f32.mrb[40].mxu1 }
 0x288   : > { %3239 = vst.msk [vmem:[#allocation3 + $0x58] sm:$0xff] %vm1599_vm8, %v3191_v50  ;;  %3237 = vst.msk [vmem:[#allocation3 + $0x48] sm:$0xff] %vm1599_vm8, %v3189_v26  ;;  %v3389_v9 = vmax.f32 %v3357_v8, 0.0  ;;  %v2676_v59 = vadd.f32 %v4081_v61, %v2628_v57  ;;  %v2483_v17 = vpop.f32.mrb[41].mxu1  ;;  %v4127_v60 = vpop.f32.mrb[36].mxu0 }
 0x289   : > { %v3907_v54 = vpack.c.bf16 %v3390_v62, %v3390_v62  ;;  %v3391_v6 = vmax.f32 %v3359_v46, 0.0  ;;  %v2674_v35 = vadd.f32 %v2626_v37, %v2483_v17  ;;  %v3146_v20 = vld [vmem:[#allocation3 + $0x70] sm:$0xff]  ;;  %v4082_v34 = vpop.f32.mrb[42].mxu1  ;;  %v2989_v38 = vpop.f32.mrb[37].mxu0 }
 0x28a   : > { %v3906_v31 = vpack.c.bf16 %v3389_v9, %v3389_v9  ;;  %2724 = vst.msk [vmem:[#allocation3 + $0x90] sm:$0xff] %vm1599_vm8, %v2676_v59  ;;  %v3194_v58 = vadd.f32 %v4127_v60, %v3146_v20  ;;  %v2677_v42 = vadd.f32 %v4082_v34, %v2629_v1  ;;  %v3144_v13 = vld [vmem:[#allocation3 + $0x60] sm:$0xff]  ;;  %v2486_v40 = vpop.f32.mrb[43].mxu1  ;;  %v4128_v7 = vpop.f32.mrb[38].mxu0 }
 0x28b   : > { %3551 = vst.msk [vmem:[%s6248_s27 + $0x10] sm:$0xf] %vm3546_vm9, %v3907_v54  ;;  %v3908_v45 = vpack.c.bf16 %v3391_v6, %v3391_v6  ;;  %v3192_v63 = vadd.f32 %v3144_v13, %v2989_v38  ;;  %v2675_v4 = vadd.f32 %v2627_v22, %v2486_v40  ;;  %v2992_v2 = vpop.f32.mrb[39].mxu0  ;;  %v2634_v38 = vld [vmem:[#allocation3 + $0xc0] sm:$0xff] }
 0x28c   : > { %v3283_v53 = vld [vmem:[#allocation3 + $0x50] sm:$0xff]  ;;  %2722 = vst.msk [vmem:[#allocation3 + $0x80] sm:$0xff] %vm1599_vm8, %v2674_v35  ;;  %v3147_v55 = vld [vmem:[#allocation3 + $0x78] sm:$0xff]  ;;  %3242 = vst.msk [vmem:[#allocation3 + $0x70] sm:$0xff] %vm1599_vm8, %v3194_v58 }
 0x28d   : > { %3550 = vst.msk [vmem:[%s6248_s27 + $0xc] sm:$0xf] %vm3546_vm9, %v3906_v31  ;;  %v3322_v48 = vmul.f32 %v6225_v49, %v3283_v53  ;;  %v3195_v16 = vadd.f32 %v4128_v7, %v3147_v55  ;;  %3552 = vst.msk [vmem:[%s6248_s27 + $0x14] sm:$0xf] %vm3546_vm9, %v3908_v45  ;;  %v2636_v35 = vld [vmem:[#allocation3 + $0xd0] sm:$0xff]  ;;  %v2637_v7 = vld [vmem:[#allocation3 + $0xd8] sm:$0xff] }
 0x28e   : > { %2725 = vst.msk [vmem:[#allocation3 + $0x98] sm:$0xff] %vm1599_vm8, %v2677_v42  ;;  %v3145_v32 = vld [vmem:[#allocation3 + $0x68] sm:$0xff]  ;;  %3240 = vst.msk [vmem:[#allocation3 + $0x60] sm:$0xff] %vm1599_vm8, %v3192_v63 }
 0x28f   : > { %2723 = vst.msk [vmem:[#allocation3 + $0x88] sm:$0xff] %vm1599_vm8, %v2675_v4  ;;  %v3193_v21 = vadd.f32 %v3145_v32, %v2992_v2  ;;  %v3361_v28 = vadd.f32 %v6228_v36, %v3322_v48  ;;  %v3282_v39 = vld [vmem:[#allocation3 + $0x48] sm:$0xff]  ;;  %3243 = vst.msk [vmem:[#allocation3 + $0x78] sm:$0xff] %vm1599_vm8, %v3195_v16  ;;  %v4085_v10 = vpop.f32.mrb[44].mxu1 }
 0x290   : > { %v3321_v52 = vmul.f32 %v6225_v49, %v3282_v39  ;;  %v2680_v56 = vadd.f32 %v4085_v10, %v2632_v51  ;;  %v2499_v19 = vpop.f32.mrb[45].mxu1  ;;  %v4131_v12 = vpop.f32.mrb[40].mxu0  ;;  %v2635_v48 = vld [vmem:[#allocation3 + $0xc8] sm:$0xff] }
 0x291   : > { %3241 = vst.msk [vmem:[#allocation3 + $0x68] sm:$0xff] %vm1599_vm8, %v3193_v21  ;;  %v3393_v11 = vmax.f32 %v3361_v28, 0.0  ;;  %v2678_v33 = vadd.f32 %v2630_v41, %v2499_v19  ;;  %v3150_v27 = vld [vmem:[#allocation3 + $0x90] sm:$0xff]  ;;  %v4086_v14 = vpop.f32.mrb[46].mxu1  ;;  %v3005_v44 = vpop.f32.mrb[41].mxu0 }
 0x292   : > { %v3360_v18 = vadd.f32 %v6228_v36, %v3321_v52  ;;  %2728 = vst.msk [vmem:[#allocation3 + $0xb0] sm:$0xff] %vm1599_vm8, %v2680_v56  ;;  %v3198_v3 = vadd.f32 %v4131_v12, %v3150_v27  ;;  %v2681_v23 = vadd.f32 %v4086_v14, %v2633_v30  ;;  %v2502_v15 = vpop.f32.mrb[47].mxu1  ;;  %v4132_v0 = vpop.f32.mrb[42].mxu0 }
 0x293   : > { %v3910_v43 = vpack.c.bf16 %v3393_v11, %v3393_v11  ;;  %v3148_v24 = vld [vmem:[#allocation3 + $0x80] sm:$0xff]  ;;  %2726 = vst.msk [vmem:[#allocation3 + $0xa0] sm:$0xff] %vm1599_vm8, %v2678_v33  ;;  %v2679_v25 = vadd.f32 %v2631_v29, %v2502_v15  ;;  %v3008_v26 = vpop.f32.mrb[43].mxu0 }
 0x294   : > { %v3392_v50 = vmax.f32 %v3360_v18, 0.0  ;;  %v3196_v5 = vadd.f32 %v3148_v24, %v3005_v44  ;;  %3246 = vst.msk [vmem:[#allocation3 + $0x90] sm:$0xff] %vm1599_vm8, %v3198_v3  ;;  %2729 = vst.msk [vmem:[#allocation3 + $0xb8] sm:$0xff] %vm1599_vm8, %v2681_v23  ;;  %v2640_v23 = vld [vmem:[#allocation3 + $0xf0] sm:$0xff] }
 0x295   : > { %v3151_v47 = vld [vmem:[#allocation3 + $0x98] sm:$0xff]  ;;  %3554 = vst.msk [vmem:[%s6248_s27 + $0x1c] sm:$0xf] %vm3546_vm9, %v3910_v43  ;;  %v3284_v8 = vld [vmem:[#allocation3 + $0x60] sm:$0xff] }
 0x296   : > { %v3199_v62 = vadd.f32 %v4132_v0, %v3151_v47  ;;  %v3149_v46 = vld [vmem:[#allocation3 + $0x88] sm:$0xff]  ;;  %v3909_v61 = vpack.c.bf16 %v3392_v50, %v3392_v50  ;;  %v3323_v57 = vmul.f32 %v6225_v49, %v3284_v8  ;;  %v3286_v9 = vld [vmem:[#allocation3 + $0x78] sm:$0xff]  ;;  %3244 = vst.msk [vmem:[#allocation3 + $0x80] sm:$0xff] %vm1599_vm8, %v3196_v5  ;;  %2727 = vst.msk [vmem:[#allocation3 + $0xa8] sm:$0xff] %vm1599_vm8, %v2679_v25 }
 0x297   : > { %v3197_v59 = vadd.f32 %v3149_v46, %v3008_v26  ;;  %v3325_v17 = vmul.f32 %v6225_v49, %v3286_v9  ;;  %v4089_v6 = vpop.f32.mrb[48].mxu1  ;;  %v2638_v50 = vld [vmem:[#allocation3 + $0xe0] sm:$0xff] }
 0x298   : > { %v3285_v37 = vld [vmem:[#allocation3 + $0x68] sm:$0xff]  ;;  %3247 = vst.msk [vmem:[#allocation3 + $0x98] sm:$0xff] %vm1599_vm8, %v3199_v62  ;;  %v3362_v60 = vadd.f32 %v6228_v36, %v3323_v57  ;;  %v2684_v34 = vadd.f32 %v4089_v6, %v2636_v35  ;;  %v2515_v1 = vpop.f32.mrb[49].mxu1  ;;  %v4135_v31 = vpop.f32.mrb[44].mxu0  ;;  %v2641_v62 = vld [vmem:[#allocation3 + $0xf8] sm:$0xff] }
 0x299   : > { %3553 = vst.msk [vmem:[%s6248_s27 + $0x18] sm:$0xf] %vm3546_vm9, %v3909_v61  ;;  %v3324_v54 = vmul.f32 %v6225_v49, %v3285_v37  ;;  %v3364_v20 = vadd.f32 %v6228_v36, %v3325_v17  ;;  %v2682_v13 = vadd.f32 %v2634_v38, %v2515_v1  ;;  %v3154_v40 = vld [vmem:[#allocation3 + $0xb0] sm:$0xff]  ;;  %v4090_v22 = vpop.f32.mrb[50].mxu1  ;;  %v3021_v45 = vpop.f32.mrb[45].mxu0 }
 0x29a   : > { %3245 = vst.msk [vmem:[#allocation3 + $0x88] sm:$0xff] %vm1599_vm8, %v3197_v59  ;;  %v3394_v58 = vmax.f32 %v3362_v60, 0.0  ;;  %2732 = vst.msk [vmem:[#allocation3 + $0xd0] sm:$0xff] %vm1599_vm8, %v2684_v34  ;;  %v3202_v63 = vadd.f32 %v4135_v31, %v3154_v40  ;;  %v2685_v4 = vadd.f32 %v4090_v22, %v2637_v7  ;;  %v3152_v55 = vld [vmem:[#allocation3 + $0xa0] sm:$0xff]  ;;  %v2518_v2 = vpop.f32.mrb[51].mxu1  ;;  %v4136_v16 = vpop.f32.mrb[46].mxu0 }
 0x29b   : > { %v3363_v42 = vadd.f32 %v6228_v36, %v3324_v54  ;;  %v3396_v53 = vmax.f32 %v3364_v20, 0.0  ;;  %v3288_v28 = vld [vmem:[#allocation3 + $0x90] sm:$0xff]  ;;  %2730 = vst.msk [vmem:[#allocation3 + $0xc0] sm:$0xff] %vm1599_vm8, %v2682_v13  ;;  %v3200_v39 = vadd.f32 %v3152_v55, %v3021_v45  ;;  %v2683_v52 = vadd.f32 %v2635_v48, %v2518_v2  ;;  %v3155_v10 = vld [vmem:[#allocation3 + $0xb8] sm:$0xff]  ;;  %v3024_v51 = vpop.f32.mrb[47].mxu0  ;;  %v2639_v60 = vld [vmem:[#allocation3 + $0xe8] sm:$0xff] }
 0x29c   : > { %v3911_v32 = vpack.c.bf16 %v3394_v58, %v3394_v58  ;;  %v3327_v56 = vmul.f32 %v6225_v49, %v3288_v28  ;;  %3250 = vst.msk [vmem:[#allocation3 + $0xb0] sm:$0xff] %vm1599_vm8, %v3202_v63  ;;  %2733 = vst.msk [vmem:[#allocation3 + $0xd8] sm:$0xff] %vm1599_vm8, %v2685_v4  ;;  %v3203_v41 = vadd.f32 %v4136_v16, %v3155_v10  ;;  %v2644_v63 = vld [vmem:[#allocation3 + $0x110] sm:$0xff]  ;;  %v2642_v48 = vld [vmem:[#allocation3 + $0x100] sm:$0xff] }
 0x29d   : > { %v3395_v21 = vmax.f32 %v3363_v42, 0.0  ;;  %v3913_v11 = vpack.c.bf16 %v3396_v53, %v3396_v53  ;;  %v3287_v19 = vld [vmem:[#allocation3 + $0x80] sm:$0xff]  ;;  %v3153_v12 = vld [vmem:[#allocation3 + $0xa8] sm:$0xff]  ;;  %3248 = vst.msk [vmem:[#allocation3 + $0xa0] sm:$0xff] %vm1599_vm8, %v3200_v39  ;;  %2731 = vst.msk [vmem:[#allocation3 + $0xc8] sm:$0xff] %vm1599_vm8, %v2683_v52 }
 0x29e   : > { %3555 = vst.msk [vmem:[%s6248_s27 + $0x20] sm:$0xf] %vm3546_vm9, %v3911_v32  ;;  %v3326_v33 = vmul.f32 %v6225_v49, %v3287_v19  ;;  %v3201_v14 = vadd.f32 %v3153_v12, %v3024_v51  ;;  %v3366_v30 = vadd.f32 %v6228_v36, %v3327_v56  ;;  %v2645_v52 = vld [vmem:[#allocation3 + $0x118] sm:$0xff]  ;;  %v2643_v12 = vld [vmem:[#allocation3 + $0x108] sm:$0xff] }
 0x29f   : > { %v3912_v18 = vpack.c.bf16 %v3395_v21, %v3395_v21  ;;  %v3289_v27 = vld [vmem:[#allocation3 + $0x98] sm:$0xff]  ;;  %3557 = vst.msk [vmem:[%s6248_s27 + $0x28] sm:$0xf] %vm3546_vm9, %v3913_v11  ;;  %v4093_v3 = vpop.f32.mrb[52].mxu1 }
 0x2a0   : > { %v3328_v44 = vmul.f32 %v6225_v49, %v3289_v27  ;;  %3251 = vst.msk [vmem:[#allocation3 + $0xb8] sm:$0xff] %vm1599_vm8, %v3203_v41  ;;  %v3365_v43 = vadd.f32 %v6228_v36, %v3326_v33  ;;  %3249 = vst.msk [vmem:[#allocation3 + $0xa8] sm:$0xff] %vm1599_vm8, %v3201_v14  ;;  %v3398_v24 = vmax.f32 %v3366_v30, 0.0  ;;  %v2688_v29 = vadd.f32 %v4093_v3, %v2640_v23  ;;  %v2531_v0 = vpop.f32.mrb[53].mxu1  ;;  %v4139_v5 = vpop.f32.mrb[48].mxu0 }
 0x2a1   : > { %3556 = vst.msk [vmem:[%s6248_s27 + $0x24] sm:$0xf] %vm3546_vm9, %v3912_v18  ;;  %v2686_v47 = vadd.f32 %v2638_v50, %v2531_v0  ;;  %v3158_v26 = vld [vmem:[#allocation3 + $0xd0] sm:$0xff]  ;;  %v4094_v8 = vpop.f32.mrb[54].mxu1  ;;  %v3037_v46 = vpop.f32.mrb[49].mxu0 }
 0x2a2   : > { %v3367_v15 = vadd.f32 %v6228_v36, %v3328_v44  ;;  %v3397_v25 = vmax.f32 %v3365_v43, 0.0  ;;  %v3915_v61 = vpack.c.bf16 %v3398_v24, %v3398_v24  ;;  %2736 = vst.msk [vmem:[#allocation3 + $0xf0] sm:$0xff] %vm1599_vm8, %v2688_v29  ;;  %v3206_v9 = vadd.f32 %v4139_v5, %v3158_v26  ;;  %v3156_v17 = vld [vmem:[#allocation3 + $0xc0] sm:$0xff]  ;;  %v2534_v37 = vpop.f32.mrb[55].mxu1  ;;  %v4140_v54 = vpop.f32.mrb[50].mxu0 }
 0x2a3   : > { %v2689_v59 = vadd.f32 %v4094_v8, %v2641_v62  ;;  %v3291_v35 = vld [vmem:[#allocation3 + $0xb0] sm:$0xff]  ;;  %2734 = vst.msk [vmem:[#allocation3 + $0xe0] sm:$0xff] %vm1599_vm8, %v2686_v47  ;;  %v3204_v20 = vadd.f32 %v3156_v17, %v3037_v46  ;;  %v2687_v34 = vadd.f32 %v2639_v60, %v2534_v37  ;;  %v3159_v1 = vld [vmem:[#allocation3 + $0xd8] sm:$0xff]  ;;  %v3040_v38 = vpop.f32.mrb[51].mxu0 }
 0x2a4   : > { %v3399_v57 = vmax.f32 %v3367_v15, 0.0  ;;  %v3914_v6 = vpack.c.bf16 %v3397_v25, %v3397_v25  ;;  %3559 = vst.msk [vmem:[%s6248_s27 + $0x30] sm:$0xf] %vm3546_vm9, %v3915_v61  ;;  %v3330_v58 = vmul.f32 %v6225_v49, %v3291_v35  ;;  %v3207_v42 = vadd.f32 %v4140_v54, %v3159_v1  ;;  %v3157_v13 = vld [vmem:[#allocation3 + $0xc8] sm:$0xff]  ;;  %v2648_v8 = vld [vmem:[#allocation3 + $0x130] sm:$0xff] }
 0x2a5   : > { %3254 = vst.msk [vmem:[#allocation3 + $0xd0] sm:$0xff] %vm1599_vm8, %v3206_v9  ;;  %2737 = vst.msk [vmem:[#allocation3 + $0xf8] sm:$0xff] %vm1599_vm8, %v2689_v59  ;;  %v3205_v40 = vadd.f32 %v3157_v13, %v3040_v38 }
 0x2a6   : > { %v3916_v31 = vpack.c.bf16 %v3399_v57, %v3399_v57  ;;  %3558 = vst.msk [vmem:[%s6248_s27 + $0x2c] sm:$0xf] %vm3546_vm9, %v3914_v6  ;;  %v3369_v22 = vadd.f32 %v6228_v36, %v3330_v58  ;;  %v2646_v57 = vld [vmem:[#allocation3 + $0x120] sm:$0xff]  ;;  %v2649_v6 = vld [vmem:[#allocation3 + $0x138] sm:$0xff]  ;;  %v2647_v58 = vld [vmem:[#allocation3 + $0x128] sm:$0xff] }
 0x2a7   : > { %3252 = vst.msk [vmem:[#allocation3 + $0xc0] sm:$0xff] %vm1599_vm8, %v3204_v20  ;;  %2735 = vst.msk [vmem:[#allocation3 + $0xe8] sm:$0xff] %vm1599_vm8, %v2687_v34  ;;  %v3290_v7 = vld [vmem:[#allocation3 + $0xa8] sm:$0xff]  ;;  %v4097_v53 = vpop.f32.mrb[56].mxu1 }
 0x2a8   : > { %3560 = vst.msk [vmem:[%s6248_s27 + $0x34] sm:$0xf] %vm3546_vm9, %v3916_v31  ;;  %v3329_v45 = vmul.f32 %v6225_v49, %v3290_v7  ;;  %v3401_v4 = vmax.f32 %v3369_v22, 0.0  ;;  %v2692_v55 = vadd.f32 %v4097_v53, %v2644_v63  ;;  %v2547_v2 = vpop.f32.mrb[57].mxu1  ;;  %v4143_v16 = vpop.f32.mrb[52].mxu0 }
 0x2a9   : > { %3255 = vst.msk [vmem:[#allocation3 + $0xd8] sm:$0xff] %vm1599_vm8, %v3207_v42  ;;  %3253 = vst.msk [vmem:[#allocation3 + $0xc8] sm:$0xff] %vm1599_vm8, %v3205_v40  ;;  %v2690_v21 = vadd.f32 %v2642_v48, %v2547_v2  ;;  %v3162_v28 = vld [vmem:[#allocation3 + $0xf0] sm:$0xff]  ;;  %v4098_v39 = vpop.f32.mrb[58].mxu1  ;;  %v3053_v10 = vpop.f32.mrb[53].mxu0 }
 0x2aa   : > { %v3368_v32 = vadd.f32 %v6228_v36, %v3329_v45  ;;  %v3918_v51 = vpack.c.bf16 %v3401_v4, %v3401_v4  ;;  %2740 = vst.msk [vmem:[#allocation3 + $0x110] sm:$0xff] %vm1599_vm8, %v2692_v55  ;;  %v3210_v11 = vadd.f32 %v4143_v16, %v3162_v28  ;;  %v2693_v56 = vadd.f32 %v4098_v39, %v2645_v52  ;;  %v3160_v19 = vld [vmem:[#allocation3 + $0xe0] sm:$0xff]  ;;  %v2550_v41 = vpop.f32.mrb[59].mxu1  ;;  %v4144_v18 = vpop.f32.mrb[54].mxu0 }
 0x2ab   : > { %2738 = vst.msk [vmem:[#allocation3 + $0x100] sm:$0xff] %vm1599_vm8, %v2690_v21  ;;  %v3208_v27 = vadd.f32 %v3160_v19, %v3053_v10  ;;  %v2691_v14 = vadd.f32 %v2643_v12, %v2550_v41  ;;  %v3056_v44 = vpop.f32.mrb[55].mxu0 }
 0x2ac   : > { %v3400_v33 = vmax.f32 %v3368_v32, 0.0  ;;  %v3163_v30 = vld [vmem:[#allocation3 + $0xf8] sm:$0xff]  ;;  %3562 = vst.msk [vmem:[%s6248_s27 + $0x3c] sm:$0xf] %vm3546_vm9, %v3918_v51 }
 0x2ad   : > { %3258 = vst.msk [vmem:[#allocation3 + $0xf0] sm:$0xff] %vm1599_vm8, %v3210_v11  ;;  %2741 = vst.msk [vmem:[#allocation3 + $0x118] sm:$0xff] %vm1599_vm8, %v2693_v56  ;;  %v3211_v3 = vadd.f32 %v4144_v18, %v3163_v30  ;;  %v2652_v56 = vld [vmem:[#allocation3 + $0x150] sm:$0xff] }
 0x2ae   : > { %v3292_v43 = vld [vmem:[#allocation3 + $0xc0] sm:$0xff]  ;;  %v3161_v23 = vld [vmem:[#allocation3 + $0xe8] sm:$0xff]  ;;  %v3917_v24 = vpack.c.bf16 %v3400_v33, %v3400_v33  ;;  %3256 = vst.msk [vmem:[#allocation3 + $0xe0] sm:$0xff] %vm1599_vm8, %v3208_v27  ;;  %2739 = vst.msk [vmem:[#allocation3 + $0x108] sm:$0xff] %vm1599_vm8, %v2691_v14 }
 0x2af   : > { %v3331_v15 = vmul.f32 %v6225_v49, %v3292_v43  ;;  %v3209_v0 = vadd.f32 %v3161_v23, %v3056_v44  ;;  %3259 = vst.msk [vmem:[#allocation3 + $0xf8] sm:$0xff] %vm1599_vm8, %v3211_v3  ;;  %v4101_v26 = vpop.f32.mrb[60].mxu1  ;;  %v2650_v33 = vld [vmem:[#allocation3 + $0x140] sm:$0xff]  ;;  %v2653_v3 = vld [vmem:[#allocation3 + $0x158] sm:$0xff] }
 0x2b0   : > { %v3294_v29 = vld [vmem:[#allocation3 + $0xd8] sm:$0xff]  ;;  %v3293_v5 = vld [vmem:[#allocation3 + $0xc8] sm:$0xff]  ;;  %3561 = vst.msk [vmem:[%s6248_s27 + $0x38] sm:$0xf] %vm3546_vm9, %v3917_v24  ;;  %v2696_v46 = vadd.f32 %v4101_v26, %v2648_v8  ;;  %v2563_v61 = vpop.f32.mrb[61].mxu1  ;;  %v4147_v9 = vpop.f32.mrb[56].mxu0 }
 0x2b1   : > { %v3333_v50 = vmul.f32 %v6225_v49, %v3294_v29  ;;  %v3370_v25 = vadd.f32 %v6228_v36, %v3331_v15  ;;  %v3332_v47 = vmul.f32 %v6225_v49, %v3293_v5  ;;  %3257 = vst.msk [vmem:[#allocation3 + $0xe8] sm:$0xff] %vm1599_vm8, %v3209_v0  ;;  %v2694_v37 = vadd.f32 %v2646_v57, %v2563_v61  ;;  %v3166_v60 = vld [vmem:[#allocation3 + $0x110] sm:$0xff]  ;;  %v4102_v54 = vpop.f32.mrb[62].mxu1  ;;  %v3069_v35 = vpop.f32.mrb[57].mxu0 }
 0x2b2   : > { %2744 = vst.msk [vmem:[#allocation3 + $0x130] sm:$0xff] %vm1599_vm8, %v2696_v46  ;;  %v3214_v34 = vadd.f32 %v4147_v9, %v3166_v60  ;;  %v2697_v1 = vadd.f32 %v4102_v54, %v2649_v6  ;;  %v3164_v38 = vld [vmem:[#allocation3 + $0x100] sm:$0xff]  ;;  %v2566_v31 = vpop.f32.mrb[63].mxu1  ;;  %v4148_v42 = vpop.f32.mrb[58].mxu0 }
 0x2b3   : > { %v3372_v62 = vadd.f32 %v6228_v36, %v3333_v50  ;;  %v3402_v59 = vmax.f32 %v3370_v25, 0.0  ;;  %v3371_v17 = vadd.f32 %v6228_v36, %v3332_v47  ;;  %2742 = vst.msk [vmem:[#allocation3 + $0x120] sm:$0xff] %vm1599_vm8, %v2694_v37  ;;  %v3212_v7 = vadd.f32 %v3164_v38, %v3069_v35  ;;  %v3072_v63 = vpop.f32.mrb[59].mxu0  ;;  %v2651_v25 = vld [vmem:[#allocation3 + $0x148] sm:$0xff] }
 0x2b4   : > { %v3296_v22 = vld [vmem:[#allocation3 + $0xf0] sm:$0xff]  ;;  %v2695_v45 = vadd.f32 %v2647_v58, %v2566_v31  ;;  %v3167_v53 = vld [vmem:[#allocation3 + $0x118] sm:$0xff]  ;;  %3262 = vst.msk [vmem:[#allocation3 + $0x110] sm:$0xff] %vm1599_vm8, %v3214_v34  ;;  %2745 = vst.msk [vmem:[#allocation3 + $0x138] sm:$0xff] %vm1599_vm8, %v2697_v1 }
 0x2b5   : > { %v3404_v20 = vmax.f32 %v3372_v62, 0.0  ;;  %v3919_v13 = vpack.c.bf16 %v3402_v59, %v3402_v59  ;;  %v3403_v40 = vmax.f32 %v3371_v17, 0.0  ;;  %v3335_v55 = vmul.f32 %v6225_v49, %v3296_v22  ;;  %v3295_v2 = vld [vmem:[#allocation3 + $0xe0] sm:$0xff]  ;;  %v3165_v16 = vld [vmem:[#allocation3 + $0x108] sm:$0xff]  ;;  %3260 = vst.msk [vmem:[#allocation3 + $0x100] sm:$0xff] %vm1599_vm8, %v3212_v7  ;;  %v2656_v34 = vld [vmem:[#allocation3 + $0x170] sm:$0xff] }
 0x2b6   : > { %v3215_v48 = vadd.f32 %v4148_v42, %v3167_v53  ;;  %v3334_v21 = vmul.f32 %v6225_v49, %v3295_v2  ;;  %v3297_v28 = vld [vmem:[#allocation3 + $0xf8] sm:$0xff]  ;;  %2743 = vst.msk [vmem:[#allocation3 + $0x128] sm:$0xff] %vm1599_vm8, %v2695_v45  ;;  %v3213_v39 = vadd.f32 %v3165_v16, %v3072_v63  ;;  %v2654_v58 = vld [vmem:[#allocation3 + $0x160] sm:$0xff]  ;;  %v2655_v63 = vld [vmem:[#allocation3 + $0x168] sm:$0xff] }
 0x2b7   : > { %v3921_v4 = vpack.c.bf16 %v3404_v20, %v3404_v20  ;;  %3563 = vst.msk [vmem:[%s6248_s27 + $0x40] sm:$0xf] %vm3546_vm9, %v3919_v13  ;;  %v3920_v32 = vpack.c.bf16 %v3403_v40, %v3403_v40  ;;  %v3374_v52 = vadd.f32 %v6228_v36, %v3335_v55  ;;  %v3336_v10 = vmul.f32 %v6225_v49, %v3297_v28  ;;  %v4105_v11 = vpop.f32.mrb[64].mxu1  ;;  %v2657_v22 = vld [vmem:[#allocation3 + $0x178] sm:$0xff] }
 0x2b8   : > { %3263 = vst.msk [vmem:[#allocation3 + $0x118] sm:$0xff] %vm1599_vm8, %v3215_v48  ;;  %v3373_v51 = vadd.f32 %v6228_v36, %v3334_v21  ;;  %3261 = vst.msk [vmem:[#allocation3 + $0x108] sm:$0xff] %vm1599_vm8, %v3213_v39  ;;  %v2700_v12 = vadd.f32 %v4105_v11, %v2652_v56  ;;  %v2579_v18 = vpop.f32.mrb[65].mxu1  ;;  %v4151_v27 = vpop.f32.mrb[60].mxu0 }
 0x2b9   : > { %3565 = vst.msk [vmem:[%s6248_s27 + $0x48] sm:$0xf] %vm3546_vm9, %v3921_v4  ;;  %3564 = vst.msk [vmem:[%s6248_s27 + $0x44] sm:$0xf] %vm3546_vm9, %v3920_v32  ;;  %v3406_v19 = vmax.f32 %v3374_v52, 0.0  ;;  %v3375_v41 = vadd.f32 %v6228_v36, %v3336_v10  ;;  %v2698_v30 = vadd.f32 %v2650_v33, %v2579_v18  ;;  %v3170_v44 = vld [vmem:[#allocation3 + $0x130] sm:$0xff] }
 0x2ba   : > { %v3405_v14 = vmax.f32 %v3373_v51, 0.0  ;;  %v4106_v43 = vpop.f32.mrb[66].mxu1  ;;  %v3085_v23 = vpop.f32.mrb[61].mxu0  ;;  %2748 = vst.msk [vmem:[#allocation3 + $0x150] sm:$0xff] %vm1599_vm8, %v2700_v12  ;;  %v3218_v29 = vadd.f32 %v4151_v27, %v3170_v44  ;;  %v3168_v50 = vld [vmem:[#allocation3 + $0x120] sm:$0xff] }
 0x2bb   : > { %v3923_v24 = vpack.c.bf16 %v3406_v19, %v3406_v19  ;;  %v3407_v15 = vmax.f32 %v3375_v41, 0.0  ;;  %v2701_v0 = vadd.f32 %v4106_v43, %v2653_v3  ;;  %v2582_v5 = vpop.f32.mrb[67].mxu1  ;;  %v4152_v47 = vpop.f32.mrb[62].mxu0  ;;  %v3299_v8 = vld [vmem:[#allocation3 + $0x110] sm:$0xff]  ;;  %2746 = vst.msk [vmem:[#allocation3 + $0x140] sm:$0xff] %vm1599_vm8, %v2698_v30  ;;  %v3216_v62 = vadd.f32 %v3168_v50, %v3085_v23  ;;  %v3171_v61 = vld [vmem:[#allocation3 + $0x138] sm:$0xff] }
 0x2bc   : > { %v3922_v26 = vpack.c.bf16 %v3405_v14, %v3405_v14  ;;  %v2699_v46 = vadd.f32 %v2651_v25, %v2582_v5  ;;  %v3088_v57 = vpop.f32.mrb[63].mxu0  ;;  %v3338_v59 = vmul.f32 %v6225_v49, %v3299_v8  ;;  %3266 = vst.msk [vmem:[#allocation3 + $0x130] sm:$0xff] %vm1599_vm8, %v3218_v29  ;;  %v3219_v17 = vadd.f32 %v4152_v47, %v3171_v61 }
 0x2bd   : > { %3567 = vst.msk [vmem:[%s6248_s27 + $0x50] sm:$0xf] %vm3546_vm9, %v3923_v24  ;;  %v3924_v9 = vpack.c.bf16 %v3407_v15, %v3407_v15  ;;  %v3169_v37 = vld [vmem:[#allocation3 + $0x128] sm:$0xff] }
 0x2be   : > { %2749 = vst.msk [vmem:[#allocation3 + $0x158] sm:$0xff] %vm1599_vm8, %v2701_v0  ;;  %3264 = vst.msk [vmem:[#allocation3 + $0x120] sm:$0xff] %vm1599_vm8, %v3216_v62  ;;  %v3217_v60 = vadd.f32 %v3169_v37, %v3088_v57  ;;  %v3377_v54 = vadd.f32 %v6228_v36, %v3338_v59 }
 0x2bf   : > { %3566 = vst.msk [vmem:[%s6248_s27 + $0x4c] sm:$0xf] %vm3546_vm9, %v3922_v26  ;;  %3568 = vst.msk [vmem:[%s6248_s27 + $0x54] sm:$0xf] %vm3546_vm9, %v3924_v9  ;;  %v3298_v6 = vld [vmem:[#allocation3 + $0x108] sm:$0xff]  ;;  %v4109_v20 = vpop.f32.mrb[68].mxu1 }
 0x2c0   : > { %2747 = vst.msk [vmem:[#allocation3 + $0x148] sm:$0xff] %vm1599_vm8, %v2699_v46  ;;  %3267 = vst.msk [vmem:[#allocation3 + $0x138] sm:$0xff] %vm1599_vm8, %v3219_v17  ;;  %v3337_v35 = vmul.f32 %v6225_v49, %v3298_v6  ;;  %v3409_v1 = vmax.f32 %v3377_v54, 0.0  ;;  %v2704_v38 = vadd.f32 %v4109_v20, %v2656_v34  ;;  %v2595_v31 = vpop.f32.mrb[69].mxu1 }
 0x2c1   : > { %3265 = vst.msk [vmem:[#allocation3 + $0x128] sm:$0xff] %vm1599_vm8, %v3217_v60  ;;  %v2702_v13 = vadd.f32 %v2654_v58, %v2595_v31  ;;  %v4110_v40 = vpop.f32.mrb[70].mxu1  ;;  %v3174_v51 = vld [vmem:[#allocation3 + $0x150] sm:$0xff] }
 0x2c2   : > { %v3376_v42 = vadd.f32 %v6228_v36, %v3337_v35  ;;  %v3926_v7 = vpack.c.bf16 %v3409_v1, %v3409_v1  ;;  %2752 = vst.msk [vmem:[#allocation3 + $0x170] sm:$0xff] %vm1599_vm8, %v2704_v38  ;;  %v2705_v45 = vadd.f32 %v4110_v40, %v2657_v22  ;;  %v2598_v53 = vpop.f32.mrb[71].mxu1  ;;  %v3172_v41 = vld [vmem:[#allocation3 + $0x140] sm:$0xff]  ;;  %v4310_v22 = vld [vmem:[#allocation9] ss:$0 sm:$0xff] }
 0x2c3   : > { %2750 = vst.msk [vmem:[#allocation3 + $0x160] sm:$0xff] %vm1599_vm8, %v2702_v13  ;;  %v2703_v55 = vadd.f32 %v2655_v63, %v2598_v53 }
 0x2c4   : > { %v3408_v4 = vmax.f32 %v3376_v42, 0.0  ;;  %3570 = vst.msk [vmem:[%s6248_s27 + $0x5c] sm:$0xf] %vm3546_vm9, %v3926_v7 }
 0x2c5   : > { %v3300_v2 = vld [vmem:[#allocation3 + $0x120] sm:$0xff]  ;;  %2753 = vst.msk [vmem:[#allocation3 + $0x178] sm:$0xff] %vm1599_vm8, %v2705_v45  ;;  %2751 = vst.msk [vmem:[#allocation3 + $0x168] sm:$0xff] %vm1599_vm8, %v2703_v55  ;;  %v3175_v14 = vld [vmem:[#allocation3 + $0x158] sm:$0xff] }
 0x2c6   : > { %v3925_v48 = vpack.c.bf16 %v3408_v4, %v3408_v4  ;;  %v3339_v16 = vmul.f32 %v6225_v49, %v3300_v2 }
 0x2c7   : > { %v3302_v32 = vld [vmem:[#allocation3 + $0x138] sm:$0xff]  ;;  %v4155_v10 = vpop.f32.mrb[64].mxu0  ;;  %v3173_v3 = vld [vmem:[#allocation3 + $0x148] sm:$0xff] }
 0x2c8   : > { %v3341_v21 = vmul.f32 %v6225_v49, %v3302_v32  ;;  %v3301_v28 = vld [vmem:[#allocation3 + $0x128] sm:$0xff]  ;;  %3569 = vst.msk [vmem:[%s6248_s27 + $0x58] sm:$0xf] %vm3546_vm9, %v3925_v48  ;;  %v3378_v39 = vadd.f32 %v6228_v36, %v3339_v16  ;;  %v3222_v56 = vadd.f32 %v4155_v10, %v3174_v51  ;;  %v3101_v19 = vpop.f32.mrb[65].mxu0 }
 0x2c9   : > { %v3340_v52 = vmul.f32 %v6225_v49, %v3301_v28  ;;  %v3220_v33 = vadd.f32 %v3172_v41, %v3101_v19  ;;  %v4156_v27 = vpop.f32.mrb[66].mxu0  ;;  %v3178_v5 = vld [vmem:[#allocation3 + $0x170] sm:$0xff] }
 0x2ca   : > { %v3380_v11 = vadd.f32 %v6228_v36, %v3341_v21  ;;  %v3410_v12 = vmax.f32 %v3378_v39, 0.0  ;;  %3270 = vst.msk [vmem:[#allocation3 + $0x150] sm:$0xff] %vm1599_vm8, %v3222_v56  ;;  %v3223_v44 = vadd.f32 %v4156_v27, %v3175_v14  ;;  %v3104_v43 = vpop.f32.mrb[67].mxu0  ;;  %v3176_v26 = vld [vmem:[#allocation3 + $0x160] sm:$0xff] }
 0x2cb   : > { %v3379_v18 = vadd.f32 %v6228_v36, %v3340_v52  ;;  %3268 = vst.msk [vmem:[#allocation3 + $0x140] sm:$0xff] %vm1599_vm8, %v3220_v33  ;;  %v3221_v15 = vadd.f32 %v3173_v3, %v3104_v43 }
 0x2cc   : > { %v3412_v30 = vmax.f32 %v3380_v11, 0.0  ;;  %v3927_v23 = vpack.c.bf16 %v3410_v12, %v3410_v12  ;;  %3271 = vst.msk [vmem:[#allocation3 + $0x158] sm:$0xff] %vm1599_vm8, %v3223_v44  ;;  %v3179_v61 = vld [vmem:[#allocation3 + $0x178] sm:$0xff]  ;;  %v3177_v37 = vld [vmem:[#allocation3 + $0x168] sm:$0xff] }
 0x2cd   : > { %v3411_v24 = vmax.f32 %v3379_v18, 0.0  ;;  %3269 = vst.msk [vmem:[#allocation3 + $0x148] sm:$0xff] %vm1599_vm8, %v3221_v15 }
 0x2ce   : > { %v3929_v29 = vpack.c.bf16 %v3412_v30, %v3412_v30  ;;  %3571 = vst.msk [vmem:[%s6248_s27 + $0x60] sm:$0xf] %vm3546_vm9, %v3927_v23 }
 0x2cf   : > { %v3928_v0 = vpack.c.bf16 %v3411_v24, %v3411_v24  ;;  %v4159_v50 = vpop.f32.mrb[68].mxu0 }
 0x2d0   : > { %3573 = vst.msk [vmem:[%s6248_s27 + $0x68] sm:$0xf] %vm3546_vm9, %v3929_v29  ;;  %v3226_v25 = vadd.f32 %v4159_v50, %v3178_v5  ;;  %v3117_v47 = vpop.f32.mrb[69].mxu0 }
 0x2d1   : > { %3572 = vst.msk [vmem:[%s6248_s27 + $0x64] sm:$0xf] %vm3546_vm9, %v3928_v0  ;;  %v3304_v8 = vld [vmem:[#allocation3 + $0x150] sm:$0xff]  ;;  %v3224_v62 = vadd.f32 %v3176_v26, %v3117_v47  ;;  %v4160_v46 = vpop.f32.mrb[70].mxu0 }
 0x2d2   : > { %v3343_v57 = vmul.f32 %v6225_v49, %v3304_v8  ;;  %v3303_v9 = vld [vmem:[#allocation3 + $0x140] sm:$0xff]  ;;  %3274 = vst.msk [vmem:[#allocation3 + $0x170] sm:$0xff] %vm1599_vm8, %v3226_v25  ;;  %v3227_v59 = vadd.f32 %v4160_v46, %v3179_v61  ;;  %v3120_v17 = vpop.f32.mrb[71].mxu0 }
 0x2d3   : > { %v3342_v60 = vmul.f32 %v6225_v49, %v3303_v9  ;;  %v3305_v54 = vld [vmem:[#allocation3 + $0x158] sm:$0xff]  ;;  %3272 = vst.msk [vmem:[#allocation3 + $0x160] sm:$0xff] %vm1599_vm8, %v3224_v62  ;;  %v3225_v6 = vadd.f32 %v3177_v37, %v3120_v17 }
 0x2d4   : > { %v3382_v35 = vadd.f32 %v6228_v36, %v3343_v57  ;;  %v3344_v20 = vmul.f32 %v6225_v49, %v3305_v54  ;;  %3275 = vst.msk [vmem:[#allocation3 + $0x178] sm:$0xff] %vm1599_vm8, %v3227_v59 }
 0x2d5   : > { %v3381_v34 = vadd.f32 %v6228_v36, %v3342_v60  ;;  %3273 = vst.msk [vmem:[#allocation3 + $0x168] sm:$0xff] %vm1599_vm8, %v3225_v6 }
 0x2d6   : > { %v3414_v1 = vmax.f32 %v3382_v35, 0.0  ;;  %v3383_v38 = vadd.f32 %v6228_v36, %v3344_v20 }
 0x2d7   : > { %v3413_v31 = vmax.f32 %v3381_v34, 0.0 }
 0x2d8   : > { %v3931_v58 = vpack.c.bf16 %v3414_v1, %v3414_v1  ;;  %v3415_v42 = vmax.f32 %v3383_v38, 0.0 }
 0x2d9   : > { %v3930_v13 = vpack.c.bf16 %v3413_v31, %v3413_v31  ;;  %v3307_v40 = vld [vmem:[#allocation3 + $0x170] sm:$0xff] }
 0x2da   : > { %3575 = vst.msk [vmem:[%s6248_s27 + $0x70] sm:$0xf] %vm3546_vm9, %v3931_v58  ;;  %v3932_v49 = vpack.c.bf16 %v3415_v42, %v3415_v42  ;;  %v3346_v7 = vmul.f32 %v4310_v22, %v3307_v40 }
 0x2db   : > { %3574 = vst.msk [vmem:[%s6248_s27 + $0x6c] sm:$0xf] %vm3546_vm9, %v3930_v13 }
 0x2dc   : > { %3576 = vst.msk [vmem:[%s6248_s27 + $0x74] sm:$0xf] %vm3546_vm9, %v3932_v49  ;;  %v3385_v45 = vadd.f32 %v6228_v36, %v3346_v7  ;;  %v3306_v53 = vld [vmem:[#allocation3 + $0x168] sm:$0xff] }
 0x2dd   : > { %v3345_v63 = vmul.f32 %v4310_v22, %v3306_v53 }
 0x2de   : > { %v3417_v4 = vmax.f32 %v3385_v45, 0.0 }
 0x2df   : > { %v3384_v55 = vadd.f32 %v6228_v36, %v3345_v63 }
 0x2e0   : > { %v3934_v2 = vpack.c.bf16 %v3417_v4, %v3417_v4 }
 0x2e1   : > { %v3416_v48 = vmax.f32 %v3384_v55, 0.0 }
 0x2e2   : > { %3578 = vst.msk [vmem:[%s6248_s27 + $0x7c] sm:$0xf] %vm3546_vm9, %v3934_v2 }
 0x2e3   : > { %v3933_v16 = vpack.c.bf16 %v3416_v48, %v3416_v48 }
 0x2e5   : > { %3577 = vst.msk [vmem:[%s6248_s27 + $0x78] sm:$0xf] %vm3546_vm9, %v3933_v16 }
 0x2e6   : > { %4438 = shalt.err (!%p4435_p0)
}
 0x2e7   : > { %s4439_s8 = scalar_lea.hbm %s6446_s10, 2048  ;;  %s4443_s26 = scalar_lea.hbm %s6504_s4, 4096 }
 0x2e8   : > { %p4440_p4 = scmp.ne.s32.totalorder %s6446_s10, %s4439_s8  ;;  %p4444_p12 = scmp.lt.u32.totalorder %s6446_s10, %s6504_s4 }
 0x2e9   : > { %p4445_p1 = scmp.lt.u32.totalorder %s4443_s26, %s4439_s8  ;;  %p4447_p13 = scmp.lt.u32.totalorder %s4439_s8, %s6446_s10 }
 0x2ea   : > { %p4441_p2 = pnand %p4440_p4, %p4708_p10 }
 0x2eb   : > { %p4446_p11 = por %p4445_p1, %p4444_p12 }
 0x2ec   : > { %p4442_p8 = pneg %p4441_p2 }
 0x2ed   : > { %p4448_p6 = por %p4447_p13, %p4446_p11 }
 0x2ef   : > { %p4449_p3 = pnand %p4448_p6, %p4442_p8 }
 0x2f1   : > { %4452 = shalt.err (!%p4449_p3)
}
 0x2f2   : > { %s4527_s5 = smov 64  }
 0x2f3   : > { %4181 = dma.vmem_to_hbm [thread:$0]  (%p4708_p10), %s6448_s7, 2048, %s6446_s10, %s3580_s29, %s4527_s5, %s4527_s5, %s4525_s25  }
 0x2f4 PF: > { %s6664_s24 = sld [smem:[#allocation17_spill]]  ;;  %s3609_s6 = sand.u32 1, %s4495_s15  }
 0x2f5   : > { %p6666_p7 = scmp.ge.s32.totalorder %s4515_s20, 2  ;;  %s3610_s18 = scalar_lea.sflag [#allocation6], %s3609_s6 }
 0x2fa   : > { %p6665_p5 = scmp.ne.s32.totalorder %s6664_s24, 0 }
 0x2fc   : > { %p4198_p9 = pnand %p6666_p7, %p6665_p5 }
 0x2fe   : > { %4490 = dma.done.wait (!%p4198_p9), %s3610_s18, 2048  }
 0x2ff   : > { %4492 = vsyncadd (!%p4198_p9), %s3610_s18, 4294965248  ;;  %s22_s20 = sadd.s32 1, %s4515_s20   ;;  %s6667_s15 = smov %s4499_s16 }
 0x300   : > { %p19_p0 = scmp.ge.s32.totalorder %s22_s20, 4   ;;  %s6668_s16 = smov %s4503_s17 }
 0x301   : > { %s6669_s17 = smov %s4720_s22  ;;  %s6670_s18 = smov %s4511_s19 }
 0x302   : > { %s6671_s19 = smov %s6673_s11  ;;  %21 = sbr.rel (!%p19_p0) target bundleno = 8 (0x8), region = 104 }
 0x309   :  { %3615 = vsyncpa [#allocation5], 1 }
 0x30a   :  { %3617 = vsyncpa [#allocation5 + $0x1], 1 }
 0x30b   :  { %3618 = vsyncpa [#allocation8], 1 }
 0x30c   :  { %3619 = vsyncpa [#allocation11], 1 }
 0x30d   :  { %3620 = vsyncpa [#allocation6], 1 }
 0x30e   :  { %3622 = vsyncpa [#allocation6 + $0x1], 1 }

</bundles_post_ra>
